<compile_context>
chip_gen: v5e
topology: v5e:2x2
jax: 0.10.0
libtpu: 0.0.40
codegen_flags: <defaults>
</compile_context>

<pallas_src>
import functools

import jax
import jax.numpy as jnp
from jax.experimental import pallas as pl
from jax.experimental.pallas import tpu as pltpu


def _round_up(x, m):
    return (x + m - 1) // m * m


# ----------------------------------------------------------------------------
# Fused kernel: combined user+item one-hot gather through one MXU matmul,
# packed [u|v] embedding output, dot-product logits, stable BCE-with-logits,
# per-core batch-tiled accumulation of raw per-task sums.
# ----------------------------------------------------------------------------
def _fused_kernel(uidx_ref, iidx_ref, tab_ref, y_ref, emb_ref, loss_ref, *,
                  user_fields, item_fields, emb_dim, b_true, tile_b,
                  tiles_per_core):
    c = pl.program_id(0)        # TensorCore-parallel axis
    t = pl.program_id(1)        # batch-tile (reduction) axis

    @pl.when(t == 0)
    def _init():
        loss_ref[...] = jnp.zeros_like(loss_ref)

    v_pad = tab_ref.shape[0]
    col = jax.lax.broadcasted_iota(jnp.int32, (tile_b, v_pad), 1)

    def multi_hot(hot, idx_ref, fields):
        idx = idx_ref[...]                                       # (tile_b, F) i32
        for f, (off, vocab) in enumerate(fields):
            # Clamp to the field's vocab so OOB indices cannot leak into the
            # next field's row range.
            tgt = jnp.clip(idx[:, f:f + 1], 0, vocab - 1) + off  # (tile_b, 1)
            h = col == tgt                                       # (tile_b, v_pad)
            hot = h if hot is None else jnp.logical_or(hot, h)
        return hot

    # One multi-hot over BOTH groups (disjoint row ranges in the packed table).
    hot = multi_hot(None, uidx_ref, user_fields)
    hot = multi_hot(hot, iidx_ref, item_fields)

    # Single MXU matmul: bf16 one-hot x bf16 packed table, f32 accumulate.
    # Result lanes [0:D) = user embedding, [D:2D) = item embedding (exact).
    packed = jnp.dot(hot.astype(jnp.bfloat16), tab_ref[...],
                     preferred_element_type=jnp.float32)         # (tile_b, P)
    emb_ref[...] = packed

    p_lanes = packed.shape[1]
    if 2 * emb_dim == p_lanes:
        # roll by D: every lane pairs u_j with v_j (each product appears twice),
        # so sum over lanes == 2 * (u . v).  XLU roll, no lane-slice relayout.
        prod = packed * pltpu.roll(packed, shift=emb_dim, axis=1)
        logits = 0.5 * jnp.sum(prod, axis=-1, keepdims=True)     # (tile_b, 1)
    else:
        u = packed[:, :emb_dim]
        v = packed[:, emb_dim:2 * emb_dim]
        logits = jnp.sum(u * v, axis=-1, keepdims=True)          # (tile_b, 1)

    # Mask padded batch rows (they must not contribute to the loss sums).
    row = (jax.lax.broadcasted_iota(jnp.int32, (tile_b, 1), 0)
           + (c * tiles_per_core + t) * tile_b)
    valid = (row < b_true).astype(jnp.float32)                   # (tile_b, 1)

    # Stable BCE-with-logits: elem = max(x,0) - x*y + log1p(exp(-|x|)).
    # x-only terms are shared across tasks -> computed once on (tile_b, 1).
    stable = (jnp.maximum(logits, 0.0)
              + jnp.log1p(jnp.exp(-jnp.abs(logits)))) * valid    # (tile_b, 1)
    x = logits * valid                                           # (tile_b, 1)

    y = y_ref[...].astype(jnp.float32)                           # (tile_b, 128)
    tile_sum = (jnp.sum(stable, axis=0, keepdims=True)
                - jnp.sum(x * y, axis=0, keepdims=True))         # (1, 128)
    # Raw per-task sums; lanes >= n_tasks are never read by the wrapper.
    loss_ref[...] += tile_sum                                    # bcast to (8,128)


# ----------------------------------------------------------------------------
# Model wrapper (parameter setup + padding glue in plain JAX)
# ----------------------------------------------------------------------------
class BaseMultiTaskModelPallas:
    def __init__(self, feature_configs, embedding_dim=64, seed=0):
        self.feature_configs = feature_configs
        self.embedding_dim = embedding_dim
        D = embedding_dim
        self.p_lanes = _round_up(2 * D, 128)

        # Row-stack user + item tables into one packed (V_pad, P) bf16 table:
        # user rows carry lanes [0:D), item rows carry lanes [D:2D).
        key = jax.random.PRNGKey(seed)
        fields = {}
        rows = 0
        for group in ("user", "item"):
            offs = []
            for _, vsz in feature_configs[group].items():
                offs.append((rows, int(vsz)))
                rows += int(vsz)
            fields[group] = tuple(offs)
        self.fields = fields
        v_pad = _round_up(max(rows, 8), 128)

        tab = jnp.zeros((v_pad, self.p_lanes), jnp.float32)
        for gi, group in enumerate(("user", "item")):
            lane0 = gi * D
            for (off, vsz) in fields[group]:
                key, sub = jax.random.split(key)
                w = 0.05 * jax.random.normal(sub, (vsz, D), dtype=jnp.float32)
                tab = tab.at[off:off + vsz, lane0:lane0 + D].set(w)
        # bf16 storage: native MXU rate + half the HBM->VMEM bytes.
        self.table = tab.astype(jnp.bfloat16)

    def forward_and_loss(self, user_feats, item_feats, labels, loss_weights,
                         tile_b=256, num_cores=2):
        B = user_feats.shape[0]
        T = labels.shape[1]
        D = self.embedding_dim
        P = self.p_lanes
        T_LANES = 128
        assert T <= T_LANES

        n_tiles = pl.cdiv(B, tile_b)
        # Leading parallel axis: 2-way on v7x (2 TCs); same sequential work on
        # v5e/v6e so it is safe to leave enabled everywhere.
        n_cores = max(1, min(num_cores, n_tiles))
        tiles_per_core = pl.cdiv(n_tiles, n_cores)
        b_pad = n_cores * tiles_per_core * tile_b

        def pad_rows(a):
            return jnp.pad(a, ((0, b_pad - a.shape[0]), (0, 0)))

        uidx = pad_rows(user_feats.astype(jnp.int32))
        iidx = pad_rows(item_feats.astype(jnp.int32))
        # Labels DMA'd as bf16 (exact for 0/1 labels) -> half the label stream.
        y = jnp.zeros((b_pad, T_LANES), jnp.bfloat16)
        y = y.at[:B, :T].set(labels.astype(jnp.bfloat16))

        fu = uidx.shape[1]
        fi = iidx.shape[1]
        v_pad = self.table.shape[0]

        kernel = functools.partial(
            _fused_kernel,
            user_fields=self.fields["user"], item_fields=self.fields["item"],
            emb_dim=D, b_true=B, tile_b=tile_b, tiles_per_core=tiles_per_core)

        # VMEM budget: resident packed table (single-buffered) + double-buffered
        # per-tile blocks + one-hot / matmul intermediates, with 2x headroom.
        table_bytes = v_pad * P * 2
        tile_bytes = (tile_b * (fu + fi) * 4 + tile_b * T_LANES * 2
                      + tile_b * P * 4 + 8 * T_LANES * 4)
        scratch_bytes = tile_b * v_pad * 6 + tile_b * P * 4
        vmem_limit = int(min(64 << 20,
                             max(16 << 20,
                                 2 * (table_bytes + 2 * tile_bytes
                                      + scratch_bytes))))

        bidx = lambda c, t: (c * tiles_per_core + t, 0)

        grid_spec = pltpu.PrefetchScalarGridSpec(
            num_scalar_prefetch=0,
            grid=(n_cores, tiles_per_core),
            in_specs=[
                pl.BlockSpec((tile_b, fu), bidx),                  # user indices
                pl.BlockSpec((tile_b, fi), bidx),                  # item indices
                pl.BlockSpec((v_pad, P), lambda c, t: (0, 0),      # packed table
                             pipeline_mode=pl.Buffered(1)),        # resident: 1 buf
                pl.BlockSpec((tile_b, T_LANES), bidx),             # labels (bf16)
            ],
            out_specs=(
                pl.BlockSpec((tile_b, P), bidx),                   # packed [u|v]
                pl.BlockSpec((8, T_LANES), lambda c, t: (c, 0)),   # per-core sums
            ),
        )

        emb_pad, loss_part = pl.pallas_call(
            kernel,
            out_shape=(
                jax.ShapeDtypeStruct((b_pad, P), jnp.float32),
                jax.ShapeDtypeStruct((n_cores * 8, T_LANES), jnp.float32),
            ),
            grid_spec=grid_spec,
            compiler_params=pltpu.CompilerParams(
                dimension_semantics=("parallel", "arbitrary"),
                vmem_limit_bytes=vmem_limit),
        )(uidx, iidx, self.table, y)

        user_emb = emb_pad[:B, :D]
        item_emb = emb_pad[:B, D:2 * D]

        # Tiny finalize in plain JAX: reduce per-core partial sums, mean over
        # the true batch, weighted total (keeps the v7x dual-core path free of
        # any in-kernel cross-core reduction).
        sums = loss_part.reshape(n_cores, 8, T_LANES)[:, 0, :].sum(axis=0)
        task_losses = sums[:T] / B
        total_loss = jnp.sum(task_losses * loss_weights.reshape(-1)[:T])
        return user_emb, item_emb, task_losses, total_loss


# ----------------------------------------------------------------------------
# Reference (pure JAX) for a correctness sanity check.
# ----------------------------------------------------------------------------
def _reference(model, user_feats, item_feats, labels, loss_weights):
    D = model.embedding_dim
    tab = model.table.astype(jnp.float32)

    def embed(group, idx, lane0):
        out = jnp.zeros((idx.shape[0], D), jnp.float32)
        for f, (off, _) in enumerate(model.fields[group]):
            out = out + tab[off + idx[:, f], lane0:lane0 + D]
        return out

    u = embed("user", user_feats, 0)
    v = embed("item", item_feats, D)
    logits = jnp.sum(u * v, axis=-1, keepdims=True)
    x = jnp.broadcast_to(logits, labels.shape)
    yl = labels.astype(jnp.float32)
    elem = jnp.maximum(x, 0.0) - x * yl + jnp.log1p(jnp.exp(-jnp.abs(x)))
    per_task = jnp.mean(elem, axis=0)
    total = jnp.sum(per_task * loss_weights.reshape(-1))
    return u, v, per_task, total


if __name__ == "__main__":
    feature_configs = {
        "user": {"user_id": 64, "age_bucket": 16},
        "item": {"item_id": 64, "category": 16},
    }
    embedding_dim = 64
    batch = 600          # 3 tiles of 256 -> 2 "cores" x 2 tiles: exercises the
                         # parallel axis, cross-tile accumulation and padded-row
                         # masking
    num_tasks = 2        # e.g. ctr, cvr

    model = BaseMultiTaskModelPallas(feature_configs, embedding_dim, seed=0)

    key = jax.random.PRNGKey(0)
    k1, k2, k3, k4, k5 = jax.random.split(key, 5)
    user_feats = jnp.stack(
        [jax.random.randint(k1, (batch,), 0, 64),
         jax.random.randint(k2, (batch,), 0, 16)], axis=-1).astype(jnp.int32)
    item_feats = jnp.stack(
        [jax.random.randint(k3, (batch,), 0, 64),
         jax.random.randint(k4, (batch,), 0, 16)], axis=-1).astype(jnp.int32)
    labels = jax.random.bernoulli(k5, 0.5, (batch, num_tasks)).astype(jnp.float32)
    loss_weights = jnp.array([[1.0, 0.5]], dtype=jnp.float32)

    user_emb, item_emb, task_losses, total_loss = jax.block_until_ready(
        model.forward_and_loss(user_feats, item_feats, labels, loss_weights,
                               tile_b=256, num_cores=2))

    ru, rv, rtask, rtotal = _reference(model, user_feats, item_feats, labels,
                                       loss_weights)
    assert jnp.allclose(user_emb, ru, atol=1e-5, rtol=1e-5)
    assert jnp.allclose(item_emb, rv, atol=1e-5, rtol=1e-5)
    assert jnp.allclose(task_losses, rtask, atol=1e-5, rtol=1e-5)
    assert jnp.allclose(total_loss, rtotal, atol=1e-5, rtol=1e-5)

    print("KERNEL_OK")
</pallas_src>

<mosaic_0001>
module attributes {stable_mosaic.version = 11 : i64} {
  func.func @_fused_kernel(%arg0: i32, %arg1: i32, %arg2: memref<256x2xi32, #tpu.memory_space<vmem>>, %arg3: memref<256x2xi32, #tpu.memory_space<vmem>>, %arg4: memref<256x128xbf16, #tpu.memory_space<vmem>>, %arg5: memref<256x128xbf16, #tpu.memory_space<vmem>>, %arg6: memref<256x128xf32, #tpu.memory_space<vmem>>, %arg7: memref<8x128xf32, #tpu.memory_space<vmem>>) attributes {dimension_semantics = [#tpu.dimension_semantics<parallel>, #tpu.dimension_semantics<arbitrary>], iteration_bounds = array<i64: 2, 2>, scalar_prefetch = 0 : i64, scratch_operands = 0 : i64, tpu.core_type = #tpu.core_type<tc>, window_params = [{transform_indices = @transform_0, window_bounds = array<i64: 256, 2>}, {transform_indices = @transform_1, window_bounds = array<i64: 256, 2>}, {pipeline_mode = #tpu.pipeline_mode<synchronous>, transform_indices = @transform_2, window_bounds = array<i64: 256, 128>}, {transform_indices = @transform_3, window_bounds = array<i64: 256, 128>}, {transform_indices = @transform_4, window_bounds = array<i64: 256, 128>}, {transform_indices = @transform_5, window_bounds = array<i64: 8, 128>}]} {
    %c0_i32 = arith.constant 0 : i32
    %0 = arith.cmpi eq, %arg1, %c0_i32 : i32
    %1 = arith.extui %0 : i1 to i32
    %c0_i32_0 = arith.constant 0 : i32
    %2 = arith.cmpi ne, %1, %c0_i32_0 : i32
    scf.if %2 {
      %cst_28 = arith.constant 0.000000e+00 : f32
      %91 = vector.broadcast %cst_28 : f32 to vector<8x128xf32>
      %c0_29 = arith.constant 0 : index
      %c0_30 = arith.constant 0 : index
      %92 = vector.load %arg7[%c0_29, %c0_30] : memref<8x128xf32, #tpu.memory_space<vmem>>, vector<8x128xf32>
      tpu.vector_store %arg7[%c0_29, %c0_30], %91 {strides = array<i32>} : memref<8x128xf32, #tpu.memory_space<vmem>>, vector<8x128xf32>,
    } else {
    }
    %3 = tpu.iota {dimensions = array<i32: 1>} : vector<256x256xi32>
    %c0 = arith.constant 0 : index
    %c0_1 = arith.constant 0 : index
    %4 = vector.load %arg2[%c0, %c0_1] : memref<256x2xi32, #tpu.memory_space<vmem>>, vector<256x2xi32>
    %5 = vector.extract_strided_slice %4 {offsets = [0, 0], sizes = [256, 1], strides = [1, 1]} : vector<256x2xi32> to vector<256x1xi32>
    %c0_i32_2 = arith.constant 0 : i32
    %c63_i32 = arith.constant 63 : i32
    %6 = vector.broadcast %c0_i32_2 : i32 to vector<256x1xi32>
    %7 = arith.maxsi %6, %5 : vector<256x1xi32>
    %8 = vector.broadcast %c63_i32 : i32 to vector<256x1xi32>
    %9 = arith.minsi %8, %7 : vector<256x1xi32>
    %c0_i32_3 = arith.constant 0 : i32
    %10 = vector.broadcast %c0_i32_3 : i32 to vector<256x1xi32>
    %11 = arith.addi %9, %10 : vector<256x1xi32>
    %12 = vector.broadcast %11 : vector<256x1xi32> to vector<256x256xi32>
    %13 = arith.cmpi eq, %3, %12 : vector<256x256xi32>
    %14 = vector.extract_strided_slice %4 {offsets = [0, 1], sizes = [256, 1], strides = [1, 1]} : vector<256x2xi32> to vector<256x1xi32>
    %c0_i32_4 = arith.constant 0 : i32
    %c15_i32 = arith.constant 15 : i32
    %15 = vector.broadcast %c0_i32_4 : i32 to vector<256x1xi32>
    %16 = arith.maxsi %15, %14 : vector<256x1xi32>
    %17 = vector.broadcast %c15_i32 : i32 to vector<256x1xi32>
    %18 = arith.minsi %17, %16 : vector<256x1xi32>
    %c64_i32 = arith.constant 64 : i32
    %19 = vector.broadcast %c64_i32 : i32 to vector<256x1xi32>
    %20 = arith.addi %18, %19 : vector<256x1xi32>
    %21 = vector.broadcast %20 : vector<256x1xi32> to vector<256x256xi32>
    %22 = arith.cmpi eq, %3, %21 : vector<256x256xi32>
    %23 = arith.ori %13, %22 : vector<256x256xi1>
    %c0_5 = arith.constant 0 : index
    %c0_6 = arith.constant 0 : index
    %24 = vector.load %arg3[%c0_5, %c0_6] : memref<256x2xi32, #tpu.memory_space<vmem>>, vector<256x2xi32>
    %25 = vector.extract_strided_slice %24 {offsets = [0, 0], sizes = [256, 1], strides = [1, 1]} : vector<256x2xi32> to vector<256x1xi32>
    %c0_i32_7 = arith.constant 0 : i32
    %c63_i32_8 = arith.constant 63 : i32
    %26 = vector.broadcast %c0_i32_7 : i32 to vector<256x1xi32>
    %27 = arith.maxsi %26, %25 : vector<256x1xi32>
    %28 = vector.broadcast %c63_i32_8 : i32 to vector<256x1xi32>
    %29 = arith.minsi %28, %27 : vector<256x1xi32>
    %c80_i32 = arith.constant 80 : i32
    %30 = vector.broadcast %c80_i32 : i32 to vector<256x1xi32>
    %31 = arith.addi %29, %30 : vector<256x1xi32>
    %32 = vector.broadcast %31 : vector<256x1xi32> to vector<256x256xi32>
    %33 = arith.cmpi eq, %3, %32 : vector<256x256xi32>
    %34 = arith.ori %23, %33 : vector<256x256xi1>
    %35 = vector.extract_strided_slice %24 {offsets = [0, 1], sizes = [256, 1], strides = [1, 1]} : vector<256x2xi32> to vector<256x1xi32>
    %c0_i32_9 = arith.constant 0 : i32
    %c15_i32_10 = arith.constant 15 : i32
    %36 = vector.broadcast %c0_i32_9 : i32 to vector<256x1xi32>
    %37 = arith.maxsi %36, %35 : vector<256x1xi32>
    %38 = vector.broadcast %c15_i32_10 : i32 to vector<256x1xi32>
    %39 = arith.minsi %38, %37 : vector<256x1xi32>
    %c144_i32 = arith.constant 144 : i32
    %40 = vector.broadcast %c144_i32 : i32 to vector<256x1xi32>
    %41 = arith.addi %39, %40 : vector<256x1xi32>
    %42 = vector.broadcast %41 : vector<256x1xi32> to vector<256x256xi32>
    %43 = arith.cmpi eq, %3, %42 : vector<256x256xi32>
    %44 = arith.ori %34, %43 : vector<256x256xi1>
    %45 = arith.extui %44 : vector<256x256xi1> to vector<256x256xi32>
    %46 = arith.sitofp %45 : vector<256x256xi32> to vector<256x256xf32>
    %47 = arith.truncf %46 : vector<256x256xf32> to vector<256x256xbf16>
    %c0_11 = arith.constant 0 : index
    %c0_12 = arith.constant 0 : index
    %48 = vector.load %arg4[%c0_11, %c0_12] : memref<256x128xbf16, #tpu.memory_space<vmem>>, vector<256x128xbf16>
    %cst = arith.constant dense<0.000000e+00> : vector<256x128xf32>
    %49 = tpu.matmul %47, %48, %cst {dimension_numbers = #tpu.dot_dimension_numbers<[1], [0], [0], [1], [0, 0, 1, 1], [], []>} : vector<256x256xbf16>, vector<256x128xbf16>, vector<256x128xf32> -> vector<256x128xf32>
    %c0_13 = arith.constant 0 : index
    %c0_14 = arith.constant 0 : index
    %50 = vector.load %arg6[%c0_13, %c0_14] : memref<256x128xf32, #tpu.memory_space<vmem>>, vector<256x128xf32>
    tpu.vector_store %arg6[%c0_13, %c0_14], %49 {strides = array<i32>} : memref<256x128xf32, #tpu.memory_space<vmem>>, vector<256x128xf32>,
    %c64_i32_15 = arith.constant 64 : i32
    %51 = tpu.dynamic_rotate %49 by %c64_i32_15 dim 1 : vector<256x128xf32>, i32 -> vector<256x128xf32>
    %52 = arith.mulf %49, %51 : vector<256x128xf32>
    %cst_16 = arith.constant dense<0.000000e+00> : vector<256xf32>
    %53 = vector.multi_reduction <add>, %52, %cst_16 [1] : vector<256x128xf32> to vector<256xf32>
    %54 = vector.shape_cast %53 : vector<256xf32> to vector<256x1xf32>
    %cst_17 = arith.constant 5.000000e-01 : f32
    %55 = vector.broadcast %cst_17 : f32 to vector<256x1xf32>
    %56 = arith.mulf %55, %54 : vector<256x1xf32>
    %57 = tpu.iota {dimensions = array<i32: 0>} : vector<256x1xi32>
    %c2_i32 = arith.constant 2 : i32
    %58 = arith.muli %arg0, %c2_i32 : i32
    %59 = arith.addi %58, %arg1 : i32
    %c256_i32 = arith.constant 256 : i32
    %60 = arith.muli %59, %c256_i32 : i32
    %61 = vector.broadcast %60 : i32 to vector<256x1xi32>
    %62 = arith.addi %57, %61 : vector<256x1xi32>
    %c600_i32 = arith.constant 600 : i32
    %63 = vector.broadcast %c600_i32 : i32 to vector<256x1xi32>
    %64 = arith.cmpi slt, %62, %63 : vector<256x1xi32>
    %65 = arith.extui %64 : vector<256x1xi1> to vector<256x1xi32>
    %66 = arith.sitofp %65 : vector<256x1xi32> to vector<256x1xf32>
    %cst_18 = arith.constant 0.000000e+00 : f32
    %67 = vector.broadcast %cst_18 : f32 to vector<256x1xf32>
    %68 = arith.maximumf %56, %67 : vector<256x1xf32>
    %69 = math.absf %56 : vector<256x1xf32>
    %cst_19 = arith.constant 0.000000e+00 : f32
    %70 = vector.broadcast %cst_19 : f32 to vector<256x1xf32>
    %71 = arith.subf %70, %69 : vector<256x1xf32>
    %72 = math.exp %71 : vector<256x1xf32>
    %73 = math.log1p %72 : vector<256x1xf32>
    %74 = arith.addf %68, %73 : vector<256x1xf32>
    %75 = arith.mulf %74, %66 : vector<256x1xf32>
    %76 = arith.mulf %56, %66 : vector<256x1xf32>
    %c0_20 = arith.constant 0 : index
    %c0_21 = arith.constant 0 : index
    %77 = vector.load %arg5[%c0_20, %c0_21] : memref<256x128xbf16, #tpu.memory_space<vmem>>, vector<256x128xbf16>
    %78 = arith.extf %77 : vector<256x128xbf16> to vector<256x128xf32>
    %cst_22 = arith.constant dense<0.000000e+00> : vector<1xf32>
    %79 = vector.multi_reduction <add>, %75, %cst_22 [0] : vector<256x1xf32> to vector<1xf32>
    %80 = vector.shape_cast %79 : vector<1xf32> to vector<1x1xf32>
    %81 = vector.broadcast %76 : vector<256x1xf32> to vector<256x128xf32>
    %82 = arith.mulf %81, %78 : vector<256x128xf32>
    %cst_23 = arith.constant dense<0.000000e+00> : vector<128xf32>
    %83 = vector.multi_reduction <add>, %82, %cst_23 [0] : vector<256x128xf32> to vector<128xf32>
    %84 = vector.shape_cast %83 : vector<128xf32> to vector<1x128xf32>
    %85 = vector.broadcast %80 : vector<1x1xf32> to vector<1x128xf32>
    %86 = arith.subf %85, %84 : vector<1x128xf32>
    %c0_24 = arith.constant 0 : index
    %c0_25 = arith.constant 0 : index
    %87 = vector.load %arg7[%c0_24, %c0_25] : memref<8x128xf32, #tpu.memory_space<vmem>>, vector<8x128xf32>
    %88 = vector.broadcast %86 : vector<1x128xf32> to vector<8x128xf32>
    %89 = arith.addf %87, %88 : vector<8x128xf32>
    %c0_26 = arith.constant 0 : index
    %c0_27 = arith.constant 0 : index
    %90 = vector.load %arg7[%c0_26, %c0_27] : memref<8x128xf32, #tpu.memory_space<vmem>>, vector<8x128xf32>
    tpu.vector_store %arg7[%c0_26, %c0_27], %89 {strides = array<i32>} : memref<8x128xf32, #tpu.memory_space<vmem>>, vector<8x128xf32>,
    return
  }
  func.func @transform_0(%arg0: i32, %arg1: i32) -> (i32, i32) {
    %c2_i32 = arith.constant 2 : i32
    %0 = arith.muli %arg0, %c2_i32 : i32
    %1 = arith.addi %0, %arg1 : i32
    %c0_i32 = arith.constant 0 : i32
    %c0_i32_0 = arith.constant 0 : i32
    return %1, %c0_i32 : i32, i32
  }
  func.func @transform_1(%arg0: i32, %arg1: i32) -> (i32, i32) {
    %c2_i32 = arith.constant 2 : i32
    %0 = arith.muli %arg0, %c2_i32 : i32
    %1 = arith.addi %0, %arg1 : i32
    %c0_i32 = arith.constant 0 : i32
    %c0_i32_0 = arith.constant 0 : i32
    return %1, %c0_i32 : i32, i32
  }
  func.func @transform_2(%arg0: i32, %arg1: i32) -> (i32, i32) {
    %c0_i32 = arith.constant 0 : i32
    %c0_i32_0 = arith.constant 0 : i32
    %c0_i32_1 = arith.constant 0 : i32
    return %c0_i32, %c0_i32_0 : i32, i32
  }
  func.func @transform_3(%arg0: i32, %arg1: i32) -> (i32, i32) {
    %c2_i32 = arith.constant 2 : i32
    %0 = arith.muli %arg0, %c2_i32 : i32
    %1 = arith.addi %0, %arg1 : i32
    %c0_i32 = arith.constant 0 : i32
    %c0_i32_0 = arith.constant 0 : i32
    return %1, %c0_i32 : i32, i32
  }
  func.func @transform_4(%arg0: i32, %arg1: i32) -> (i32, i32) {
    %c2_i32 = arith.constant 2 : i32
    %0 = arith.muli %arg0, %c2_i32 : i32
    %1 = arith.addi %0, %arg1 : i32
    %c0_i32 = arith.constant 0 : i32
    %c0_i32_0 = arith.constant 0 : i32
    return %1, %c0_i32 : i32, i32
  }
  func.func @transform_5(%arg0: i32, %arg1: i32) -> (i32, i32) {
    %c0_i32 = arith.constant 0 : i32
    %c0_i32_0 = arith.constant 0 : i32
    return %arg0, %c0_i32 : i32, i32
  }
}

</mosaic_0001>

<bundles_post_ra>
// kernel: tpu_custom_call.1
= control target key start
LH: loop header
LB: loop body
LE: loop exit
PB: predicated region body
PF: predicated region fallthrough
CT: control target
= control target key end

     0   :  { %11 = vsyncpa [#allocation3], 0  ;;  %s7880_s0 = inlined_call_operand.vmem [shape: s32[1024,2], index: 0, kind: input, shape index: {}]   ;;  %s7881_s1 = inlined_call_operand.vmem [shape: s32[1024,2], index: 1, kind: input, shape index: {}]   ;;  %s7882_s2 = inlined_call_operand.vmem [shape: bf16[256,128], index: 2, kind: input, shape index: {}]   ;;  %s7883_s3 = inlined_call_operand.vmem [shape: bf16[1024,128], index: 3, kind: input, shape index: {}]   ;;  %s7884_s4 = inlined_call_operand.hbm [shape: f32[1024,128], index: 4, kind: output, shape index: {0}]   ;;  %s7885_s5 = inlined_call_operand.hbm [shape: f32[16,128], index: 5, kind: output, shape index: {1}]  }
   0x1   :  { %13 = vsyncpa [#allocation3 + $0x1], 0 }
   0x2   :  { %14 = vsyncpa [#allocation5], 0 }
   0x3   :  { %16 = vsyncpa [#allocation5 + $0x1], 0  ;;  %s4288_s18 = smov 0   ;;  %s4290_s19 = smov 0  }
   0x4   :  { %s4292_s20 = smov 0   ;;  %s4294_s21 = smov 0  }
   0x5   :  { %s4296_s22 = smov 0   ;;  %s4298_s23 = smov 0  }
   0x6   :  { %s4300_s24 = smov 0   ;;  %s4302_s25 = smov 0  }
   0x7   :  { %s4304_s26 = smov 0   ;;  %s4306_s27 = smov 0  }
   0x8   :  { %s4308_s28 = smov 0  }
   0x9 LB: > { %7963 = sst [smem:[#allocation8_spill]] %s4216_s20  ;;  %s3467_s29 = sadd.s32 4294967295, %s4248_s28   ;;  %s4248_s28 = sphi %s4308_s28, %s22_s28   ;;  %s4244_s27 = sphi %s4306_s27, %s8558_s27   ;;  %s4240_s26 = sphi %s4304_s26, %s8557_s26   ;;  %s4236_s25 = sphi %s4302_s25, %s8556_s25   ;;  %s4232_s24 = sphi %s4300_s24, %s8555_s24   ;;  %s4228_s23 = sphi %s4298_s23, %s8554_s23   ;;  %s4224_s22 = sphi %s4296_s22, %s8562_s22   ;;  %s4220_s21 = sphi %s4294_s21, %s8561_s21   ;;  %s4216_s20 = sphi %s4292_s20, %s8552_s20   ;;  %s4212_s19 = sphi %s4290_s19, %s8560_s19   ;;  %s4208_s18 = sphi %s4288_s18, %s8559_s18  }
   0xa   : > { %7964 = sst [smem:[#allocation9_spill]] %s4220_s21  ;;  %s3468_s30 = sadd.s32 4294967294, %s4248_s28  }
   0xb   : > { %7965 = sst [smem:[#allocation10_spill]] %s4228_s23  ;;  %s31_s6 = sadd.s32 1, %s4240_s26 }
   0xc   : > { %7966 = sst [smem:[#allocation11_spill]] %s4240_s26  ;;  %s34_s7 = sadd.s32 1, %s4244_s27 }
   0xd   : > { %7967 = sst [smem:[#allocation12_spill]] %s4244_s27  ;;  %p32_p0 = scmp.ge.s32.totalorder %s31_s6, 2 }
   0xe   : > { %s3475_s8 = sshll.u32 %s4244_s27, 1  ;;  %s156_s10 = sadd.s32 1, %s4228_s23 }
   0xf   : > { %s150_s9 = sadd.s32 %s4240_s26, %s3475_s8  ;;  %s8564_s6 = smov (%p32_p0, %s31_s6), 0 }
  0x10   : > { %7968 = sst [smem:[#allocation13_spill]] %s8564_s6  ;;  %s8566_s7 = smov (!%p32_p0, %s34_s7), %s4244_s27 }
  0x11   : > { %p166_p1 = scmp.ne.s32.totalorder %s4228_s23, %s4224_s22  ;;  %p4355_p2 = scmp.eq.s32.totalorder %s3467_s29, 3 }
  0x12   : > { %p36_p3 = scmp.ge.s32.totalorder %s8566_s7, 2  ;;  %p172_p4 = scmp.ne.s32.totalorder %s4224_s22, %s4220_s21 }
  0x13   : > { %p4363_p5 = por %p4355_p2, %p166_p1  ;;  %p4367_p6 = scmp.eq.s32.totalorder %s3468_s30, 3 }
  0x14   : > { %s8568_s7 = smov (%p36_p3, %s8566_s7), 0  ;;  %s182_s15 = sadd.s32 1, %s4216_s20 }
  0x15   : > { %7972 = sst [smem:[#allocation14_spill]] %s8568_s7  ;;  %p4375_p7 = por %p4367_p6, %p172_p4 }
  0x16   : > { %s3476_s16 = sshll.u32 %s8568_s7, 1  ;;  %s179_s17 = ssub.s32 %s4244_s27, %s8568_s7 }
  0x17   : > { %s7973_s14 = scalar_select %p4375_p7, 1, 0 }
  0x18   : > { %s152_s29 = sadd.s32 %s3476_s16, %s8564_s6  ;;  %p180_p8 = scmp.eq.s32.totalorder %s179_s17, 0 }
  0x19   : > { %7974 = sst [smem:[#allocation15_spill]] %s7973_s14  ;;  %s153_s30 = ssub.s32 %s150_s9, %s152_s29 }
  0x1a   : > { %p192_p9 = scmp.ne.s32.totalorder %s4216_s20, %s4212_s19  ;;  %p154_p10 = scmp.eq.s32.totalorder %s153_s30, 0 }
  0x1b   : > { %p198_p11 = scmp.ne.s32.totalorder %s4212_s19, %s4208_s18  ;;  %p3479_p0 = scmp.ge.s32.totalorder %s4248_s28, 1 }
  0x1c   : > { %s4389_s8 = scalar_select %p180_p8, %s4216_s20, %s182_s15  }
  0x1d   : > { %s4392_s26 = scalar_select %p154_p10, %s4228_s23, %s156_s10  }
  0x1e   : > { %7975 = sst [smem:[#allocation16_spill]] %s4389_s8  ;;  %p4396_p12 = por %p192_p9, %p4355_p2 }
  0x1f   : > { %7976 = sst [smem:[#allocation17_spill]] %s4392_s26  ;;  %p4402_p13 = por %p198_p11, %p4367_p6 }
  0x20   : > { %p259_p1 = scmp.lt.s32.totalorder %s4248_s28, 5 }
  0x21   : > { %s7978_s14 = scalar_select %p4402_p13, 1, 0 }
  0x22   : > { %p260_p3 = pnand %p3479_p0, %p259_p1 }
  0x23   : > { %7979 = sst [smem:[#allocation18_spill]] %s7978_s14 }
  0x24   : > { %263 = sbr.rel (%p260_p3) target bundleno = 1174 (0x496), region = 36 }
  0x29   : > { %s7893_s9 = sand.u32 1, %s4224_s22   ;;  %s7894_s10 = sand.u32 1, %s4212_s19  }
  0x2a   : > { %s3480_s11 = sshll.u32 %s7893_s9, 8  ;;  %s3481_s13 = sshll.u32 %s7894_s10, 3 }
  0x2b   : > { %s3482_s15 = sshll.u32 %s4236_s25, 1  ;;  %s4434_s20 = scalar_lea.vmem [#allocation2], %s3480_s11 }
  0x2c   : > { %s4416_s16 = sadd.s32 %s4232_s24, %s3482_s15  ;;  %s4436_s14 = scalar_lea.vmem [#allocation4], %s3481_s13 }
  0x2d   : > { %s3483_s17 = sshll.u32 %s4416_s16, 5  ;;  %p3491_p4 = scmp.ne.s32.totalorder %s4232_s24, 0 }
  0x2e   : > { %p311_p2 = scmp.lt.s32.totalorder %s3483_s17, 127 }
  0x2f   : > { %344 = sbr.rel (%p3491_p4) target bundleno = 54 (0x36), region = 40 }
  0x30   : > { %s8570_s17 = smov (!%p311_p2, %s3483_s17), 127 }
  0x31   : > { %s3484_s29 = sshll.u32 %s8570_s17, 3  ;;  %s3490_s30 = sshll.u32 %s8570_s17, 2 }
  0x32   : > { %s4422_s27 = scalar_lea.vmem %s7880_s0, %s3484_s29  ;;  %s4427_s9 = scalar_lea.vmem %s7881_s1, %s3484_s29 }
  0x33   : > { %s4432_s15 = scalar_lea.vmem %s7883_s3, %s3490_s30 }
  0x34   : > { %v4250_v0 = vmov 0.0  }
  0x35   : > { %345 = vst [vmem:[%s4436_s14] sm:$0xff] %v4250_v0 }
  0x36 PF: > { %v353_v1 = vld [vmem:[%s4422_s27 + $0x20] sm:$0xff]  ;;  %v351_v2 = vld [vmem:[%s4422_s27 + $0x10] sm:$0xff]  ;;  %v350_v3 = vld [vmem:[%s4422_s27 + $0x8] sm:$0xff]  ;;  %v7897_v4 = vmov 0   ;;  %v7899_v8 = vmov 1   ;;  %s3685_s8 = sshll.u32 %s4416_s16, 8 }
  0x37   : > { %3947 = vset.pattern.permute.xlu2 %v7897_v4  ;;  %3946 = vset.pattern.permute.xlu1 %v7897_v4  ;;  %vm389_vm0 = vcmp.gt.s32.totalorder %v353_v1, 0  ;;  %vm385_vm1 = vcmp.gt.s32.totalorder %v351_v2, 0  ;;  %vm383_vm2 = vcmp.gt.s32.totalorder %v350_v3, 0  ;;  %v354_v5 = vld [vmem:[%s4422_s27 + $0x28] sm:$0xff]  ;;  %v352_v10 = vld [vmem:[%s4422_s27 + $0x18] sm:$0xff]  ;;  %v355_v11 = vld [vmem:[%s4422_s27 + $0x30] sm:$0xff]  ;;  %s3317_s13 = scalar_lea.hbm %s7884_s4, %s3685_s8 }
  0x38   : > { %v4446_v6 = vsel %vm389_vm0, %v353_v1, 0  ;;  %v4448_v7 = vsel %vm385_vm1, %v351_v2, 0  ;;  %3949 = vset.pattern.permute.xlu0 %v7899_v8  ;;  %v4451_v9 = vsel %vm383_vm2, %v350_v3, 0  ;;  %vm391_vm3 = vcmp.gt.s32.totalorder %v354_v5, 0  ;;  %v357_v19 = vld [vmem:[%s4422_s27 + $0x40] sm:$0xff]  ;;  %v356_v20 = vld [vmem:[%s4422_s27 + $0x38] sm:$0xff] }
  0x39   : > { %vm453_vm4 = vcmp.lt.s32.totalorder %v4446_v6, 63  ;;  %vm449_vm5 = vcmp.lt.s32.totalorder %v4448_v7, 63  ;;  %vm671_vm6 = vcmp.lt.s32.totalorder %v4451_v9, 15  ;;  %v4461_v15 = vsel %vm391_vm3, %v354_v5, 0  ;;  %v358_v21 = vld [vmem:[%s4422_s27 + $0x48] sm:$0xff]  ;;  %v361_v29 = vld [vmem:[%s4422_s27 + $0x60] sm:$0xff] }
  0x3a   : > { %v454_v12 = vsel %vm453_vm4, %v4446_v6, 63  ;;  %v450_v13 = vsel %vm449_vm5, %v4448_v7, 63  ;;  %v672_v14 = vsel %vm671_vm6, %v4451_v9, 15  ;;  %vm387_vm7 = vcmp.gt.s32.totalorder %v352_v10, 0  ;;  %v360_v30 = vld [vmem:[%s4422_s27 + $0x58] sm:$0xff]  ;;  %v359_v31 = vld [vmem:[%s4422_s27 + $0x50] sm:$0xff] }
  0x3b   : > { %522 = vperm.xlu2 %3947, %v454_v12   ;;  %516 = vperm.xlu1 %3946, %v450_v13   ;;  %v734_v16 = vadd.s32 64, %v672_v14  ;;  %vm393_vm8 = vcmp.gt.s32.totalorder %v355_v11, 0  ;;  %v4463_v17 = vsel %vm387_vm7, %v352_v10, 0  ;;  %vm455_vm9 = vcmp.lt.s32.totalorder %v4461_v15, 63  ;;  %v364_v39 = vld [vmem:[%s4422_s27 + $0x78] sm:$0xff]  ;;  %v363_v40 = vld [vmem:[%s4422_s27 + $0x70] sm:$0xff] }
  0x3c   : > { %v4465_v18 = vsel %vm393_vm8, %v355_v11, 0  ;;  %vm451_vm10 = vcmp.lt.s32.totalorder %v4463_v17, 63  ;;  %vm397_vm12 = vcmp.gt.s32.totalorder %v357_v19, 0  ;;  %vm395_vm13 = vcmp.gt.s32.totalorder %v356_v20, 0  ;;  %v362_v41 = vld [vmem:[%s4422_s27 + $0x68] sm:$0xff]  ;;  %v367_v49 = vld [vmem:[%s4422_s27 + $0x90] sm:$0xff] }
  0x3d   : > { %769 = vperm.xlu0 %3949, %v734_v16   ;;  %vm681_vm11 = vcmp.lt.s32.totalorder %v4465_v18, 15  ;;  %vm399_vm14 = vcmp.gt.s32.totalorder %v358_v21, 0  ;;  %v456_v23 = vsel %vm455_vm9, %v4461_v15, 63  ;;  %v452_v24 = vsel %vm451_vm10, %v4463_v17, 63  ;;  %v366_v50 = vld [vmem:[%s4422_s27 + $0x88] sm:$0xff]  ;;  %v365_v51 = vld [vmem:[%s4422_s27 + $0x80] sm:$0xff] }
  0x3e   : > { %v682_v22 = vsel %vm681_vm11, %v4465_v18, 15  ;;  %v4476_v25 = vsel %vm399_vm14, %v358_v21, 0  ;;  %v4478_v27 = vsel %vm397_vm12, %v357_v19, 0  ;;  %v4480_v28 = vsel %vm395_vm13, %v356_v20, 0  ;;  %v370_v59 = vld [vmem:[%s4422_s27 + $0xa8] sm:$0xff]  ;;  %v369_v60 = vld [vmem:[%s4422_s27 + $0xa0] sm:$0xff] }
  0x3f   : > { %v739_v26 = vadd.s32 64, %v682_v22  ;;  %vm687_vm15 = vcmp.lt.s32.totalorder %v4476_v25, 15  ;;  %vm461_vm0 = vcmp.lt.s32.totalorder %v4478_v27, 63  ;;  %vm459_vm1 = vcmp.lt.s32.totalorder %v4480_v28, 63  ;;  %v368_v61 = vld [vmem:[%s4422_s27 + $0x98] sm:$0xff]  ;;  %v373_v10 = vld [vmem:[%s4422_s27 + $0xc0] sm:$0xff] }
  0x40   : > { %vm405_vm2 = vcmp.gt.s32.totalorder %v361_v29, 0  ;;  %v688_v32 = vsel %vm687_vm15, %v4476_v25, 15  ;;  %vm403_vm3 = vcmp.gt.s32.totalorder %v360_v30, 0  ;;  %vm401_vm4 = vcmp.gt.s32.totalorder %v359_v31, 0  ;;  %v372_v11 = vld [vmem:[%s4422_s27 + $0xb8] sm:$0xff]  ;;  %v371_v12 = vld [vmem:[%s4422_s27 + $0xb0] sm:$0xff] }
  0x41   : > { %v462_v33 = vsel %vm461_vm0, %v4478_v27, 63  ;;  %v460_v34 = vsel %vm459_vm1, %v4480_v28, 63  ;;  %v4491_v35 = vsel %vm405_vm2, %v361_v29, 0  ;;  %v742_v36 = vadd.s32 64, %v688_v32  ;;  %s3318_s16 = sshll.u32 %s4434_s20, 4  ;;  %s3320_s17 = sshll.u32 %s3317_s13, 4  ;;  %s7326_s16 = int_to_ptr.vmem [resolvable:$true] %s3318_s16  ;;  %s7328_s17 = int_to_ptr.hbm [resolvable:$true] %s3320_s17 }
  0x42   : > { %v4493_v37 = vsel %vm403_vm3, %v360_v30, 0  ;;  %v4495_v38 = vsel %vm401_vm4, %v359_v31, 0  ;;  %vm693_vm5 = vcmp.lt.s32.totalorder %v4491_v35, 15  ;;  %vm411_vm8 = vcmp.gt.s32.totalorder %v364_v39, 0  ;;  %s4112_s30 = sshra.s32 %s7328_s17, 4  ;;  %s4113_s30 = int_to_ptr.hbm [resolvable:$true] %s4112_s30 }
  0x43   : > { %525 = vperm.xlu2 %3947, %v456_v23   ;;  %519 = vperm.xlu1 %3946, %v452_v24   ;;  %vm467_vm6 = vcmp.lt.s32.totalorder %v4493_v37, 63  ;;  %vm465_vm7 = vcmp.lt.s32.totalorder %v4495_v38, 63  ;;  %v694_v42 = vsel %vm693_vm5, %v4491_v35, 15  ;;  %vm409_vm9 = vcmp.gt.s32.totalorder %v363_v40, 0  ;;  %v376_v23 = vld [vmem:[%s4422_s27 + $0xd8] sm:$0xff]  ;;  %v375_v24 = vld [vmem:[%s4422_s27 + $0xd0] sm:$0xff]  ;;  %p4119_p10 = scmp.lt.s32.totalorder %s4113_s30, %s7884_s4 }
  0x44   : > { %vm407_vm10 = vcmp.gt.s32.totalorder %v362_v41, 0  ;;  %v468_v43 = vsel %vm467_vm6, %v4493_v37, 63  ;;  %v466_v44 = vsel %vm465_vm7, %v4495_v38, 63  ;;  %v4506_v45 = vsel %vm411_vm8, %v364_v39, 0  ;;  %v379_v39 = vld [vmem:[%s4422_s27 + $0xf0] sm:$0xff]  ;;  %s4114_s23 = scalar_lea.hbm %s4113_s30, 256 }
  0x45   : > { %784 = vperm.xlu0 %3949, %v739_v26   ;;  %v745_v46 = vadd.s32 64, %v694_v42  ;;  %v4508_v47 = vsel %vm409_vm9, %v363_v40, 0  ;;  %v4510_v48 = vsel %vm407_vm10, %v362_v41, 0  ;;  %vm699_vm11 = vcmp.lt.s32.totalorder %v4506_v45, 15  ;;  %v374_v26 = vld [vmem:[%s4422_s27 + $0xc8] sm:$0xff]  ;;  %v377_v41 = vld [vmem:[%s4422_s27 + $0xe0] sm:$0xff]  ;;  %p4115_p6 = scmp.ne.s32.totalorder %s4113_s30, %s4114_s23 }
  0x46   : > { %vm473_vm12 = vcmp.lt.s32.totalorder %v4508_v47, 63  ;;  %vm471_vm13 = vcmp.lt.s32.totalorder %v4510_v48, 63  ;;  %vm417_vm14 = vcmp.gt.s32.totalorder %v367_v49, 0  ;;  %v700_v52 = vsel %vm699_vm11, %v4506_v45, 15  ;;  %v378_v40 = vld [vmem:[%s4422_s27 + $0xe8] sm:$0xff] }
  0x47   : > { %vm415_vm15 = vcmp.gt.s32.totalorder %v366_v50, 0  ;;  %vm413_vm0 = vcmp.gt.s32.totalorder %v365_v51, 0  ;;  %v474_v53 = vsel %vm473_vm12, %v4508_v47, 63  ;;  %v472_v54 = vsel %vm471_vm13, %v4510_v48, 63  ;;  %p4116_p8 = pnand %p4115_p6, %p4363_p5 }
  0x48   : > { %v4521_v55 = vsel %vm417_vm14, %v367_v49, 0  ;;  %v748_v56 = vadd.s32 64, %v700_v52  ;;  %v4523_v57 = vsel %vm415_vm15, %v366_v50, 0  ;;  %v4525_v58 = vsel %vm413_vm0, %v365_v51, 0  ;;  %v349_v50 = vld [vmem:[%s4422_s27] sm:$0xff] }
  0x49   : > { %vm705_vm1 = vcmp.lt.s32.totalorder %v4521_v55, 15  ;;  %vm479_vm2 = vcmp.lt.s32.totalorder %v4523_v57, 63  ;;  %vm477_vm3 = vcmp.lt.s32.totalorder %v4525_v58, 63  ;;  %vm423_vm4 = vcmp.gt.s32.totalorder %v370_v59, 0  ;;  %p4117_p9 = pneg %p4116_p8 }
  0x4a   : > { %v706_v62 = vsel %vm705_vm1, %v4521_v55, 15  ;;  %vm421_vm5 = vcmp.gt.s32.totalorder %v369_v60, 0  ;;  %vm419_vm6 = vcmp.gt.s32.totalorder %v368_v61, 0  ;;  %v480_v63 = vsel %vm479_vm2, %v4523_v57, 63 }
  0x4b   : > { %534 = vperm.xlu2 %3947, %v462_v33   ;;  %531 = vperm.xlu1 %3946, %v460_v34   ;;  %v478_v0 = vsel %vm477_vm3, %v4525_v58, 63  ;;  %v4536_v1 = vsel %vm423_vm4, %v370_v59, 0  ;;  %v751_v2 = vadd.s32 64, %v706_v62  ;;  %v4538_v3 = vsel %vm421_vm5, %v369_v60, 0 }
  0x4c   : > { %v4540_v5 = vsel %vm419_vm6, %v368_v61, 0  ;;  %vm711_vm7 = vcmp.lt.s32.totalorder %v4536_v1, 15  ;;  %vm485_vm8 = vcmp.lt.s32.totalorder %v4538_v3, 63  ;;  %vm429_vm10 = vcmp.gt.s32.totalorder %v373_v10, 0 }
  0x4d   : > { %793 = vperm.xlu0 %3949, %v742_v36   ;;  %vm483_vm9 = vcmp.lt.s32.totalorder %v4540_v5, 63  ;;  %v712_v13 = vsel %vm711_vm7, %v4536_v1, 15  ;;  %vm427_vm11 = vcmp.gt.s32.totalorder %v372_v11, 0  ;;  %vm425_vm12 = vcmp.gt.s32.totalorder %v371_v12, 0 }
  0x4e   : > { %v486_v14 = vsel %vm485_vm8, %v4538_v3, 63  ;;  %v484_v16 = vsel %vm483_vm9, %v4540_v5, 63  ;;  %v4551_v19 = vsel %vm429_vm10, %v373_v10, 0  ;;  %v754_v20 = vadd.s32 64, %v712_v13 }
  0x4f   : > { %v4553_v21 = vsel %vm427_vm11, %v372_v11, 0  ;;  %v4555_v22 = vsel %vm425_vm12, %v371_v12, 0  ;;  %vm717_vm13 = vcmp.lt.s32.totalorder %v4551_v19, 15  ;;  %vm435_vm0 = vcmp.gt.s32.totalorder %v376_v23, 0 }
  0x50   : > { %vm491_vm14 = vcmp.lt.s32.totalorder %v4553_v21, 63  ;;  %vm489_vm15 = vcmp.lt.s32.totalorder %v4555_v22, 63  ;;  %v718_v29 = vsel %vm717_vm13, %v4551_v19, 15  ;;  %vm433_vm1 = vcmp.gt.s32.totalorder %v375_v24, 0 }
  0x51   : > { %vm431_vm2 = vcmp.gt.s32.totalorder %v374_v26, 0  ;;  %v492_v30 = vsel %vm491_vm14, %v4553_v21, 63  ;;  %v490_v31 = vsel %vm489_vm15, %v4555_v22, 63  ;;  %v4566_v32 = vsel %vm435_vm0, %v376_v23, 0 }
  0x52   : > { %v757_v33 = vadd.s32 64, %v718_v29  ;;  %v4568_v34 = vsel %vm433_vm1, %v375_v24, 0  ;;  %v4570_v36 = vsel %vm431_vm2, %v374_v26, 0  ;;  %vm723_vm3 = vcmp.lt.s32.totalorder %v4566_v32, 15 }
  0x53   : > { %543 = vperm.xlu2 %3947, %v468_v43   ;;  %540 = vperm.xlu1 %3946, %v466_v44   ;;  %vm497_vm4 = vcmp.lt.s32.totalorder %v4568_v34, 63  ;;  %vm495_vm5 = vcmp.lt.s32.totalorder %v4570_v36, 63  ;;  %vm441_vm6 = vcmp.gt.s32.totalorder %v379_v39, 0  ;;  %v724_v42 = vsel %vm723_vm3, %v4566_v32, 15 }
  0x54   : > { %vm439_vm7 = vcmp.gt.s32.totalorder %v378_v40, 0  ;;  %vm437_vm8 = vcmp.gt.s32.totalorder %v377_v41, 0  ;;  %v498_v43 = vsel %vm497_vm4, %v4568_v34, 63  ;;  %v496_v44 = vsel %vm495_vm5, %v4570_v36, 63 }
  0x55   : > { %802 = vperm.xlu0 %3949, %v745_v46   ;;  %v4581_v46 = vsel %vm441_vm6, %v379_v39, 0  ;;  %v760_v49 = vadd.s32 64, %v724_v42  ;;  %v4584_v51 = vsel %vm439_vm7, %v378_v40, 0  ;;  %v4586_v52 = vsel %vm437_vm8, %v377_v41, 0 }
  0x56   : > { %vm729_vm9 = vcmp.lt.s32.totalorder %v4581_v46, 15  ;;  %vm381_vm10 = vcmp.gt.s32.totalorder %v349_v50, 0  ;;  %vm503_vm11 = vcmp.lt.s32.totalorder %v4584_v51, 63  ;;  %vm501_vm12 = vcmp.lt.s32.totalorder %v4586_v52, 63 }
  0x57   : > { %v4594_v59 = vsel %vm381_vm10, %v349_v50, 0  ;;  %v504_v60 = vsel %vm503_vm11, %v4584_v51, 63  ;;  %v502_v61 = vsel %vm501_vm12, %v4586_v52, 63  ;;  %vm673_vm3 = vcmp.lt.s32.totalorder %v4448_v7, 15 }
  0x58   : > { %vm669_vm15 = vcmp.lt.s32.totalorder %v4594_v59, 15  ;;  %vm675_vm4 = vcmp.lt.s32.totalorder %v4463_v17, 15  ;;  %v674_v23 = vsel %vm673_vm3, %v4448_v7, 15  ;;  %vm677_vm7 = vcmp.lt.s32.totalorder %v4446_v6, 15 }
  0x59   : > { %v670_v10 = vsel %vm669_vm15, %v4594_v59, 15  ;;  %v676_v24 = vsel %vm675_vm4, %v4463_v17, 15  ;;  %v735_v29 = vadd.s32 64, %v674_v23  ;;  %vm679_vm8 = vcmp.lt.s32.totalorder %v4461_v15, 15 }
  0x5a   : > { %v733_v13 = vadd.s32 64, %v670_v10  ;;  %v678_v17 = vsel %vm677_vm7, %v4446_v6, 15  ;;  %v680_v39 = vsel %vm679_vm8, %v4461_v15, 15  ;;  %vm683_vm10 = vcmp.lt.s32.totalorder %v4480_v28, 15 }
  0x5b   : > { %552 = vperm.xlu2 %3947, %v474_v53   ;;  %549 = vperm.xlu1 %3946, %v472_v54   ;;  %v990_v53 = vld [vmem:[%s4427_s9 + $0x8] sm:$0xff]  ;;  %v380_v54 = vld [vmem:[%s4422_s27 + $0xf8] sm:$0xff]  ;;  %v737_v41 = vadd.s32 64, %v678_v17  ;;  %v738_v42 = vadd.s32 64, %v680_v39  ;;  %vm685_vm11 = vcmp.lt.s32.totalorder %v4478_v27, 15  ;;  %vm445_vm12 = vcmp.lt.s32.totalorder %v4594_v59, 63 }
  0x5c   : > { %vm1023_vm13 = vcmp.gt.s32.totalorder %v990_v53, 0  ;;  %vm443_vm14 = vcmp.gt.s32.totalorder %v380_v54, 0  ;;  %v686_v6 = vsel %vm685_vm11, %v4478_v27, 15  ;;  %vm447_vm15 = vcmp.lt.s32.totalorder %v4451_v9, 63  ;;  %s4118_s27 = scalar_lea.hbm %s7884_s4, 1024 }
  0x5d   : > { %811 = vperm.xlu0 %3949, %v748_v56   ;;  %v730_v56 = vsel %vm729_vm9, %v4581_v46, 15  ;;  %v4598_v62 = vsel %vm1023_vm13, %v990_v53, 0  ;;  %v741_v15 = vadd.s32 64, %v686_v6  ;;  %vm689_vm13 = vcmp.lt.s32.totalorder %v4495_v38, 15  ;;  %p4120_p11 = scmp.lt.s32.totalorder %s4118_s27, %s4114_s23 }
  0x5e   : > { %vm1407_vm0 = vcmp.lt.s32.totalorder %v4598_v62, 15  ;;  %v446_v53 = vsel %vm445_vm12, %v4594_v59, 63  ;;  %v448_v59 = vsel %vm447_vm15, %v4451_v9, 63  ;;  %vm701_vm3 = vcmp.lt.s32.totalorder %v4525_v58, 15 }
  0x5f   : > { %v1408_v11 = vsel %vm1407_vm0, %v4598_v62, 15  ;;  %vm695_vm0 = vcmp.lt.s32.totalorder %v4510_v48, 15  ;;  %vm703_vm4 = vcmp.lt.s32.totalorder %v4523_v57, 15  ;;  %vm709_vm7 = vcmp.lt.s32.totalorder %v4538_v3, 15  ;;  %p4121_p0 = por %p4120_p11, %p4119_p10 }
  0x60   : > { %vm469_vm8 = vcmp.lt.s32.totalorder %v4491_v35, 63  ;;  %vm475_vm11 = vcmp.lt.s32.totalorder %v4506_v45, 63  ;;  %vm719_vm12 = vcmp.lt.s32.totalorder %v4570_v36, 15  ;;  %vm725_vm15 = vcmp.lt.s32.totalorder %v4586_v52, 15 }
  0x61   : > { %p4122_p1 = pnand %p4121_p0, %p4117_p9 }
  0x63   : > { %561 = vperm.xlu2 %3947, %v480_v63   ;;  %558 = vperm.xlu1 %3946, %v478_v0   ;;  %v763_v63 = vadd.s32 64, %v730_v56  ;;  %v4600_v0 = vsel %vm443_vm14, %v380_v54, 0  ;;  %vm691_vm14 = vcmp.lt.s32.totalorder %v4493_v37, 15 }
  0x64   : > { %vm507_vm1 = vcmp.lt.s32.totalorder %v4600_v0, 63  ;;  %v692_v27 = vsel %vm691_vm14, %v4493_v37, 15  ;;  %vm481_vm14 = vcmp.lt.s32.totalorder %v4521_v55, 63 }
  0x65   : > { %820 = vperm.xlu0 %3949, %v751_v2   ;;  %v993_v2 = vld [vmem:[%s4427_s9 + $0x20] sm:$0xff]  ;;  %v508_v12 = vsel %vm507_vm1, %v4600_v0, 63  ;;  %vm697_vm1 = vcmp.lt.s32.totalorder %v4508_v47, 15 }
  0x66   : > { %vm1029_vm2 = vcmp.gt.s32.totalorder %v993_v2, 0  ;;  %v698_v37 = vsel %vm697_vm1, %v4508_v47, 15  ;;  %v702_v47 = vsel %vm701_vm3, %v4525_v58, 15  ;;  %vm731_vm3 = vcmp.lt.s32.totalorder %v4600_v0, 15 }
  0x6b   : > { %570 = vperm.xlu2 %3947, %v486_v14   ;;  %567 = vperm.xlu1 %3946, %v484_v16   ;;  %v4609_v14 = vsel %vm1029_vm2, %v993_v2, 0  ;;  %v1470_v16 = vadd.s32 144, %v1408_v11  ;;  %v747_v11 = vadd.s32 64, %v698_v37  ;;  %vm457_vm2 = vcmp.lt.s32.totalorder %v4465_v18, 63  ;;  %v992_v37 = vld [vmem:[%s4427_s9 + $0x18] sm:$0xff] }
  0x6c   : > { %vm1413_vm5 = vcmp.lt.s32.totalorder %v4609_v14, 15  ;;  %v458_v9 = vsel %vm457_vm2, %v4465_v18, 63  ;;  %vm487_vm2 = vcmp.lt.s32.totalorder %v4536_v1, 63 }
  0x6d   : > { %829 = vperm.xlu0 %3949, %v754_v20   ;;  %v1008_v20 = vld [vmem:[%s4427_s9 + $0x98] sm:$0xff]  ;;  %v1414_v26 = vsel %vm1413_vm5, %v4609_v14, 15  ;;  %vm463_vm5 = vcmp.lt.s32.totalorder %v4476_v25, 63 }
  0x6e   : > { %vm1059_vm6 = vcmp.gt.s32.totalorder %v1008_v20, 0  ;;  %v464_v18 = vsel %vm463_vm5, %v4476_v25, 63  ;;  %v470_v25 = vsel %vm469_vm8, %v4491_v35, 63  ;;  %v476_v35 = vsel %vm475_vm11, %v4506_v45, 63  ;;  %v989_v45 = vld [vmem:[%s4427_s9] sm:$0xff] }
  0x6f   : > { %vm1021_vm1 = vcmp.gt.s32.totalorder %v989_v45, 0  ;;  %vm499_vm11 = vcmp.lt.s32.totalorder %v4566_v32, 63 }
  0x73   : > { %579 = vperm.xlu2 %3947, %v492_v30   ;;  %576 = vperm.xlu1 %3946, %v490_v31   ;;  %v736_v30 = vadd.s32 64, %v676_v24  ;;  %v4619_v31 = vsel %vm1059_vm6, %v1008_v20, 0  ;;  %v749_v20 = vadd.s32 64, %v702_v47  ;;  %vm707_vm6 = vcmp.lt.s32.totalorder %v4540_v5, 15 }
  0x74   : > { %vm1443_vm9 = vcmp.lt.s32.totalorder %v4619_v31, 15 }
  0x75   : > { %838 = vperm.xlu0 %3949, %v757_v33   ;;  %v1473_v33 = vadd.s32 144, %v1414_v26  ;;  %v1444_v40 = vsel %vm1443_vm9, %v4619_v31, 15  ;;  %v710_v26 = vsel %vm709_vm7, %v4538_v3, 15  ;;  %vm713_vm9 = vcmp.lt.s32.totalorder %v4555_v22, 15 }
  0x76   : > { %v714_v3 = vsel %vm713_vm9, %v4555_v22, 15  ;;  %vm493_vm7 = vcmp.lt.s32.totalorder %v4551_v19, 63 }
  0x7b   : > { %588 = vperm.xlu2 %3947, %v498_v43   ;;  %585 = vperm.xlu1 %3946, %v496_v44   ;;  %v1488_v43 = vadd.s32 144, %v1444_v40 }
  0x7d   : > { %847 = vperm.xlu0 %3949, %v760_v49   ;;  %v684_v49 = vsel %vm683_vm10, %v4480_v28, 15  ;;  %v690_v28 = vsel %vm689_vm13, %v4495_v38, 15  ;;  %v696_v38 = vsel %vm695_vm0, %v4510_v48, 15  ;;  %vm715_vm10 = vcmp.lt.s32.totalorder %v4553_v21, 15 }
  0x7e   : > { %v740_v50 = vadd.s32 64, %v684_v49  ;;  %v743_v56 = vadd.s32 64, %v690_v28  ;;  %v746_v10 = vadd.s32 64, %v696_v38  ;;  %v716_v39 = vsel %vm715_vm10, %v4553_v21, 15  ;;  %v991_v38 = vld [vmem:[%s4427_s9 + $0x10] sm:$0xff] }
  0x7f   : > { %vm721_vm13 = vcmp.lt.s32.totalorder %v4568_v34, 15  ;;  %v720_v21 = vsel %vm719_vm12, %v4570_v36, 15  ;;  %vm727_vm0 = vcmp.lt.s32.totalorder %v4584_v51, 15  ;;  %v726_v28 = vsel %vm725_vm15, %v4586_v52, 15 }
  0x80   : > { %v722_v49 = vsel %vm721_vm13, %v4568_v34, 15  ;;  %vm1025_vm5 = vcmp.gt.s32.totalorder %v991_v38, 0  ;;  %vm1093_vm12 = vcmp.lt.s32.totalorder %v4609_v14, 63 }
  0x83   : > { %597 = vperm.xlu2 %3947, %v504_v60   ;;  %594 = vperm.xlu1 %3946, %v502_v61   ;;  %v744_v60 = vadd.s32 64, %v692_v27  ;;  %v728_v27 = vsel %vm727_vm0, %v4584_v51, 15  ;;  %vm505_vm0 = vcmp.lt.s32.totalorder %v4581_v46, 63 }
  0x85   : > { %856 = vperm.xlu0 %3949, %v763_v63  }
  0x8b   : > { %3948 = vset.pattern.permute.xlu2 %v7899_v8  ;;  %603 = vperm.xlu1 %3946, %v508_v12  }
  0x8c   : > { %766 = vperm.xlu2 %3948, %v733_v13   ;;  %v704_v13 = vsel %vm703_vm4, %v4523_v57, 15  ;;  %v708_v57 = vsel %vm707_vm6, %v4540_v5, 15  ;;  %vm1027_vm6 = vcmp.gt.s32.totalorder %v992_v37, 0 }
  0x8d   : > { %1505 = vperm.xlu0 %3949, %v1470_v16   ;;  %v750_v23 = vadd.s32 64, %v704_v13 }
  0x93   : > { %3950 = vset.pattern.permute.xlu1 %v7899_v8 }
  0x94   : > { %772 = vperm.xlu1 %3950, %v735_v29   ;;  %775 = vperm.xlu2 %3948, %v736_v30   ;;  %v752_v30 = vadd.s32 64, %v708_v57  ;;  %v494_v57 = vsel %vm493_vm7, %v4551_v19, 63 }
  0x95   : > { %v4625_v7 = vpop.permute.xlu2 %522  ;;  %1514 = vperm.xlu0 %3949, %v1473_v33   ;;  %v753_v33 = vadd.s32 64, %v710_v26 }
  0x9c   : > { %778 = vperm.xlu1 %3950, %v737_v41   ;;  %781 = vperm.xlu2 %3948, %v738_v42   ;;  %v755_v41 = vadd.s32 64, %v714_v3  ;;  %v756_v42 = vadd.s32 64, %v716_v39 }
  0x9d   : > { %v4632_v44 = vpop.permute.xlu2 %525  ;;  %1559 = vperm.xlu0 %3949, %v1488_v43  }
  0xa4   : > { %787 = vperm.xlu1 %3950, %v740_v50   ;;  %790 = vperm.xlu2 %3948, %v741_v15   ;;  %v758_v50 = vadd.s32 64, %v720_v21  ;;  %v759_v15 = vadd.s32 64, %v722_v49 }
  0xa5   : > { %v4640_v54 = vpop.permute.xlu2 %534  ;;  %3955 = vset.pattern.permute.xlu0 %v7897_v4 }
  0xa6   : > { %7980 = vst [vmem:[#allocation19_spill] sm:$0xff] %v4640_v54  ;;  %510 = vperm.xlu0 %3955, %v446_v53   ;;  %v482_v53 = vsel %vm481_vm14, %v4521_v55, 63  ;;  %v4719_v55 = vsel %vm1021_vm1, %v989_v45, 0 }
  0xa7   : > { %vm1085_vm4 = vcmp.lt.s32.totalorder %v4719_v55, 63 }
  0xac   : > { %796 = vperm.xlu1 %3950, %v743_v56   ;;  %799 = vperm.xlu2 %3948, %v744_v60   ;;  %v761_v60 = vadd.s32 64, %v726_v28 }
  0xad   : > { %v4649_v61 = vpop.permute.xlu2 %543  ;;  %v4651_v63 = vpop.permute.xlu1 %516 }
  0xae   : > { %7981 = vst [vmem:[#allocation20_spill] sm:$0xff] %v4649_v61  ;;  %513 = vperm.xlu0 %3955, %v448_v59   ;;  %v762_v59 = vadd.s32 64, %v728_v27 }
  0xaf   : > { %v4655_v2 = vpop.permute.xlu0 %769 }
  0xb4   : > { %805 = vperm.xlu1 %3950, %v746_v10   ;;  %808 = vperm.xlu2 %3948, %v747_v11   ;;  %v488_v10 = vsel %vm487_vm2, %v4536_v1, 63  ;;  %v732_v11 = vsel %vm731_vm3, %v4600_v0, 15  ;;  %v4735_v1 = vsel %vm1025_vm5, %v991_v38, 0  ;;  %v506_v38 = vsel %vm505_vm0, %v4581_v46, 63 }
  0xb5   : > { %v4661_v12 = vpop.permute.xlu2 %552  ;;  %v4663_v48 = vpop.permute.xlu1 %519  ;;  %v764_v13 = vadd.s32 64, %v732_v11  ;;  %vm1089_vm8 = vcmp.lt.s32.totalorder %v4735_v1, 63  ;;  %vm1087_vm3 = vcmp.lt.s32.totalorder %v4598_v62, 63 }
  0xb6   : > { %528 = vperm.xlu0 %3955, %v458_v9   ;;  %v1086_v9 = vsel %vm1085_vm4, %v4719_v55, 63 }
  0xb7   : > { %v4667_v16 = vpop.permute.xlu0 %784 }
  0xb8   : > { %7982 = vst [vmem:[#allocation21_spill] sm:$0xff] %v4667_v16 }
  0xbc   : > { %814 = vperm.xlu1 %3950, %v749_v20   ;;  %817 = vperm.xlu2 %3948, %v750_v23   ;;  %v4737_v20 = vsel %vm1027_vm6, %v992_v37, 0  ;;  %v1149_v23 = vadd.s32 80, %v1086_v9 }
  0xbd   : > { %v4673_v24 = vpop.permute.xlu2 %561  ;;  %v4675_v58 = vpop.permute.xlu1 %531  ;;  %vm1091_vm9 = vcmp.lt.s32.totalorder %v4737_v20, 63 }
  0xbe   : > { %537 = vperm.xlu0 %3955, %v464_v18   ;;  %v994_v18 = vld [vmem:[%s4427_s9 + $0x28] sm:$0xff]  ;;  %v1092_v19 = vsel %vm1091_vm9, %v4737_v20, 63 }
  0xbf   : > { %v4679_v29 = vpop.permute.xlu0 %793  ;;  %vm1031_vm10 = vcmp.gt.s32.totalorder %v994_v18, 0  ;;  %v1152_v39 = vadd.s32 80, %v1092_v19 }
  0xc4   : > { %823 = vperm.xlu1 %3950, %v752_v30   ;;  %826 = vperm.xlu2 %3948, %v753_v33   ;;  %v1090_v30 = vsel %vm1089_vm8, %v4735_v1, 63 }
  0xc5   : > { %v4685_v17 = vpop.permute.xlu2 %570  ;;  %v4687_v5 = vpop.permute.xlu1 %540  ;;  %v1151_v3 = vadd.s32 80, %v1090_v30 }
  0xc6   : > { %7983 = vst [vmem:[#allocation22_spill] sm:$0xff] %v4687_v5  ;;  %546 = vperm.xlu0 %3955, %v470_v25   ;;  %v4753_v25 = vsel %vm1031_vm10, %v994_v18, 0 }
  0xc7   : > { %v4691_v40 = vpop.permute.xlu0 %802  ;;  %vm1095_vm13 = vcmp.lt.s32.totalorder %v4753_v25, 63 }
  0xcc   : > { %832 = vperm.xlu1 %3950, %v755_v41   ;;  %835 = vperm.xlu2 %3948, %v756_v42   ;;  %v996_v41 = vld [vmem:[%s4427_s9 + $0x38] sm:$0xff]  ;;  %v997_v42 = vld [vmem:[%s4427_s9 + $0x40] sm:$0xff] }
  0xcd   : > { %v4697_v43 = vpop.permute.xlu2 %579  ;;  %v4699_v22 = vpop.permute.xlu1 %549  ;;  %vm1035_vm14 = vcmp.gt.s32.totalorder %v996_v41, 0  ;;  %vm1037_vm15 = vcmp.gt.s32.totalorder %v997_v42, 0 }
  0xce   : > { %7984 = vst [vmem:[#allocation23_spill] sm:$0xff] %v4697_v43  ;;  %555 = vperm.xlu0 %3955, %v476_v35   ;;  %v500_v35 = vsel %vm499_vm11, %v4566_v32, 63  ;;  %v1094_v32 = vsel %vm1093_vm12, %v4609_v14, 63  ;;  %v4770_v45 = vsel %vm1035_vm14, %v996_v41, 0  ;;  %v995_v14 = vld [vmem:[%s4427_s9 + $0x30] sm:$0xff] }
  0xcf   : > { %v4703_v6 = vpop.permute.xlu0 %811  ;;  %v1153_v28 = vadd.s32 80, %v1094_v32  ;;  %vm1099_vm1 = vcmp.lt.s32.totalorder %v4770_v45, 63  ;;  %vm1033_vm6 = vcmp.gt.s32.totalorder %v995_v14, 0  ;;  %v1003_v41 = vld [vmem:[%s4427_s9 + $0x70] sm:$0xff] }
  0xd0   : > { %v1100_v46 = vsel %vm1099_vm1, %v4770_v45, 63  ;;  %v4794_v19 = vsel %vm1033_vm6, %v995_v14, 0  ;;  %vm1049_vm11 = vcmp.gt.s32.totalorder %v1003_v41, 0 }
  0xd1   : > { %vm1097_vm9 = vcmp.lt.s32.totalorder %v4794_v19, 63 }
  0xd4   : > { %841 = vperm.xlu1 %3950, %v758_v50   ;;  %844 = vperm.xlu2 %3948, %v759_v15   ;;  %v1096_v50 = vsel %vm1095_vm13, %v4753_v25, 63 }
  0xd5   : > { %v4710_v36 = vpop.permute.xlu2 %588  ;;  %v4712_v34 = vpop.permute.xlu1 %558  ;;  %v1154_v27 = vadd.s32 80, %v1096_v50 }
  0xd6   : > { %7985 = vst [vmem:[#allocation24_spill] sm:$0xff] %v4710_v36  ;;  %564 = vperm.xlu0 %3955, %v482_v53   ;;  %v4772_v53 = vsel %vm1037_vm15, %v997_v42, 0  ;;  %v998_v42 = vld [vmem:[%s4427_s9 + $0x48] sm:$0xff] }
  0xd7   : > { %v4716_v56 = vpop.permute.xlu0 %820  ;;  %vm1101_vm2 = vcmp.lt.s32.totalorder %v4772_v53, 63  ;;  %vm1039_vm12 = vcmp.gt.s32.totalorder %v998_v42, 0 }
  0xd8   : > { %v1102_v11 = vsel %vm1101_vm2, %v4772_v53, 63 }
  0xd9   : > { %v1157_v30 = vadd.s32 80, %v1102_v11 }
  0xdc   : > { %850 = vperm.xlu1 %3950, %v761_v60   ;;  %853 = vperm.xlu2 %3948, %v762_v59   ;;  %v999_v60 = vld [vmem:[%s4427_s9 + $0x50] sm:$0xff]  ;;  %v1000_v59 = vld [vmem:[%s4427_s9 + $0x58] sm:$0xff] }
  0xdd   : > { %v4726_v51 = vpop.permute.xlu2 %597  ;;  %v4728_v52 = vpop.permute.xlu1 %567  ;;  %vm1041_vm4 = vcmp.gt.s32.totalorder %v999_v60, 0  ;;  %vm1043_vm5 = vcmp.gt.s32.totalorder %v1000_v59, 0 }
  0xde   : > { %7986 = vst [vmem:[#allocation25_spill] sm:$0xff] %v4726_v51  ;;  %573 = vperm.xlu0 %3955, %v488_v10   ;;  %v4792_v18 = vsel %vm1043_vm5, %v1000_v59, 0  ;;  %v4813_v59 = vsel %vm1049_vm11, %v1003_v41, 0 }
  0xdf   : > { %v4732_v47 = vpop.permute.xlu0 %829  ;;  %vm1107_vm8 = vcmp.lt.s32.totalorder %v4792_v18, 63  ;;  %vm1113_vm14 = vcmp.lt.s32.totalorder %v4813_v59, 63 }
  0xe0   : > { %7987 = vst [vmem:[#allocation26_spill] sm:$0xff] %v4732_v47  ;;  %v1108_v50 = vsel %vm1107_vm8, %v4792_v18, 63  ;;  %vm1123_vm8 = vcmp.lt.s32.totalorder %v4619_v31, 63 }
  0xe1   : > { %v1160_v14 = vadd.s32 80, %v1108_v50 }
  0xe4   : > { %859 = vperm.xlu1 %3950, %v764_v13   ;;  %3951 = vset.pattern.permute.xlu2 %v7897_v4  ;;  %v1088_v13 = vsel %vm1087_vm3, %v4598_v62, 63 }
  0xe5   : > { %v4744_v0 = vpop.permute.xlu1 %576  ;;  %1182 = vperm.xlu2 %3951, %v1149_v23   ;;  %v4790_v23 = vsel %vm1041_vm4, %v999_v60, 0 }
  0xe6   : > { %v4746_v26 = vpop.permute.xlu2 %766  ;;  %582 = vperm.xlu0 %3955, %v494_v57   ;;  %v1156_v57 = vadd.s32 80, %v1100_v46  ;;  %vm1105_vm7 = vcmp.lt.s32.totalorder %v4790_v23, 63  ;;  %v4815_v46 = vsel %vm1039_vm12, %v998_v42, 0  ;;  %v1114_v42 = vsel %vm1113_vm14, %v4813_v59, 63 }
  0xe7   : > { %v4750_v33 = vpop.permute.xlu0 %838  ;;  %v1106_v32 = vsel %vm1105_vm7, %v4790_v23, 63  ;;  %vm1103_vm15 = vcmp.lt.s32.totalorder %v4815_v46, 63  ;;  %vm1405_vm14 = vcmp.lt.s32.totalorder %v4719_v55, 15 }
  0xe8   : > { %7988 = vst [vmem:[#allocation27_spill] sm:$0xff] %v4750_v33  ;;  %v1104_v50 = vsel %vm1103_vm15, %v4815_v46, 63  ;;  %v1011_v33 = vld [vmem:[%s4427_s9 + $0xb0] sm:$0xff] }
  0xe9   : > { %vm1065_vm11 = vcmp.gt.s32.totalorder %v1011_v33, 0 }
  0xea   : > { %v4870_v5 = vsel %vm1065_vm11, %v1011_v33, 0 }
  0xec   : > { %3952 = vset.pattern.permute.xlu1 %v7897_v4  ;;  %v1163_v4 = vadd.s32 80, %v1114_v42 }
  0xed   : > { %1188 = vperm.xlu1 %3952, %v1151_v3   ;;  %v4761_v21 = vpop.permute.xlu1 %585  ;;  %1191 = vperm.xlu2 %3951, %v1152_v39   ;;  %v1150_v3 = vadd.s32 80, %v1088_v13  ;;  %v1002_v39 = vld [vmem:[%s4427_s9 + $0x68] sm:$0xff]  ;;  %v1005_v13 = vld [vmem:[%s4427_s9 + $0x80] sm:$0xff] }
  0xee   : > { %7989 = vst [vmem:[#allocation28_spill] sm:$0xff] %v4761_v21  ;;  %v4763_v49 = vpop.permute.xlu2 %775  ;;  %591 = vperm.xlu0 %3955, %v500_v35   ;;  %vm1047_vm10 = vcmp.gt.s32.totalorder %v1002_v39, 0  ;;  %vm1053_vm0 = vcmp.gt.s32.totalorder %v1005_v13, 0 }
  0xef   : > { %v4767_v15 = vpop.permute.xlu0 %847  ;;  %v4811_v60 = vsel %vm1047_vm10, %v1002_v39, 0 }
  0xf0   : > { %7990 = vst [vmem:[#allocation29_spill] sm:$0xff] %v4767_v15  ;;  %vm1111_vm13 = vcmp.lt.s32.totalorder %v4811_v60, 63 }
  0xf1   : > { %v1112_v41 = vsel %vm1111_vm13, %v4811_v60, 63  ;;  %vm1129_vm13 = vcmp.lt.s32.totalorder %v4870_v5, 63 }
  0xf2   : > { %v1130_v33 = vsel %vm1129_vm13, %v4870_v5, 63  ;;  %vm1419_vm13 = vcmp.lt.s32.totalorder %v4770_v45, 15 }
  0xf5   : > { %1194 = vperm.xlu1 %3952, %v1153_v28   ;;  %v4781_v37 = vpop.permute.xlu1 %594  ;;  %1197 = vperm.xlu2 %3951, %v1154_v27   ;;  %v1098_v27 = vsel %vm1097_vm9, %v4794_v19, 63 }
  0xf6   : > { %7991 = vst [vmem:[#allocation30_spill] sm:$0xff] %v4781_v37  ;;  %v4783_v10 = vpop.permute.xlu2 %781  ;;  %600 = vperm.xlu0 %3955, %v506_v38   ;;  %v1159_v38 = vadd.s32 80, %v1106_v32  ;;  %v1155_v11 = vadd.s32 80, %v1098_v27  ;;  %v4832_v27 = vsel %vm1053_vm0, %v1005_v13, 0 }
  0xf7   : > { %v4787_v9 = vpop.permute.xlu0 %856  ;;  %vm1117_vm3 = vcmp.lt.s32.totalorder %v4832_v27, 63 }
  0xf8   : > { %7992 = vst [vmem:[#allocation31_spill] sm:$0xff] %v4787_v9  ;;  %v1158_v9 = vadd.s32 80, %v1104_v50 }
  0xfd   : > { %1203 = vperm.xlu1 %3952, %v1156_v57   ;;  %v4802_v62 = vpop.permute.xlu1 %603  ;;  %1206 = vperm.xlu2 %3951, %v1157_v30   ;;  %v1006_v57 = vld [vmem:[%s4427_s9 + $0x88] sm:$0xff]  ;;  %v1001_v30 = vld [vmem:[%s4427_s9 + $0x60] sm:$0xff] }
  0xfe   : > { %7993 = vst [vmem:[#allocation32_spill] sm:$0xff] %v4802_v62  ;;  %v4804_v35 = vpop.permute.xlu2 %790  ;;  %1185 = vperm.xlu0 %3955, %v1150_v3   ;;  %vm1055_vm1 = vcmp.gt.s32.totalorder %v1006_v57, 0  ;;  %vm1045_vm2 = vcmp.gt.s32.totalorder %v1001_v30, 0  ;;  %v1009_v62 = vld [vmem:[%s4427_s9 + $0xa0] sm:$0xff] }
  0xff   : > { %7994 = vst [vmem:[#allocation33_spill] sm:$0xff] %v4804_v35  ;;  %v4808_v28 = vpop.permute.xlu0 %1505  ;;  %v4836_v8 = vsel %vm1045_vm2, %v1001_v30, 0  ;;  %vm1061_vm6 = vcmp.gt.s32.totalorder %v1009_v62, 0  ;;  %v1118_v30 = vsel %vm1117_vm3, %v4832_v27, 63  ;;  %vm1411_vm2 = vcmp.lt.s32.totalorder %v4737_v20, 15 }
 0x100   : > { %vm1109_vm5 = vcmp.lt.s32.totalorder %v4836_v8, 63  ;;  %v4852_v37 = vsel %vm1061_vm6, %v1009_v62, 0 }
 0x101   : > { %v1110_v50 = vsel %vm1109_vm5, %v4836_v8, 63  ;;  %vm1125_vm9 = vcmp.lt.s32.totalorder %v4852_v37, 63  ;;  %vm1437_vm5 = vcmp.lt.s32.totalorder %v4832_v27, 15 }
 0x102   : > { %v1161_v36 = vadd.s32 80, %v1110_v50 }
 0x105   : > { %1212 = vperm.xlu1 %3952, %v1159_v38   ;;  %1215 = vperm.xlu2 %3951, %v1160_v14   ;;  %v4834_v38 = vsel %vm1055_vm1, %v1006_v57, 0  ;;  %v1162_v14 = vadd.s32 80, %v1112_v41  ;;  %vm1409_vm1 = vcmp.lt.s32.totalorder %v4735_v1, 15 }
 0x106   : > { %v4823_v3 = vpop.permute.xlu1 %772  ;;  %v4825_v39 = vpop.permute.xlu2 %799  ;;  %1200 = vperm.xlu0 %3955, %v1155_v11   ;;  %vm1119_vm4 = vcmp.lt.s32.totalorder %v4834_v38, 63  ;;  %v1004_v11 = vld [vmem:[%s4427_s9 + $0x78] sm:$0xff]  ;;  %vm1439_vm6 = vcmp.lt.s32.totalorder %v4834_v38, 15 }
 0x107   : > { %7995 = vst [vmem:[#allocation34_spill] sm:$0xff] %v4825_v39  ;;  %v4829_v32 = vpop.permute.xlu0 %1514  ;;  %v1120_v41 = vsel %vm1119_vm4, %v4834_v38, 63  ;;  %vm1051_vm7 = vcmp.gt.s32.totalorder %v1004_v11, 0 }
 0x108   : > { %7996 = vst [vmem:[#allocation35_spill] sm:$0xff] %v4829_v32  ;;  %v4854_v15 = vsel %vm1051_vm7, %v1004_v11, 0  ;;  %v1124_v11 = vsel %vm1123_vm8, %v4619_v31, 63  ;;  %v1010_v31 = vld [vmem:[%s4427_s9 + $0xa8] sm:$0xff] }
 0x109   : > { %vm1115_vm10 = vcmp.lt.s32.totalorder %v4854_v15, 63  ;;  %vm1063_vm0 = vcmp.gt.s32.totalorder %v1010_v31, 0 }
 0x10d   : > { %1221 = vperm.xlu1 %3952, %v1162_v14   ;;  %1224 = vperm.xlu2 %3951, %v1163_v4   ;;  %v1165_v14 = vadd.s32 80, %v1118_v30  ;;  %v1166_v4 = vadd.s32 80, %v1120_v41  ;;  %v1126_v30 = vsel %vm1125_vm9, %v4852_v37, 63  ;;  %v1116_v41 = vsel %vm1115_vm10, %v4854_v15, 63 }
 0x10e   : > { %v4843_v13 = vpop.permute.xlu1 %778  ;;  %v4845_v57 = vpop.permute.xlu2 %808  ;;  %1209 = vperm.xlu0 %3955, %v1158_v9   ;;  %v1007_v9 = vld [vmem:[%s4427_s9 + $0x90] sm:$0xff]  ;;  %v1164_v61 = vadd.s32 80, %v1116_v41  ;;  %v1171_v41 = vadd.s32 80, %v1130_v33  ;;  %v1412_v33 = vsel %vm1411_vm2, %v4737_v20, 15  ;;  %v1438_v20 = vsel %vm1437_vm5, %v4832_v27, 15 }
 0x10f   : > { %v4849_v42 = vpop.permute.xlu0 %1559  ;;  %vm1057_vm12 = vcmp.gt.s32.totalorder %v1007_v9, 0  ;;  %v1472_v32 = vadd.s32 144, %v1412_v33  ;;  %vm1415_vm9 = vcmp.lt.s32.totalorder %v4753_v25, 15 }
 0x110   : > { %v4872_v43 = vsel %vm1057_vm12, %v1007_v9, 0  ;;  %v1406_v9 = vsel %vm1405_vm14, %v4719_v55, 15  ;;  %v1416_v27 = vsel %vm1415_vm9, %v4753_v25, 15  ;;  %vm1417_vm12 = vcmp.lt.s32.totalorder %v4794_v19, 15 }
 0x111   : > { %vm1121_vm15 = vcmp.lt.s32.totalorder %v4872_v43, 63  ;;  %v1469_v47 = vadd.s32 144, %v1406_v9  ;;  %vm1441_vm10 = vcmp.lt.s32.totalorder %v4872_v43, 15  ;;  %vm1445_vm14 = vcmp.lt.s32.totalorder %v4852_v37, 15 }
 0x112   : > { %v1418_v25 = vsel %vm1417_vm12, %v4794_v19, 15 }
 0x115   : > { %1230 = vperm.xlu1 %3952, %v1165_v14   ;;  %1233 = vperm.xlu2 %3951, %v1166_v4   ;;  %v1168_v14 = vadd.s32 80, %v1124_v11  ;;  %v1169_v4 = vadd.s32 80, %v1126_v30  ;;  %v1122_v11 = vsel %vm1121_vm15, %v4872_v43, 63 }
 0x116   : > { %v4861_v21 = vpop.permute.xlu1 %787  ;;  %v4863_v62 = vpop.permute.xlu2 %817  ;;  %1218 = vperm.xlu0 %3955, %v1161_v36   ;;  %v1167_v54 = vadd.s32 80, %v1122_v11 }
 0x118   : > { %v4868_v50 = vpop.permute.xlu0 %510 }
 0x11d   : > { %1239 = vperm.xlu1 %3952, %v1168_v14   ;;  %1242 = vperm.xlu2 %3951, %v1169_v4   ;;  %v4887_v14 = vsel %vm1063_vm0, %v1010_v31, 0  ;;  %v1013_v4 = vld [vmem:[%s4427_s9 + $0xc0] sm:$0xff]  ;;  %v1410_v31 = vsel %vm1409_vm1, %v4735_v1, 15  ;;  %vm1421_vm0 = vcmp.lt.s32.totalorder %v4772_v53, 15  ;;  %vm1423_vm1 = vcmp.lt.s32.totalorder %v4815_v46, 15 }
 0x11e   : > { %v4878_v36 = vpop.permute.xlu1 %796  ;;  %v4880_v39 = vpop.permute.xlu2 %826  ;;  %1227 = vperm.xlu0 %3955, %v1164_v61   ;;  %v7998_v61 = vmov 1   ;;  %vm1127_vm3 = vcmp.lt.s32.totalorder %v4887_v14, 63  ;;  %vm1069_vm4 = vcmp.gt.s32.totalorder %v1013_v4, 0  ;;  %vm1447_vm15 = vcmp.lt.s32.totalorder %v4887_v14, 15 }
 0x11f   : > { %7997 = vst [vmem:[#allocation36_spill] sm:$0xff] %v4878_v36  ;;  %v1128_v11 = vsel %vm1127_vm3, %v4887_v14, 63  ;;  %v4903_v35 = vsel %vm1069_vm4, %v1013_v4, 0  ;;  %v1440_v4 = vsel %vm1439_vm6, %v4834_v38, 15  ;;  %v1442_v38 = vsel %vm1441_vm10, %v4872_v43, 15 }
 0x120   : > { %v4885_v30 = vpop.permute.xlu0 %513  ;;  %v1170_v51 = vadd.s32 80, %v1128_v11  ;;  %vm1133_vm7 = vcmp.lt.s32.totalorder %v4903_v35, 63  ;;  %v1485_v11 = vadd.s32 144, %v1438_v20  ;;  %vm1449_vm3 = vcmp.lt.s32.totalorder %v4870_v5, 15 }
 0x121   : > { %v1134_v33 = vsel %vm1133_vm7, %v4903_v35, 63  ;;  %vm1427_vm6 = vcmp.lt.s32.totalorder %v4792_v18, 15  ;;  %vm1431_vm7 = vcmp.lt.s32.totalorder %v4811_v60, 15  ;;  %vm1453_vm10 = vcmp.lt.s32.totalorder %v4903_v35, 15 }
 0x125   : > { %1248 = vperm.xlu1 %3952, %v1171_v41   ;;  %3953 = vset.pattern.permute.xlu2 %v7998_v61  ;;  %v1471_v41 = vadd.s32 144, %v1410_v31 }
 0x126   : > { %v4894_v55 = vpop.permute.xlu1 %805  ;;  %1502 = vperm.xlu2 %3953, %v1469_v47   ;;  %v4896_v36 = vpop.permute.xlu2 %835  ;;  %1236 = vperm.xlu0 %3955, %v1167_v54   ;;  %v1018_v47 = vld [vmem:[%s4427_s9 + $0xe8] sm:$0xff] }
 0x127   : > { %7999 = vst [vmem:[#allocation37_spill] sm:$0xff] %v4896_v36  ;;  %vm1079_vm8 = vcmp.gt.s32.totalorder %v1018_v47, 0  ;;  %v1486_v36 = vadd.s32 144, %v1440_v4  ;;  %v1474_v4 = vadd.s32 144, %v1416_v27  ;;  %v1446_v27 = vsel %vm1445_vm14, %v4852_v37, 15  ;;  %v3741_v37 = vld [vmem:[%s7882_s2 + $0x78] sm:$0xff] }
 0x128   : > { %v4900_v9 = vpop.permute.xlu0 %528  ;;  %v4919_v16 = vsel %vm1079_vm8, %v1018_v47, 0  ;;  %2102 = vmatpush.bf16.msra.mxu1 %v3741_v37  ;;  %3830 = vmatpush.bf16.msra.mxu3 %v3741_v37  ;;  %v1450_v37 = vsel %vm1449_vm3, %v4870_v5, 15  ;;  %v3730_v5 = vld [vmem:[%s7882_s2 + $0x20] sm:$0xff]  ;;  %vm1425_vm8 = vcmp.lt.s32.totalorder %v4790_v23, 15  ;;  %vm1429_vm14 = vcmp.lt.s32.totalorder %v4836_v8, 15 }
 0x129   : > { %8000 = vst [vmem:[#allocation38_spill] sm:$0xff] %v4900_v9  ;;  %vm1143_vm11 = vcmp.lt.s32.totalorder %v4919_v16, 63  ;;  %v3732_v9 = vld [vmem:[%s7882_s2 + $0x30] sm:$0xff] }
 0x12a   : > { %v1144_v20 = vsel %vm1143_vm11, %v4919_v16, 63  ;;  %vm1433_vm11 = vcmp.lt.s32.totalorder %v4813_v59, 15 }
 0x12d   : > { %3954 = vset.pattern.permute.xlu1 %v7998_v61 }
 0x12e   : > { %1508 = vperm.xlu1 %3954, %v1471_v41   ;;  %v4910_v54 = vpop.permute.xlu1 %814  ;;  %1511 = vperm.xlu2 %3953, %v1472_v32   ;;  %v4912_v1 = vpop.permute.xlu2 %844  ;;  %v1173_v41 = vadd.s32 80, %v1134_v33  ;;  %v1487_v33 = vadd.s32 144, %v1442_v38  ;;  %v1475_v38 = vadd.s32 144, %v1418_v25  ;;  %v1422_v25 = vsel %vm1421_vm0, %v4772_v53, 15  ;;  %v3740_v53 = vld [vmem:[%s7882_s2 + $0x70] sm:$0xff] }
 0x12f   : > { %8001 = vst [vmem:[#allocation39_spill] sm:$0xff] %v4912_v1  ;;  %1245 = vperm.xlu0 %3955, %v1170_v51   ;;  %v1178_v1 = vadd.s32 80, %v1144_v20  ;;  %2103 = vmatpush.bf16.msra.mxu1 %v3740_v53 }
 0x130   : > { %v4916_v31 = vpop.permute.xlu0 %537  ;;  %3831 = vmatpush.bf16.msra.mxu3 %v3740_v53  ;;  %v8006_v53 = vmov 0  }
 0x136   : > { %1550 = vperm.xlu1 %3954, %v1485_v11   ;;  %v4924_v51 = vpop.permute.xlu1 %823  ;;  %1553 = vperm.xlu2 %3953, %v1486_v36   ;;  %v4926_v32 = vpop.permute.xlu2 %853  ;;  %v1420_v11 = vsel %vm1419_vm13, %v4770_v45, 15  ;;  %v3733_v45 = vld [vmem:[%s7882_s2 + $0x38] sm:$0xff] }
 0x137   : > { %8002 = vst [vmem:[#allocation40_spill] sm:$0xff] %v4926_v32  ;;  %1254 = vperm.xlu0 %3955, %v1173_v41   ;;  %v1476_v20 = vadd.s32 144, %v1420_v11  ;;  %v1489_v32 = vadd.s32 144, %v1446_v27  ;;  %2013 = vmatpush.bf16.msra.mxu0 %v3733_v45  ;;  %v1424_v27 = vsel %vm1423_vm1, %v4815_v46, 15 }
 0x138   : > { %v4930_v47 = vpop.permute.xlu0 %546  ;;  %3822 = vmatpush.bf16.msra.mxu2 %v3733_v45 }
 0x13b   : > { %2014 = vmatpush.bf16.msra.mxu0 %v3732_v9 }
 0x13c   : > { %3823 = vmatpush.bf16.msra.mxu2 %v3732_v9  ;;  %v3738_v9 = vld [vmem:[%s7882_s2 + $0x60] sm:$0xff] }
 0x13e   : > { %1517 = vperm.xlu1 %3954, %v1474_v4   ;;  %v4935_v36 = vpop.permute.xlu1 %832  ;;  %1556 = vperm.xlu2 %3953, %v1487_v33   ;;  %v1012_v4 = vld [vmem:[%s4427_s9 + $0xb8] sm:$0xff]  ;;  %v1448_v33 = vsel %vm1447_vm15, %v4887_v14, 15  ;;  %v1478_v14 = vadd.s32 144, %v1424_v27 }
 0x13f   : > { %1269 = vperm.xlu0 %3955, %v1178_v1   ;;  %v4938_v43 = vpop.permute.xlu2 %1182  ;;  %vm1067_vm2 = vcmp.gt.s32.totalorder %v1012_v4, 0 }
 0x140   : > { %v4942_v41 = vpop.permute.xlu0 %555 }
 0x146   : > { %1520 = vperm.xlu1 %3954, %v1475_v38   ;;  %v4948_v1 = vpop.permute.xlu1 %841  ;;  %1523 = vperm.xlu2 %3953, %v1476_v20   ;;  %v1490_v38 = vadd.s32 144, %v1448_v33  ;;  %v1477_v20 = vadd.s32 144, %v1422_v25 }
 0x147   : > { %8003 = vst [vmem:[#allocation41_spill] sm:$0xff] %v4948_v1  ;;  %3965 = vset.pattern.permute.xlu0 %v7998_v61  ;;  %v4958_v19 = vpop.permute.xlu2 %1191  ;;  %v1068_v1 = vsel %vm1067_vm2, %v1012_v4, 0  ;;  %v3739_v4 = vld [vmem:[%s7882_s2 + $0x68] sm:$0xff] }
 0x148   : > { %1562 = vperm.xlu0 %3965, %v1489_v32   ;;  %v4962_v11 = vpop.permute.xlu0 %564  ;;  %vm1131_vm4 = vcmp.lt.s32.totalorder %v1068_v1, 63  ;;  %vm1451_vm5 = vcmp.lt.s32.totalorder %v1068_v1, 15  ;;  %v3731_v32 = vld [vmem:[%s7882_s2 + $0x28] sm:$0xff]  ;;  %2104 = vmatpush.bf16.msra.mxu1 %v3739_v4 }
 0x149   : > { %v1132_v25 = vsel %vm1131_vm4, %v1068_v1, 63  ;;  %v1452_v27 = vsel %vm1451_vm5, %v1068_v1, 15  ;;  %2015 = vmatpush.bf16.msra.mxu0 %v3731_v32  ;;  %3824 = vmatpush.bf16.msra.mxu2 %v3731_v32  ;;  %v1428_v32 = vsel %vm1427_vm6, %v4792_v18, 15 }
 0x14a   : > { %3832 = vmatpush.bf16.msra.mxu3 %v3739_v4  ;;  %v1014_v4 = vld [vmem:[%s4427_s9 + $0xc8] sm:$0xff]  ;;  %v1480_v18 = vadd.s32 144, %v1428_v32  ;;  %v1454_v32 = vsel %vm1453_vm10, %v4903_v35, 15 }
 0x14b   : > { %vm1071_vm9 = vcmp.gt.s32.totalorder %v1014_v4, 0  ;;  %v3735_v35 = vld [vmem:[%s7882_s2 + $0x48] sm:$0xff] }
 0x14c   : > { %2105 = vmatpush.bf16.msra.mxu1 %v3738_v9 }
 0x14d   : > { %2016 = vmatpush.bf16.msra.mxu0 %v3730_v5  ;;  %3825 = vmatpush.bf16.msra.mxu2 %v3730_v5  ;;  %v3736_v5 = vld [vmem:[%s7882_s2 + $0x50] sm:$0xff] }
 0x14e   : > { %1565 = vperm.xlu1 %3954, %v1490_v38   ;;  %v4972_v46 = vpop.permute.xlu1 %850  ;;  %1526 = vperm.xlu2 %3953, %v1477_v20   ;;  %v1491_v38 = vadd.s32 144, %v1450_v37  ;;  %v1172_v20 = vadd.s32 80, %v1132_v25  ;;  %v3729_v37 = vld [vmem:[%s7882_s2 + $0x18] sm:$0xff] }
 0x14f   : > { %8004 = vst [vmem:[#allocation42_spill] sm:$0xff] %v4972_v46  ;;  %v4980_v45 = vpop.permute.xlu2 %1197  ;;  %v1492_v46 = vadd.s32 144, %v1452_v27  ;;  %v3737_v27 = vld [vmem:[%s7882_s2 + $0x58] sm:$0xff]  ;;  %3833 = vmatpush.bf16.msra.mxu3 %v3738_v9 }
 0x150   : > { %1529 = vperm.xlu0 %3965, %v1478_v14   ;;  %v4983_v33 = vpop.permute.xlu0 %573  ;;  %2106 = vmatpush.bf16.msra.mxu1 %v3737_v27 }
 0x151   : > { %8005 = vst [vmem:[#allocation43_spill] sm:$0xff] %v4983_v33  ;;  %2017 = vmatpush.bf16.msra.mxu0 %v3729_v37  ;;  %v5015_v33 = vsel %vm1071_vm9, %v1014_v4, 0  ;;  %3826 = vmatpush.bf16.msra.mxu2 %v3729_v37  ;;  %v3727_v4 = vld [vmem:[%s7882_s2 + $0x8] sm:$0xff] }
 0x152   : > { %vm1135_vm12 = vcmp.lt.s32.totalorder %v5015_v33, 63 }
 0x153   : > { %3834 = vmatpush.bf16.msra.mxu3 %v3737_v27  ;;  %v1434_v27 = vsel %vm1433_vm11, %v4813_v59, 15  ;;  %v3726_v59 = vld [vmem:[%s7882_s2] sm:$0xff] }
 0x154   : > { %2107 = vmatpush.bf16.msra.mxu1 %v3736_v5 }
 0x156   : > { %3956 = vset.pattern.permute.xlu1 %v8006_v53  ;;  %v4993_v1 = vpop.permute.xlu1 %859  ;;  %1568 = vperm.xlu2 %3953, %v1491_v38   ;;  %v1432_v38 = vsel %vm1431_vm7, %v4811_v60, 15  ;;  %v1019_v60 = vld [vmem:[%s4427_s9 + $0xf0] sm:$0xff] }
 0x157   : > { %8007 = vst [vmem:[#allocation44_spill] sm:$0xff] %v4993_v1  ;;  %1251 = vperm.xlu1 %3956, %v1172_v20   ;;  %v4996_v14 = vpop.permute.xlu2 %1206  ;;  %v1426_v20 = vsel %vm1425_vm8, %v4790_v23, 15  ;;  %v1482_v1 = vadd.s32 144, %v1432_v38  ;;  %vm1081_vm13 = vcmp.gt.s32.totalorder %v1019_v60, 0  ;;  %3835 = vmatpush.bf16.msra.mxu3 %v3736_v5  ;;  %vm1455_vm8 = vcmp.lt.s32.totalorder %v5015_v33, 15 }
 0x158   : > { %8008 = vst [vmem:[#allocation45_spill] sm:$0xff] %v4996_v14  ;;  %1571 = vperm.xlu0 %3965, %v1492_v46   ;;  %v5004_v25 = vpop.permute.xlu0 %582  ;;  %v3728_v46 = vld [vmem:[%s7882_s2 + $0x10] sm:$0xff]  ;;  %v1479_v14 = vadd.s32 144, %v1426_v20  ;;  %v5042_v20 = vsel %vm1081_vm13, %v1019_v60, 0  ;;  %2108 = vmatpush.bf16.msra.mxu1 %v3735_v35 }
 0x159   : > { %8009 = vst [vmem:[#allocation46_spill] sm:$0xff] %v5004_v25  ;;  %v7930_v25 = vlaneseq  ;;  %2018 = vmatpush.bf16.msra.mxu0 %v3728_v46  ;;  %3827 = vmatpush.bf16.msra.mxu2 %v3728_v46  ;;  %v3734_v46 = vld [vmem:[%s7882_s2 + $0x40] sm:$0xff]  ;;  %vm1465_vm0 = vcmp.lt.s32.totalorder %v5042_v20, 15 }
 0x15b   : > { %v5035_v37 = vand.u32 127, %v7930_v25  ;;  %v1016_v25 = vld [vmem:[%s4427_s9 + $0xd8] sm:$0xff]  ;;  %3836 = vmatpush.bf16.msra.mxu3 %v3735_v35  ;;  %v8012_v35 = vmov 0 }
 0x15c   : > { %vm1075_vm2 = vcmp.gt.s32.totalorder %v1016_v25, 0  ;;  %2109 = vmatpush.bf16.msra.mxu1 %v3734_v46 }
 0x15d   : > { %2019 = vmatpush.bf16.msra.mxu0 %v3727_v4  ;;  %vm889_vm15 = vcmp.eq.s32.totalorder %v5035_v37, %v4845_v57  ;;  %3828 = vmatpush.bf16.msra.mxu2 %v3727_v4  ;;  %vm633_vm3 = vcmp.eq.s32.totalorder %v5035_v37, %v4661_v12  ;;  %v1015_v4 = vld [vmem:[%s4427_s9 + $0xd0] sm:$0xff] }
 0x15e   : > { %1535 = vperm.xlu2 %3953, %v1480_v18   ;;  %v1493_v18 = vadd.s32 144, %v1454_v32  ;;  %vm953_vm6 = vmor %vm633_vm3, %vm889_vm15 }
 0x15f   : > { %3957 = vset.pattern.permute.xlu1 %v7998_v61  ;;  %v5023_v23 = vpop.permute.xlu1 %1188  ;;  %v5025_v9 = vpop.permute.xlu2 %1215  ;;  %3837 = vmatpush.bf16.msra.mxu3 %v3734_v46 }
 0x160   : > { %1541 = vperm.xlu0 %3965, %v1482_v1   ;;  %v5031_v38 = vpop.permute.xlu0 %591  ;;  %1532 = vperm.xlu1 %3957, %v1479_v14   ;;  %v1136_v1 = vsel %vm1135_vm12, %v5015_v33, 63  ;;  %v5050_v14 = vadd.s32 128, %v5035_v37  ;;  %vm1073_vm12 = vcmp.gt.s32.totalorder %v1015_v4, 0 }
 0x161   : > { %8010 = vst [vmem:[#allocation47_spill] sm:$0xff] %v5031_v38  ;;  %v1483_v38 = vadd.s32 144, %v1434_v27  ;;  %v1174_v60 = vadd.s32 80, %v1136_v1  ;;  %v1430_v27 = vsel %vm1429_vm14, %v4836_v8, 15  ;;  %2020 = vmatpush.bf16.msra.mxu0 %v3726_v59  ;;  %v1466_v8 = vsel %vm1465_vm0, %v5042_v20, 15  ;;  %3829 = vmatpush.bf16.msra.mxu2 %v3726_v59 }
 0x162   : > { %vm890_vm1 = vcmp.eq.s32.totalorder %v5050_v14, %v4845_v57  ;;  %vm634_vm5 = vcmp.eq.s32.totalorder %v5050_v14, %v4661_v12  ;;  %v1481_v12 = vadd.s32 144, %v1430_v27  ;;  %v8015_v1 = vmov 0 }
 0x163   : > { %vm954_vm9 = vmor %vm634_vm5, %vm890_vm1  ;;  %v1456_v57 = vsel %vm1455_vm8, %v5015_v33, 15  ;;  %vm605_vm14 = vcmp.eq.s32.totalorder %v5035_v37, %v4868_v50  ;;  %vm606_vm15 = vcmp.eq.s32.totalorder %v5050_v14, %v4868_v50  ;;  %vm901_vm0 = vcmp.eq.s32.totalorder %v5035_v37, %v4880_v39 }
 0x164   : > { %v1494_v59 = vadd.s32 144, %v1456_v57  ;;  %vm902_vm3 = vcmp.eq.s32.totalorder %v5050_v14, %v4880_v39  ;;  %vm862_vm5 = vcmp.eq.s32.totalorder %v5050_v14, %v4746_v26  ;;  %vm646_vm8 = vcmp.eq.s32.totalorder %v5050_v14, %v4685_v17 }
 0x165   : > { %v8025_v50 = vmov 0 }
 0x166   : > { %1574 = vperm.xlu2 %3953, %v1493_v18  }
 0x167   : > { %v5060_v5 = vpop.permute.xlu1 %1194  ;;  %v1225_v32 = vpop.permute.xlu2 %1224 }
 0x168   : > { %vm1305_vm4 = vcmp.eq.s32.totalorder %v5035_v37, %v1225_v32  ;;  %1544 = vperm.xlu0 %3965, %v1483_v38   ;;  %v5066_v18 = vpop.permute.xlu0 %600  ;;  %vm1306_vm7 = vcmp.eq.s32.totalorder %v5050_v14, %v1225_v32  ;;  %3958 = vset.pattern.permute.xlu1 %v8006_v53  ;;  %v1076_v38 = vsel %vm1075_vm2, %v1016_v25, 0  ;;  %v1074_v32 = vsel %vm1073_vm12, %v1015_v4, 0 }
 0x169   : > { %8011 = vst [vmem:[#allocation48_spill] sm:$0xff] %v5066_v18  ;;  %1257 = vperm.xlu1 %3958, %v1174_v60   ;;  %vm5086_vm10 = vmor %vm953_vm6, %vm1305_vm4  ;;  %v1499_v18 = vadd.s32 144, %v1466_v8  ;;  %vm1139_vm13 = vcmp.lt.s32.totalorder %v1076_v38, 63  ;;  %vm1137_vm1 = vcmp.lt.s32.totalorder %v1074_v32, 63  ;;  %vm861_vm2 = vcmp.eq.s32.totalorder %v5035_v37, %v4746_v26 }
 0x16a   : > { %v8013_v35 = vsel %vm5086_vm10, 4294967295, %v8012_v35  ;;  %vm5090_vm11 = vmor %vm954_vm9, %vm1306_vm7  ;;  %vm645_vm4 = vcmp.eq.s32.totalorder %v5035_v37, %v4685_v17  ;;  %vm607_vm6 = vcmp.eq.s32.totalorder %v5035_v37, %v4885_v30  ;;  %vm608_vm12 = vcmp.eq.s32.totalorder %v5050_v14, %v4885_v30 }
 0x16b   : > { %8014 = vst [vmem:[#allocation49_spill] sm:$0xff] %v8013_v35  ;;  %v8016_v1 = vsel %vm5090_vm11, 4294967295, %v8015_v1  ;;  %v1140_v35 = vsel %vm1139_vm13, %v1076_v38, 63  ;;  %vm5116_vm7 = vmor %vm605_vm14, %vm861_vm2  ;;  %v8021_v26 = vmov 0  ;;  %vm863_vm14 = vcmp.eq.s32.totalorder %v5035_v37, %v4655_v2 }
 0x16c   : > { %v1176_v33 = vadd.s32 80, %v1140_v35  ;;  %vm5122_vm9 = vmor %vm645_vm4, %vm901_vm0  ;;  %vm887_vm0 = vcmp.eq.s32.totalorder %v5035_v37, %v4894_v55  ;;  %vm8031_vm11 = vcmp.lt.s32.totalorder %v1076_v38, 15  ;;  %vm880_vm10 = vcmp.eq.s32.totalorder %v5050_v14, %v4679_v29 }
 0x16d   : > { %vm5131_vm13 = vmor %vm606_vm15, %vm862_vm5  ;;  %vm864_vm15 = vcmp.eq.s32.totalorder %v5050_v14, %v4655_v2  ;;  %v8027_v2 = vmov 0  ;;  %v1460_v30 = vsel %vm8031_vm11, %v1076_v38, 15  ;;  %vm1278_vm11 = vcmp.eq.s32.totalorder %v5050_v14, %v4938_v43 }
 0x16e   : > { %1538 = vperm.xlu2 %3953, %v1481_v12   ;;  %v8022_v26 = vsel %vm5131_vm13, 4294967295, %v8021_v26  ;;  %vm5137_vm2 = vmor %vm646_vm8, %vm902_vm3  ;;  %v1017_v12 = vld [vmem:[%s4427_s9 + $0xe0] sm:$0xff]  ;;  %vm631_vm3 = vcmp.eq.s32.totalorder %v5035_v37, %v4699_v22  ;;  %vm624_vm8 = vcmp.eq.s32.totalorder %v5050_v14, %v4916_v31  ;;  %v8037_v38 = vmov 0 }
 0x16f   : > { %v5095_v60 = vpop.permute.xlu1 %1203  ;;  %v5097_v25 = vpop.permute.xlu2 %1233  ;;  %vm5162_vm4 = vmor %vm608_vm12, %vm864_vm15  ;;  %vm1277_vm12 = vcmp.eq.s32.totalorder %v5035_v37, %v4938_v43  ;;  %v8041_v43 = vmov 0  ;;  %v1496_v39 = vadd.s32 144, %v1460_v30  ;;  %v8061_v17 = vmov 0 }
 0x170   : > { %1592 = vperm.xlu0 %3965, %v1499_v18   ;;  %v1186_v27 = vpop.permute.xlu0 %1185  ;;  %v1138_v18 = vsel %vm1137_vm1, %v1074_v32, 63  ;;  %vm5148_vm1 = vmor %vm607_vm6, %vm863_vm14  ;;  %v8028_v2 = vsel %vm5162_vm4, 4294967295, %v8027_v2  ;;  %vm632_vm14 = vcmp.eq.s32.totalorder %v5050_v14, %v4699_v22  ;;  %vm8032_vm4 = vcmp.eq.s32.totalorder %v5050_v14, %v4894_v55 }
 0x171   : > { %3959 = vset.pattern.permute.xlu1 %v7998_v61  ;;  %v8026_v50 = vsel %vm5148_vm1, 4294967295, %v8025_v50  ;;  %v1175_v57 = vadd.s32 80, %v1138_v18  ;;  %vm5174_vm5 = vmor %vm631_vm3, %vm887_vm0  ;;  %vm1279_vm0 = vcmp.eq.s32.totalorder %v5035_v37, %v1186_v27  ;;  %vm1077_vm3 = vcmp.gt.s32.totalorder %v1017_v12, 0 }
 0x172   : > { %1577 = vperm.xlu1 %3959, %v1494_v59   ;;  %v8029_v59 = vmov 0  ;;  %vm5187_vm13 = vmor %vm632_vm14, %vm8032_vm4  ;;  %vm1457_vm4 = vcmp.lt.s32.totalorder %v1074_v32, 15  ;;  %v5220_v18 = vsel %vm1077_vm3, %v1017_v12, 0  ;;  %v8053_v12 = vmov 0 }
 0x173   : > { %v8030_v59 = vsel %vm5174_vm5, 4294967295, %v8029_v59  ;;  %vm5192_vm5 = vmor %vm624_vm8, %vm880_vm10  ;;  %vm1280_vm10 = vcmp.eq.s32.totalorder %v5050_v14, %v1186_v27  ;;  %v1458_v27 = vsel %vm1457_vm4, %v1074_v32, 15  ;;  %vm1141_vm4 = vcmp.lt.s32.totalorder %v5220_v18, 63 }
 0x174   : > { %vm5207_vm14 = vmor %vm5116_vm7, %vm1277_vm12  ;;  %vm8044_vm7 = vnez %v8022_v26  ;;  %v1142_v30 = vsel %vm1141_vm4, %v5220_v18, 63 }
 0x175   : > { %vm5224_vm12 = vmor %vm8044_vm7, %vm1278_vm11  ;;  %v1177_v22 = vadd.s32 80, %v1142_v30 }
 0x176   : > { %3961 = vset.pattern.permute.xlu2 %v8006_v53 }
 0x177   : > { %v5152_v8 = vpop.permute.xlu1 %1212  ;;  %1263 = vperm.xlu2 %3961, %v1176_v33   ;;  %v1243_v4 = vpop.permute.xlu2 %1242  ;;  %v4253_v33 = vmov 1.0|1.0  }
 0x178   : > { %vm1317_vm6 = vcmp.eq.s32.totalorder %v5035_v37, %v1243_v4  ;;  %v5167_v35 = vpop.permute.xlu0 %1200  ;;  %vm1318_vm15 = vcmp.eq.s32.totalorder %v5050_v14, %v1243_v4 }
 0x179   : > { %vm5200_vm1 = vmor %vm5122_vm9, %vm1317_vm6  ;;  %vm8043_vm9 = vnez %v8026_v50 }
 0x17a   : > { %v8038_v38 = vsel %vm5200_vm1, 4294967295, %v8037_v38  ;;  %3960 = vset.pattern.permute.xlu1 %v8006_v53  ;;  %vm5214_vm8 = vmor %vm5137_vm2, %vm1318_vm15  ;;  %vm1599_vm2 = vcmp.eq.s32.totalorder %v5035_v37, %v4808_v28  ;;  %vm8047_vm15 = vnez %v8028_v2  ;;  %v1495_v2 = vadd.s32 144, %v1458_v27 }
 0x17b   : > { %v8042_v43 = vsel %vm5214_vm8, 4294967295, %v8041_v43  ;;  %1260 = vperm.xlu1 %3960, %v1175_v57   ;;  %vm1343_vm6 = vmor %vm8043_vm9, %vm1279_vm0  ;;  %v8055_v57 = vmov 0 }
 0x17c   : > { %vm5232_vm8 = vmor %vm8047_vm15, %vm1280_vm10  ;;  %vm8052_vm10 = vnez %v8030_v59  ;;  %vm1600_vm15 = vcmp.eq.s32.totalorder %v5050_v14, %v4808_v28  ;;  %v8059_v28 = vmov 0 }
 0x17d   : > { %vm5241_vm11 = vmor %vm1343_vm6, %vm1599_vm2 }
 0x17f   : > { %v1222_v50 = vpop.permute.xlu1 %1221  ;;  %3963 = vset.pattern.permute.xlu2 %v7998_v61 }
 0x180   : > { %vm1303_vm0 = vcmp.eq.s32.totalorder %v5035_v37, %v1222_v50  ;;  %vm1304_vm3 = vcmp.eq.s32.totalorder %v5050_v14, %v1222_v50  ;;  %1583 = vperm.xlu2 %3963, %v1496_v39   ;;  %v1503_v26 = vpop.permute.xlu2 %1502  ;;  %v5239_v4 = vpop.permute.xlu0 %1209 }
 0x181   : > { %vm5248_vm9 = vmor %vm8052_vm10, %vm1303_vm0  ;;  %vm1296_vm7 = vcmp.eq.s32.totalorder %v5050_v14, %v5239_v4  ;;  %vm1597_vm2 = vcmp.eq.s32.totalorder %v5035_v37, %v1503_v26  ;;  %vm1435_vm10 = vcmp.lt.s32.totalorder %v4854_v15, 15 }
 0x182   : > { %v8054_v12 = vsel %vm5248_vm9, 4294967295, %v8053_v12  ;;  %vm5258_vm6 = vmor %vm5187_vm13, %vm1304_vm3  ;;  %vm1598_vm9 = vcmp.eq.s32.totalorder %v5050_v14, %v1503_v26  ;;  %vm629_vm3 = vcmp.eq.s32.totalorder %v5035_v37, %v4930_v47  ;;  %v1436_v39 = vsel %vm1435_vm10, %v4854_v15, 15 }
 0x183   : > { %v8056_v57 = vsel %vm5258_vm6, 4294967295, %v8055_v57  ;;  %vm5265_vm0 = vmor %vm5232_vm8, %vm1600_vm15  ;;  %3962 = vset.pattern.permute.xlu1 %v7998_v61  ;;  %v1484_v46 = vadd.s32 144, %v1436_v39  ;;  %vm1463_vm10 = vcmp.lt.s32.totalorder %v4919_v16, 15  ;;  %vm8085_vm6 = vcmp.eq.s32.totalorder %v5035_v37, %v4663_v48 }
 0x184   : > { %vm5274_vm13 = vmor %vm5192_vm5, %vm1296_vm7  ;;  %1580 = vperm.xlu1 %3962, %v1495_v2   ;;  %vm630_vm5 = vcmp.eq.s32.totalorder %v5050_v14, %v4930_v47  ;;  %v8063_v47 = vmov 0  ;;  %v1464_v50 = vsel %vm1463_vm10, %v4919_v16, 15  ;;  %v8137_v39 = vmov 0 }
 0x185   : > { %v8060_v28 = vsel %vm5274_vm13, 4294967295, %v8059_v28  ;;  %vm1661_vm8 = vmor %vm5207_vm14, %vm1597_vm2  ;;  %vm885_vm14 = vcmp.eq.s32.totalorder %v5035_v37, %v4691_v40  ;;  %v1498_v2 = vadd.s32 144, %v1464_v50  ;;  %v8246_v26 = vmov 0 }
 0x186   : > { %vm3620_vm4 = vmpackc.low %vm5241_vm11, %vm1661_vm8  ;;  %vm886_vm11 = vcmp.eq.s32.totalorder %v5050_v14, %v4691_v40  ;;  %v1020_v40 = vld [vmem:[%s4427_s9 + $0xf8] sm:$0xff]  ;;  %vm892_vm8 = vcmp.eq.s32.totalorder %v5050_v14, %v4703_v6  ;;  %s4254_s9 = smov 64  }
 0x187   : > { %3621 = vmatmul.msk.bf16.vlgmr.msra.gmra.mxu0 %vm3620_vm4, %v4253_v33  ;;  %vm1662_vm7 = vmor %vm5224_vm12, %vm1598_vm9  ;;  %v5291_v55 = vpop.permute.xlu1 %1230  ;;  %vm899_vm4 = vcmp.eq.s32.totalorder %v5035_v37, %v4924_v51 }
 0x188   : > { %vm3652_vm15 = vmpackc.low %vm5265_vm0, %vm1662_vm7  ;;  %3964 = vset.pattern.permute.xlu2 %v8006_v53  ;;  %v5300_v15 = vpop.permute.xlu2 %1511  ;;  %v1219_v27 = vpop.permute.xlu0 %1218 }
 0x189   : > { %vm949_vm12 = vmor %vm629_vm3, %vm885_vm14  ;;  %3653 = vmatmul.msk.bf16.vlgmr.msra.gmra.mxu1 %vm3652_vm15, %v4253_v33  ;;  %vm1301_vm9 = vcmp.eq.s32.totalorder %v5035_v37, %v1219_v27  ;;  %vm1302_vm2 = vcmp.eq.s32.totalorder %v5050_v14, %v1219_v27  ;;  %1266 = vperm.xlu2 %3964, %v1177_v22   ;;  %vm1461_vm14 = vcmp.lt.s32.totalorder %v5220_v18, 15  ;;  %vm8075_vm3 = vcmp.eq.s32.totalorder %v5035_v37, %v4651_v63 }
 0x18a   : > { %vm950_vm0 = vmor %vm630_vm5, %vm886_vm11  ;;  %vm900_vm5 = vcmp.eq.s32.totalorder %v5050_v14, %v4924_v51  ;;  %v1462_v16 = vsel %vm1461_vm14, %v5220_v18, 15  ;;  %vm8074_vm14 = vcmp.eq.s32.totalorder %v5035_v37, %v4823_v3  ;;  %v8079_v22 = vmov 0 }
 0x18b   : > { %vm5319_vm7 = vmor %vm949_vm12, %vm1301_vm9  ;;  %vm643_vm12 = vcmp.eq.s32.totalorder %v5035_v37, %v4728_v52  ;;  %vm644_vm9 = vcmp.eq.s32.totalorder %v5050_v14, %v4728_v52  ;;  %v8086_v27 = vmov 0  ;;  %v8118_v51 = vmov 0 }
 0x18c   : > { %v8062_v17 = vsel %vm5319_vm7, 4294967295, %v8061_v17  ;;  %vm5328_vm11 = vmor %vm950_vm0, %vm1302_vm2  ;;  %1547 = vperm.xlu1 %3962, %v1484_v46   ;;  %vm8071_vm2 = vcmp.eq.s32.totalorder %v5035_v37, %v4942_v41  ;;  %v1497_v46 = vadd.s32 144, %v1462_v16  ;;  %v8130_v18 = vmov 0 }
 0x18d   : > { %v8064_v47 = vsel %vm5328_vm11, 4294967295, %v8063_v47  ;;  %vm5343_vm0 = vmor %vm643_vm12, %vm899_vm4  ;;  %vm8069_vm12 = vcmp.gt.s32.totalorder %v1020_v40, 0  ;;  %vm8070_vm4 = vcmp.eq.s32.totalorder %v5035_v37, %v4703_v6  ;;  %vm8081_vm11 = vcmp.eq.s32.totalorder %v5050_v14, %v4942_v41 }
 0x18e   : > { %vm5357_vm15 = vmor %vm644_vm9, %vm900_vm5  ;;  %v5364_v59 = vsel %vm8069_vm12, %v1020_v40, 0  ;;  %vm897_vm5 = vcmp.eq.s32.totalorder %v5035_v37, %v4716_v56  ;;  %vm650_vm9 = vcmp.eq.s32.totalorder %v5050_v14, %v4744_v0  ;;  %v8093_v40 = vmov 0 }
 0x18f   : > { %v1240_v32 = vpop.permute.xlu1 %1239  ;;  %vm5380_vm12 = vmor %vm8071_vm2, %vm8070_vm4  ;;  %vm8078_vm2 = vcmp.eq.s32.totalorder %v5050_v14, %v4935_v36 }
 0x190   : > { %vm5390_vm10 = vmor %vm8075_vm3, %vm8074_vm14  ;;  %v5394_v30 = vpop.permute.xlu2 %1553  ;;  %v1228_v6 = vpop.permute.xlu0 %1227  ;;  %vm8084_vm14 = vcmp.eq.s32.totalorder %v5035_v37, %v4763_v49  ;;  %vm1315_vm1 = vcmp.eq.s32.totalorder %v5035_v37, %v1240_v32 }
 0x191   : > { %vm5401_vm4 = vmor %vm650_vm9, %vm8078_vm2  ;;  %vm1307_vm9 = vcmp.eq.s32.totalorder %v5035_v37, %v1228_v6  ;;  %vm1308_vm2 = vcmp.eq.s32.totalorder %v5050_v14, %v1228_v6  ;;  %3966 = vset.pattern.permute.xlu2 %v7998_v61  ;;  %v8126_v6 = vmov 0 }
 0x192   : > { %v8080_v22 = vsel %vm5401_vm4, 4294967295, %v8079_v22  ;;  %vm5408_vm3 = vmor %vm8081_vm11, %vm892_vm8  ;;  %vm8088_vm8 = vcmp.eq.s32.totalorder %v5050_v14, %v4763_v49  ;;  %vm8089_vm11 = vcmp.eq.s32.totalorder %v5050_v14, %v4663_v48  ;;  %vm1147_vm4 = vcmp.lt.s32.totalorder %v5364_v59, 63  ;;  %1589 = vperm.xlu2 %3966, %v1498_v2  }
 0x193   : > { %vm5418_vm7 = vmor %vm8085_vm6, %vm8084_vm14  ;;  %vm8092_vm6 = vcmp.eq.s32.totalorder %v5035_v37, %v4962_v11  ;;  %v8095_v48 = vmov 0  ;;  %v1148_v50 = vsel %vm1147_vm4, %v5364_v59, 63  ;;  %vm1635_vm4 = vcmp.eq.s32.totalorder %v5035_v37, %v4849_v42 }
 0x194   : > { %v8087_v27 = vsel %vm5418_vm7, 4294967295, %v8086_v27  ;;  %vm5430_vm13 = vmor %vm8089_vm11, %vm8088_vm8  ;;  %vm610_vm7 = vcmp.eq.s32.totalorder %v5050_v14, %v4651_v63  ;;  %v8100_v63 = vmov 0  ;;  %1586 = vperm.xlu1 %3962, %v1497_v46   ;;  %v1180_v2 = vadd.s32 80, %v1148_v50 }
 0x195   : > { %vm5437_vm14 = vmor %vm8092_vm6, %vm897_vm5  ;;  %vm8097_vm6 = vcmp.eq.s32.totalorder %v5050_v14, %v4823_v3  ;;  %vm8110_vm5 = vcmp.eq.s32.totalorder %v5035_v37, %v4843_v13  ;;  %v8153_v46 = vmov 0  ;;  %v8163_v3 = vmov 0 }
 0x196   : > { %v8094_v40 = vsel %vm5437_vm14, 4294967295, %v8093_v40  ;;  %vm5449_vm11 = vmor %vm5380_vm12, %vm1307_vm9  ;;  %vm1145_vm12 = vcmp.lt.s32.totalorder %v5042_v20, 63  ;;  %vm8107_vm9 = vcmp.eq.s32.totalorder %v5050_v14, %v4962_v11  ;;  %v8112_v11 = vmov 0 }
 0x197   : > { %v8096_v48 = vsel %vm5449_vm11, 4294967295, %v8095_v48  ;;  %vm5458_vm14 = vmor %vm610_vm7, %vm8097_vm6  ;;  %v5511_v16 = vpop.permute.xlu1 %1248  ;;  %v1146_v52 = vsel %vm1145_vm12, %v5042_v20, 63  ;;  %v8167_v50 = vmov 0 }
 0x198   : > { %vm5464_vm8 = vmor %vm5408_vm3, %vm1308_vm2  ;;  %vm898_vm3 = vcmp.eq.s32.totalorder %v5050_v14, %v4716_v56  ;;  %v1557_v20 = vpop.permute.xlu2 %1556  ;;  %vm8117_vm2 = vcmp.eq.s32.totalorder %v5035_v37, %v4673_v24  ;;  %v8173_v56 = vmov 0 }
 0x199   : > { %v8101_v63 = vsel %vm5464_vm8, 4294967295, %v8100_v63  ;;  %vm5477_vm6 = vmor %vm5343_vm0, %vm1315_vm1  ;;  %vm8104_vm1 = vcmp.eq.s32.totalorder %v5050_v14, %v1240_v32  ;;  %v1237_v32 = vpop.permute.xlu0 %1236 }
 0x19a   : > { %vm5494_vm0 = vmor %vm5357_vm15, %vm8104_vm1  ;;  %vm1636_vm15 = vcmp.eq.s32.totalorder %v5050_v14, %v4849_v42  ;;  %v8114_v42 = vmov 0  ;;  %vm614_vm1 = vcmp.eq.s32.totalorder %v5050_v14, %v4625_v7  ;;  %vm1313_vm11 = vcmp.eq.s32.totalorder %v5035_v37, %v1237_v32  ;;  %3968 = vset.pattern.permute.xlu2 %v8006_v53 }
 0x19b   : > { %vm5507_vm7 = vmor %vm8107_vm9, %vm898_vm3  ;;  %vm8111_vm9 = vcmp.eq.s32.totalorder %v5035_v37, %v4625_v7  ;;  %v8121_v7 = vmov 0  ;;  %1275 = vperm.xlu2 %3968, %v1180_v2  }
 0x19c   : > { %vm5526_vm3 = vmor %vm8111_vm9, %vm8110_vm5  ;;  %vm640_vm5 = vcmp.eq.s32.totalorder %v5050_v14, %v4673_v24  ;;  %vm8116_vm9 = vcmp.eq.s32.totalorder %v5035_v37, %v4863_v62  ;;  %v8123_v24 = vmov 0  ;;  %3967 = vset.pattern.permute.xlu1 %v8006_v53  ;;  %v8339_v53 = vld [vmem:[#allocation22_spill] sm:$0xff] }
 0x19d   : > { %v8113_v11 = vsel %vm5526_vm3, 4294967295, %v8112_v11  ;;  %vm5534_vm12 = vmor %vm5477_vm6, %vm1635_vm4  ;;  %vm8120_vm6 = vcmp.eq.s32.totalorder %v5035_v37, %v5023_v23  ;;  %vm1314_vm3 = vcmp.eq.s32.totalorder %v5050_v14, %v1237_v32 }
 0x19e   : > { %v8115_v42 = vsel %vm5534_vm12, 4294967295, %v8114_v42  ;;  %vm5548_vm8 = vmor %vm8117_vm2, %vm8116_vm9  ;;  %vm8125_vm2 = vcmp.eq.s32.totalorder %v5050_v14, %v4863_v62  ;;  %v8209_v62 = vld [vmem:[#allocation33_spill] sm:$0xff] }
 0x19f   : > { %v8119_v51 = vsel %vm5548_vm8, 4294967295, %v8118_v51  ;;  %vm5557_vm4 = vmor %vm5390_vm10, %vm8120_vm6  ;;  %vm8128_vm10 = vcmp.eq.s32.totalorder %v5035_v37, %v4958_v19  ;;  %vm8129_vm6 = vnez %v8087_v27  ;;  %v1179_v27 = vadd.s32 80, %v1146_v52 }
 0x1a0   : > { %v8122_v7 = vsel %vm5557_vm4, 4294967295, %v8121_v7  ;;  %vm5565_vm12 = vmor %vm5494_vm0, %vm1636_vm15  ;;  %vm1282_vm0 = vcmp.eq.s32.totalorder %v5050_v14, %v5023_v23  ;;  %vm8132_vm15 = vcmp.eq.s32.totalorder %v5050_v14, %v4843_v13  ;;  %v1509_v41 = vpop.permute.xlu1 %1508  ;;  %v8220_v23 = vmov 0  ;;  %v8313_v13 = vld [vmem:[#allocation37_spill] sm:$0xff] }
 0x1a1   : > { %v8124_v24 = vsel %vm5565_vm12, 4294967295, %v8123_v24  ;;  %vm5572_vm9 = vmor %vm640_vm5, %vm8125_vm2  ;;  %vm8135_vm5 = vcmp.eq.s32.totalorder %v5050_v14, %v5511_v16  ;;  %vm8136_vm2 = vnez %v8080_v22  ;;  %v8147_v22 = vmov 0  ;;  %1272 = vperm.xlu1 %3967, %v1179_v27  }
 0x1a2   : > { %v8127_v6 = vsel %vm5572_vm9, 4294967295, %v8126_v6  ;;  %vm5581_vm4 = vmor %vm8129_vm6, %vm8128_vm10  ;;  %vm1633_vm10 = vcmp.eq.s32.totalorder %v5035_v37, %v1557_v20  ;;  %vm8139_vm6 = vcmp.eq.s32.totalorder %v5050_v14, %v4958_v19  ;;  %vm616_vm12 = vcmp.eq.s32.totalorder %v5050_v14, %v4632_v44  ;;  %v8218_v19 = vld [vmem:[#allocation35_spill] sm:$0xff] }
 0x1a3   : > { %v8131_v18 = vsel %vm5581_vm4, 4294967295, %v8130_v18  ;;  %vm5590_vm8 = vmor %vm614_vm1, %vm8132_vm15  ;;  %vm8142_vm15 = vnez %v8094_v40  ;;  %v5687_v40 = vpop.permute.xlu2 %1523  ;;  %v8214_v27 = vmov 0 }
 0x1a4   : > { %vm5599_vm9 = vmor %vm8136_vm2, %vm8135_vm5  ;;  %vm893_vm5 = vcmp.eq.s32.totalorder %v5035_v37, %v4910_v54  ;;  %vm615_vm2 = vcmp.eq.s32.totalorder %v5035_v37, %v4632_v44 }
 0x1a5   : > { %v8138_v39 = vsel %vm5599_vm9, 4294967295, %v8137_v39  ;;  %vm5609_vm1 = vmor %vm5430_vm13, %vm8139_vm6  ;;  %vm1601_vm13 = vcmp.eq.s32.totalorder %v5035_v37, %v1509_v41 }
 0x1a6   : > { %vm1377_vm4 = vmor %vm8142_vm15, %vm1313_vm11  ;;  %vm894_vm11 = vcmp.eq.s32.totalorder %v5050_v14, %v4910_v54  ;;  %vm637_vm15 = vcmp.eq.s32.totalorder %v5035_v37, %v4712_v34  ;;  %v8158_v54 = vmov 0 }
 0x1a7   : > { %vm5621_vm9 = vmor %vm5507_vm7, %vm1314_vm3  ;;  %vm8152_vm7 = vcmp.eq.s32.totalorder %v5050_v14, %v1557_v20  ;;  %v8193_v20 = vmov 0 }
 0x1a8   : > { %vm5631_vm6 = vmor %vm5458_vm14, %vm1282_vm0  ;;  %vm1602_vm14 = vcmp.eq.s32.totalorder %v5050_v14, %v1509_v41  ;;  %v1551_v32 = vpop.permute.xlu1 %1550  ;;  %v8235_v41 = vmov 0 }
 0x1a9   : > { %vm5637_vm3 = vmor %vm1377_vm4, %vm1633_vm10  ;;  %vm638_vm4 = vcmp.eq.s32.totalorder %v5050_v14, %v4712_v34  ;;  %v8155_v34 = vmov 0  ;;  %3969 = vset.pattern.permute.xlu1 %v7998_v61  ;;  %v8196_v61 = vmov 0 }
 0x1aa   : > { %v8148_v22 = vsel %vm5637_vm3, 4294967295, %v8147_v22  ;;  %vm5656_vm10 = vmor %vm637_vm15, %vm893_vm5  ;;  %vm8157_vm5 = vcmp.eq.s32.totalorder %v5035_v37, %v4783_v10 }
 0x1ab   : > { %vm5666_vm0 = vmor %vm5621_vm9, %vm8152_vm7  ;;  %vm8162_vm7 = vnez %v8113_v11  ;;  %v8191_v11 = vld [vmem:[#allocation40_spill] sm:$0xff]  ;;  %v5833_v2 = vpop.permute.xlu2 %1526 }
 0x1ac   : > { %v8154_v46 = vsel %vm5666_vm0, 4294967295, %v8153_v46  ;;  %vm5670_vm3 = vmor %vm638_vm4, %vm894_vm11  ;;  %vm8160_vm11 = vcmp.lt.s32.totalorder %v5364_v59, 15  ;;  %vm8166_vm4 = vnez %v8119_v51  ;;  %v8200_v51 = vld [vmem:[#allocation25_spill] sm:$0xff] }
 0x1ad   : > { %v8156_v34 = vsel %vm5670_vm3, 4294967295, %v8155_v34  ;;  %vm5677_vm15 = vmor %vm615_vm2, %vm8157_vm5  ;;  %v1468_v49 = vsel %vm8160_vm11, %v5364_v59, 15  ;;  %vm8161_vm5 = vcmp.eq.s32.totalorder %v5035_v37, %v5060_v5  ;;  %vm1604_vm11 = vcmp.eq.s32.totalorder %v5050_v14, %v5300_v15  ;;  %v5710_v59 = vpop.permute.xlu0 %1245 }
 0x1ae   : > { %v8159_v54 = vsel %vm5677_vm15, 4294967295, %v8158_v54  ;;  %vm5703_vm9 = vmor %vm8162_vm7, %vm8161_vm5  ;;  %vm8165_vm2 = vcmp.eq.s32.totalorder %v5035_v37, %v5097_v25  ;;  %vm8169_vm7 = vnez %v8122_v7  ;;  %vm8180_vm3 = vnez %v8131_v18 }
 0x1af   : > { %v8164_v3 = vsel %vm5703_vm9, 4294967295, %v8163_v3  ;;  %vm5717_vm0 = vmor %vm8166_vm4, %vm8165_vm2  ;;  %vm8172_vm9 = vcmp.eq.s32.totalorder %v5050_v14, %v5060_v5  ;;  %vm8176_vm4 = vnez %v8127_v6  ;;  %v1500_v44 = vadd.s32 144, %v1468_v49 }
 0x1b0   : > { %v8168_v50 = vsel %vm5717_vm0, 4294967295, %v8167_v50  ;;  %vm5723_vm5 = vmor %vm8169_vm7, %vm1601_vm13  ;;  %vm8175_vm13 = vcmp.eq.s32.totalorder %v5050_v14, %v5097_v25  ;;  %vm8179_vm0 = vcmp.eq.s32.totalorder %v5035_v37, %v5300_v15  ;;  %v8186_v15 = vld [vmem:[#allocation38_spill] sm:$0xff]  ;;  %v8203_v7 = vmov 0  ;;  %v1518_v52 = vpop.permute.xlu1 %1517 }
 0x1b1   : > { %vm5736_vm2 = vmor %vm5590_vm8, %vm8172_vm9  ;;  %1595 = vperm.xlu1 %3969, %v1500_v44   ;;  %v8254_v5 = vmov 0  ;;  %v8301_v6 = vmov 0 }
 0x1b2   : > { %v8174_v56 = vsel %vm5736_vm2, 4294967295, %v8173_v56  ;;  %vm5745_vm7 = vmor %vm8176_vm4, %vm8175_vm13  ;;  %vm8181_vm2 = vcmp.eq.s32.totalorder %v5050_v14, %v4783_v10  ;;  %vm1309_vm4 = vcmp.eq.s32.totalorder %v5035_v37, %v5291_v55  ;;  %v8261_v10 = vld [vmem:[#allocation45_spill] sm:$0xff] }
 0x1b3   : > { %vm1667_vm8 = vmor %vm8180_vm3, %vm8179_vm0  ;;  %vm619_vm3 = vcmp.eq.s32.totalorder %v5035_v37, %v4675_v58  ;;  %vm8192_vm0 = vcmp.eq.s32.totalorder %v5050_v14, %v4861_v21  ;;  %v5995_v44 = vpop.permute.xlu2 %1568 }
 0x1b4   : > { %vm5760_vm15 = vmor %vm616_vm12, %vm8181_vm2  ;;  %vm620_vm2 = vcmp.eq.s32.totalorder %v5050_v14, %v4675_v58  ;;  %v8190_v58 = vld [vmem:[#allocation21_spill] sm:$0xff] }
 0x1b5   : > { %vm5766_vm13 = vmor %vm5609_vm1, %vm1604_vm11  ;;  %vm8187_vm11 = vcmp.eq.s32.totalorder %v5035_v37, %v4861_v21  ;;  %v5860_v18 = vpop.permute.xlu0 %1254  ;;  %v8289_v21 = vmov 0 }
 0x1b6   : > { %vm3622_vm12 = vmpackc.low %vm1667_vm8, %vm5723_vm5  ;;  %vm873_vm8 = vcmp.eq.s32.totalorder %v5035_v37, %v8190_v58 }
 0x1b7   : > { %vm5785_vm9 = vmor %vm619_vm3, %vm8187_vm11  ;;  %3623 = vmatmul.msk.bf16.gmra.mxu0 %vm3622_vm12, %v4253_v33  ;;  %vm1629_vm3 = vcmp.eq.s32.totalorder %v5035_v37, %v1551_v32 }
 0x1b8   : > { %vm1666_vm5 = vmor %vm5631_vm6, %vm1602_vm14  ;;  %vm8195_vm14 = vcmp.eq.s32.totalorder %v5035_v37, %v8186_v15 }
 0x1b9   : > { %vm5806_vm12 = vmor %vm620_vm2, %vm8192_vm0  ;;  %vm874_vm2 = vcmp.eq.s32.totalorder %v5050_v14, %v8190_v58  ;;  %v8264_v58 = vmov 0 }
 0x1ba   : > { %v8194_v20 = vsel %vm5806_vm12, 4294967295, %v8193_v20  ;;  %vm3654_vm6 = vmpackc.low %vm5766_vm13, %vm1666_vm5  ;;  %vm663_vm5 = vcmp.eq.s32.totalorder %v5035_v37, %v8200_v51 }
 0x1bb   : > { %vm5815_vm1 = vmor %vm8195_vm14, %vm873_vm8  ;;  %3655 = vmatmul.msk.bf16.gmra.mxu1 %vm3654_vm6, %v4253_v33  ;;  %vm8205_vm6 = vcmp.eq.s32.totalorder %v5050_v14, %v5291_v55  ;;  %vm8206_vm14 = vnez %v8156_v34  ;;  %v8211_v55 = vmov 0  ;;  %v8229_v34 = vmov 0 }
 0x1bc   : > { %v8197_v61 = vsel %vm5815_vm1, 4294967295, %v8196_v61  ;;  %vm5826_vm0 = vmor %vm5656_vm10, %vm1309_vm4  ;;  %vm8201_vm10 = vcmp.eq.s32.totalorder %v5035_v37, %v4980_v45  ;;  %vm8202_vm4 = vnez %v8159_v54  ;;  %vm1288_vm1 = vcmp.eq.s32.totalorder %v5050_v14, %v4980_v45  ;;  %v8224_v45 = vld [vmem:[#allocation19_spill] sm:$0xff] }
 0x1bd   : > { %vm5844_vm8 = vmor %vm8202_vm4, %vm8201_vm10  ;;  %vm664_vm10 = vcmp.eq.s32.totalorder %v5050_v14, %v8200_v51  ;;  %v8233_v54 = vld [vmem:[#allocation43_spill] sm:$0xff]  ;;  %v1270_v25 = vpop.permute.xlu0 %1269 }
 0x1be   : > { %v8204_v7 = vsel %vm5844_vm8, 4294967295, %v8203_v7  ;;  %vm5853_vm13 = vmor %vm8206_vm14, %vm8205_vm6  ;;  %vm8210_vm8 = vcmp.eq.s32.totalorder %v5050_v14, %v8186_v15  ;;  %vm8213_vm14 = vcmp.eq.s32.totalorder %v5035_v37, %v8191_v11 }
 0x1bf   : > { %vm5869_vm6 = vmor %vm8210_vm8, %vm874_vm2  ;;  %vm1605_vm8 = vcmp.eq.s32.totalorder %v5035_v37, %v8218_v19  ;;  %vm621_vm2 = vcmp.eq.s32.totalorder %v5035_v37, %v8224_v45 }
 0x1c0   : > { %v8212_v55 = vsel %vm5869_vm6, 4294967295, %v8211_v55  ;;  %vm5876_vm11 = vmor %vm663_vm5, %vm8213_vm14  ;;  %vm8219_vm5 = vcmp.eq.s32.totalorder %v5050_v14, %v8191_v11  ;;  %v8403_v11 = vmov 0 }
 0x1c1   : > { %v8215_v27 = vsel %vm5876_vm11, 4294967295, %v8214_v27  ;;  %vm5884_vm4 = vmor %vm5826_vm0, %vm1629_vm3  ;;  %vm8222_vm3 = vcmp.eq.s32.totalorder %v5035_v37, %v5394_v30  ;;  %vm8223_vm0 = vnez %v8168_v50  ;;  %vm8228_vm11 = vnez %v8164_v3  ;;  %v8244_v50 = vld [vmem:[#allocation26_spill] sm:$0xff] }
 0x1c2   : > { %vm5895_vm14 = vmor %vm664_vm10, %vm8219_vm5  ;;  %vm8225_vm10 = vcmp.eq.s32.totalorder %v5050_v14, %v5394_v30  ;;  %v8231_v30 = vmov 0  ;;  %v8242_v3 = vmov 0 }
 0x1c3   : > { %v8221_v23 = vsel %vm5895_vm14, 4294967295, %v8220_v23  ;;  %vm1695_vm6 = vmor %vm8223_vm0, %vm8222_vm3  ;;  %vm622_vm3 = vcmp.eq.s32.totalorder %v5050_v14, %v8224_v45  ;;  %vm1606_vm0 = vcmp.eq.s32.totalorder %v5050_v14, %v8218_v19  ;;  %v8314_v19 = vmov 0 }
 0x1c4   : > { %vm5914_vm5 = vmor %vm5745_vm7, %vm8225_vm10  ;;  %vm647_vm7 = vcmp.eq.s32.totalorder %v5035_v37, %v8233_v54  ;;  %vm1292_vm10 = vcmp.eq.s32.totalorder %v5050_v14, %v5095_v60  ;;  %v8325_v45 = vmov 0 }
 0x1c5   : > { %vm5920_vm14 = vmor %vm8228_vm11, %vm1605_vm8  ;;  %vm8234_vm11 = vcmp.eq.s32.totalorder %v5035_v37, %v8209_v62  ;;  %v1563_v51 = vpop.permute.xlu0 %1562 }
 0x1c6   : > { %v8230_v34 = vsel %vm5920_vm14, 4294967295, %v8229_v34  ;;  %vm5930_vm12 = vmor %vm5760_vm15, %vm1288_vm1  ;;  %vm8237_vm15 = vcmp.eq.s32.totalorder %v5050_v14, %v8209_v62  ;;  %v8305_v62 = vmov 0 }
 0x1c7   : > { %v8232_v30 = vsel %vm5930_vm12, 4294967295, %v8231_v30  ;;  %vm5939_vm8 = vmor %vm621_vm2, %vm8234_vm11  ;;  %vm1289_vm12 = vcmp.eq.s32.totalorder %v5035_v37, %v5167_v35  ;;  %vm8240_vm2 = vcmp.eq.s32.totalorder %v5050_v14, %v1551_v32  ;;  %v8292_v32 = vmov 0 }
 0x1c8   : > { %v8236_v41 = vsel %vm5939_vm8, 4294967295, %v8235_v41  ;;  %vm3636_vm14 = vmpackc.low %vm1695_vm6, %vm5884_vm4  ;;  %vm8241_vm8 = vnez %v8174_v56  ;;  %vm903_vm6 = vcmp.eq.s32.totalorder %v5035_v37, %v8244_v50  ;;  %v8248_v56 = vmov 0 }
 0x1c9   : > { %vm5950_vm1 = vmor %vm622_vm3, %vm8237_vm15  ;;  %3637 = vmatmul.msk.bf16.vlgmr.msra.gmra.mxu2 %vm3636_vm14, %v4253_v33  ;;  %vm8245_vm3 = vcmp.eq.s32.totalorder %v5035_v37, %v5095_v60  ;;  %vm8250_vm15 = vnez %v8194_v20  ;;  %v8251_v60 = vmov 0  ;;  %v8282_v20 = vmov 0 }
 0x1ca   : > { %vm1694_vm11 = vmor %vm5853_vm13, %vm8240_vm2 }
 0x1cb   : > { %vm5963_vm4 = vmor %vm8241_vm8, %vm1606_vm0  ;;  %vm905_vm0 = vcmp.eq.s32.totalorder %v5035_v37, %v4935_v36  ;;  %v8270_v36 = vmov 0 }
 0x1cc   : > { %v8243_v3 = vsel %vm5963_vm4, 4294967295, %v8242_v3  ;;  %vm5974_vm14 = vmor %vm5785_vm9, %vm8245_vm3  ;;  %vm648_vm3 = vcmp.eq.s32.totalorder %v5050_v14, %v8233_v54  ;;  %v8347_v54 = vmov 0 }
 0x1cd   : > { %v8247_v26 = vsel %vm5974_vm14, 4294967295, %v8246_v26  ;;  %vm3668_vm13 = vmpackc.low %vm5914_vm5, %vm1694_vm11  ;;  %vm1607_vm11 = vcmp.eq.s32.totalorder %v5035_v37, %v1518_v52  ;;  %vm8256_vm5 = vnez %v8204_v7  ;;  %vm8266_vm14 = vnez %v8215_v27  ;;  %v8312_v27 = vld [vmem:[#allocation20_spill] sm:$0xff] }
 0x1ce   : > { %vm5982_vm8 = vmor %vm647_vm7, %vm903_vm6  ;;  %3669 = vmatmul.msk.bf16.vlgmr.msra.gmra.mxu3 %vm3668_vm13, %v4253_v33  ;;  %vm8253_vm7 = vnez %v8197_v61  ;;  %vm649_vm6 = vcmp.eq.s32.totalorder %v5035_v37, %v4744_v0  ;;  %vm1335_vm13 = vcmp.eq.s32.totalorder %v5035_v37, %v1270_v25  ;;  %v8259_v0 = vmov 0 }
 0x1cf   : > { %v8249_v56 = vsel %vm5982_vm8, 4294967295, %v8248_v56  ;;  %vm5988_vm2 = vmor %vm8250_vm15, %vm1292_vm10  ;;  %vm1336_vm15 = vcmp.eq.s32.totalorder %v5050_v14, %v1270_v25  ;;  %vm1608_vm8 = vcmp.eq.s32.totalorder %v5050_v14, %v1518_v52  ;;  %v8286_v61 = vmov 0 }
 0x1d0   : > { %v8252_v60 = vsel %vm5988_vm2, 4294967295, %v8251_v60  ;;  %vm6004_vm10 = vmor %vm8253_vm7, %vm1289_vm12  ;;  %vm879_vm12 = vcmp.eq.s32.totalorder %v5035_v37, %v4679_v29  ;;  %vm8262_vm2 = vcmp.eq.s32.totalorder %v5050_v14, %v5167_v35  ;;  %v8267_v29 = vmov 0 }
 0x1d1   : > { %v8255_v5 = vsel %vm6004_vm10, 4294967295, %v8254_v5  ;;  %vm6017_vm9 = vmor %vm8256_vm5, %vm1607_vm11  ;;  %vm1293_vm10 = vcmp.eq.s32.totalorder %v5035_v37, %v8261_v10  ;;  %vm8263_vm5 = vnez %v8212_v55  ;;  %v8273_v35 = vmov 0 }
 0x1d2   : > { %vm6026_vm7 = vmor %vm649_vm6, %vm905_vm0  ;;  %vm904_vm6 = vcmp.eq.s32.totalorder %v5050_v14, %v8244_v50  ;;  %v8295_v7 = vmov 0  ;;  %v8354_v50 = vmov 0  ;;  %v8383_v25 = vmov 0 }
 0x1d3   : > { %v8260_v0 = vsel %vm6026_vm7, 4294967295, %v8259_v0  ;;  %vm6037_vm11 = vmor %vm8263_vm5, %vm8262_vm2  ;;  %vm8269_vm7 = vcmp.eq.s32.totalorder %v5035_v37, %v4916_v31  ;;  %vm1294_vm2 = vcmp.eq.s32.totalorder %v5050_v14, %v8261_v10  ;;  %vm8272_vm5 = vnez %v8221_v23 }
 0x1d4   : > { %v8265_v58 = vsel %vm6037_vm11, 4294967295, %v8264_v58  ;;  %vm6044_vm0 = vmor %vm8266_vm14, %vm1335_vm13  ;;  %vm1611_vm13 = vcmp.eq.s32.totalorder %v5035_v37, %v5687_v40  ;;  %v8406_v31 = vmov 0 }
 0x1d5   : > { %v8268_v29 = vsel %vm6044_vm0, 4294967295, %v8267_v29  ;;  %vm6053_vm4 = vmor %vm8269_vm7, %vm879_vm12  ;;  %vm8277_vm12 = vnez %v8230_v34  ;;  %vm8278_vm0 = vnez %v8236_v41  ;;  %v8341_v34 = vmov 0 }
 0x1d6   : > { %v8271_v36 = vsel %vm6053_vm4, 4294967295, %v8270_v36  ;;  %vm6061_vm11 = vmor %vm8272_vm5, %vm1336_vm15  ;;  %vm1319_vm15 = vcmp.eq.s32.totalorder %v5035_v37, %v5710_v59  ;;  %v8350_v41 = vmov 0 }
 0x1d7   : > { %v8274_v35 = vsel %vm6061_vm11, 4294967295, %v8273_v35  ;;  %vm6065_vm14 = vmor %vm648_vm3, %vm904_vm6  ;;  %vm1612_vm3 = vcmp.eq.s32.totalorder %v5050_v14, %v5687_v40  ;;  %vm8281_vm6 = vnez %v8232_v30  ;;  %v1521_v40 = vpop.permute.xlu1 %1520  ;;  %v8344_v30 = vmov 0 }
 0x1d8   : > { %vm3624_vm7 = vmpackc.low %vm6017_vm9, %vm8277_vm12  ;;  %vm8285_vm12 = vnez %v8247_v26  ;;  %v8360_v26 = vmov 0 }
 0x1d9   : > { %vm6077_vm4 = vmor %vm8278_vm0, %vm1293_vm10  ;;  %3625 = vmatmul.msk.bf16.gmra.mxu0 %vm3624_vm7, %v4253_v33  ;;  %vm8284_vm10 = vnez %v8243_v3  ;;  %vm1609_vm7 = vcmp.eq.s32.totalorder %v5035_v37, %v1521_v40  ;;  %v8352_v3 = vmov 0 }
 0x1da   : > { %vm1672_vm5 = vmor %vm8281_vm6, %vm1608_vm8  ;;  %vm1321_vm8 = vcmp.eq.s32.totalorder %v5035_v37, %v5511_v16  ;;  %vm1610_vm6 = vcmp.eq.s32.totalorder %v5050_v14, %v1521_v40  ;;  %v6121_v16 = vpop.permute.xlu2 %1535  ;;  %v8419_v40 = vld [vmem:[#allocation41_spill] sm:$0xff] }
 0x1db   : > { %vm6090_vm9 = vmor %vm5950_vm1, %vm1294_vm2  ;;  %vm8288_vm1 = vnez %v8249_v56 }
 0x1dc   : > { %v8283_v20 = vsel %vm6090_vm9, 4294967295, %v8282_v20  ;;  %vm3656_vm0 = vmpackc.low %vm1672_vm5, %vm8284_vm10  ;;  %vm8291_vm5 = vnez %v8252_v60 }
 0x1dd   : > { %3657 = vmatmul.msk.bf16.gmra.mxu1 %vm3656_vm0, %v4253_v33  ;;  %vm6099_vm11 = vmor %vm8285_vm12, %vm1611_vm13  ;;  %vm1295_vm13 = vcmp.eq.s32.totalorder %v5035_v37, %v5239_v4  ;;  %vm1320_vm12 = vcmp.eq.s32.totalorder %v5050_v14, %v5710_v59  ;;  %v8303_v59 = vld [vmem:[#allocation34_spill] sm:$0xff] }
 0x1de   : > { %v8287_v61 = vsel %vm6099_vm11, 4294967295, %v8286_v61  ;;  %vm6107_vm2 = vmor %vm8288_vm1, %vm1319_vm15  ;;  %vm8294_vm15 = vnez %v8255_v5  ;;  %vm8297_vm1 = vnez %v8260_v0  ;;  %v8379_v5 = vmov 0 }
 0x1df   : > { %v8290_v21 = vsel %vm6107_vm2, 4294967295, %v8289_v21  ;;  %vm6115_vm10 = vmor %vm8291_vm5, %vm1612_vm3  ;;  %vm8304_vm3 = vnez %v8271_v36  ;;  %v1566_v23 = vpop.permute.xlu1 %1565  ;;  %v8392_v0 = vmov 0  ;;  %v8400_v36 = vmov 0 }
 0x1e0   : > { %v8293_v32 = vsel %vm6115_vm10, 4294967295, %v8292_v32  ;;  %vm6125_vm0 = vmor %vm8294_vm15, %vm1609_vm7  ;;  %vm1613_vm7 = vcmp.eq.s32.totalorder %v5035_v37, %v5833_v2  ;;  %vm8300_vm15 = vnez %v8265_v58  ;;  %vm8335_vm10 = vcmp.eq.s32.totalorder %v5050_v14, %v1563_v51 }
 0x1e1   : > { %v8296_v7 = vsel %vm6125_vm0, 4294967295, %v8295_v7  ;;  %vm6137_vm5 = vmor %vm8297_vm1, %vm1321_vm8  ;;  %vm8310_vm8 = vnez %v8148_v22  ;;  %v8318_v22 = vmov 0 }
 0x1e2   : > { %vm6145_vm2 = vmor %vm8300_vm15, %vm1610_vm6  ;;  %vm627_vm6 = vcmp.eq.s32.totalorder %v5035_v37, %v8312_v27  ;;  %v6282_v49 = vpop.permute.xlu2 %1574 }
 0x1e3   : > { %v8302_v6 = vsel %vm6145_vm2, 4294967295, %v8301_v6  ;;  %vm6153_vm0 = vmor %vm8304_vm3, %vm1295_vm13  ;;  %vm8309_vm3 = vnez %v8115_v42  ;;  %v8316_v42 = vld [vmem:[#allocation36_spill] sm:$0xff]  ;;  %vm8323_vm13 = vcmp.eq.s32.totalorder %v5035_v37, %v1563_v51  ;;  %vm8324_vm2 = vnez %v8038_v38 }
 0x1e4   : > { %v8306_v62 = vsel %vm6153_vm0, 4294967295, %v8305_v62  ;;  %vm6168_vm9 = vmor %vm6065_vm14, %vm1320_vm12  ;;  %vm628_vm12 = vcmp.eq.s32.totalorder %v5050_v14, %v8312_v27  ;;  %v8333_v38 = vmov 0  ;;  %vm8346_vm0 = vcmp.eq.s32.totalorder %v5050_v14, %v8313_v13  ;;  %v8453_v27 = vld [vmem:[#allocation24_spill] sm:$0xff] }
 0x1e5   : > { %vm8311_vm1 = vmpackc.low %vm8309_vm3, %vm8310_vm8  ;;  %v8434_v51 = vmov 0 }
 0x1e6   : > { %3639 = vmatmul.msk.bf16.gmra.mxu2 %vm8311_vm1, %v4253_v33  ;;  %vm6185_vm14 = vmor %vm6077_vm4, %vm1613_vm7  ;;  %vm8317_vm1 = vcmp.eq.s32.totalorder %v5035_v37, %v8303_v59  ;;  %vm8320_vm4 = vnez %v8124_v24  ;;  %vm8321_vm7 = vnez %v8154_v46  ;;  %v8329_v24 = vmov 0  ;;  %v8331_v46 = vld [vmem:[#allocation23_spill] sm:$0xff] }
 0x1e7   : > { %v8315_v19 = vsel %vm6185_vm14, 4294967295, %v8314_v19  ;;  %vm6198_vm3 = vmor %vm627_vm6, %vm8317_vm1  ;;  %vm8327_vm6 = vcmp.eq.s32.totalorder %v5050_v14, %v5833_v2  ;;  %vm8328_vm1 = vnez %v8283_v20  ;;  %v8337_v2 = vmov 0  ;;  %v1252_v52 = vpop.permute.xlu1 %1251 }
 0x1e8   : > { %v8319_v22 = vsel %vm6198_vm3, 4294967295, %v8318_v22  ;;  %vm8322_vm15 = vmpackc.low %vm8320_vm4, %vm8321_vm7  ;;  %vm8332_vm4 = vcmp.eq.s32.totalorder %v5050_v14, %v8303_v59  ;;  %vm1641_vm14 = vcmp.eq.s32.totalorder %v5035_v37, %v5995_v44  ;;  %v8417_v20 = vmov 0  ;;  %v8452_v59 = vld [vmem:[#allocation39_spill] sm:$0xff] }
 0x1e9   : > { %3671 = vmatmul.msk.bf16.gmra.mxu3 %vm8322_vm15, %v4253_v33  ;;  %vm6212_vm8 = vmor %vm8324_vm2, %vm8323_vm13  ;;  %vm651_vm15 = vcmp.eq.s32.totalorder %v5035_v37, %v8331_v46  ;;  %vm1639_vm2 = vcmp.eq.s32.totalorder %v5035_v37, %v1566_v23  ;;  %vm1640_vm13 = vcmp.eq.s32.totalorder %v5050_v14, %v1566_v23 }
 0x1ea   : > { %v8326_v45 = vsel %vm6212_vm8, 4294967295, %v8325_v45  ;;  %vm6221_vm3 = vmor %vm8328_vm1, %vm8327_vm6  ;;  %vm8336_vm6 = vnez %v8042_v43  ;;  %v1530_v43 = vpop.permute.xlu0 %1529  ;;  %v1539_v15 = vpop.permute.xlu2 %1538 }
 0x1eb   : > { %v8330_v24 = vsel %vm6221_vm3, 4294967295, %v8329_v24  ;;  %vm6230_vm7 = vmor %vm628_vm12, %vm8332_vm4  ;;  %vm625_vm3 = vcmp.eq.s32.totalorder %v5035_v37, %v8339_v53  ;;  %vm652_vm12 = vcmp.eq.s32.totalorder %v5050_v14, %v8331_v46  ;;  %vm8340_vm4 = vcmp.eq.s32.totalorder %v5035_v37, %v8313_v13  ;;  %v8454_v13 = vld [vmem:[#allocation47_spill] sm:$0xff] }
 0x1ec   : > { %v8334_v38 = vsel %vm6230_vm7, 4294967295, %v8333_v38  ;;  %vm6240_vm1 = vmor %vm8336_vm6, %vm8335_vm10  ;;  %vm8343_vm10 = vnez %v8290_v21  ;;  %v8424_v21 = vmov 0 }
 0x1ed   : > { %v8338_v2 = vsel %vm6240_vm1, 4294967295, %v8337_v2  ;;  %vm6251_vm7 = vmor %vm651_vm15, %vm8340_vm4  ;;  %vm8349_vm15 = vcmp.eq.s32.totalorder %v5035_v37, %v8316_v42 }
 0x1ee   : > { %v8342_v34 = vsel %vm6251_vm7, 4294967295, %v8341_v34  ;;  %vm6259_vm6 = vmor %vm8343_vm10, %vm1639_vm2  ;;  %vm1615_vm7 = vcmp.eq.s32.totalorder %v5035_v37, %v1530_v43  ;;  %vm8357_vm2 = vnez %v8296_v7  ;;  %vm1642_vm10 = vcmp.eq.s32.totalorder %v5050_v14, %v5995_v44 }
 0x1ef   : > { %v8345_v30 = vsel %vm6259_vm6, 4294967295, %v8344_v30  ;;  %vm6266_vm11 = vmor %vm652_vm12, %vm8346_vm0  ;;  %vm1616_vm12 = vcmp.eq.s32.totalorder %v5050_v14, %v1530_v43  ;;  %vm8359_vm6 = vnez %v8306_v62  ;;  %vm8381_vm1 = vnez %v8342_v34  ;;  %v1533_v58 = vpop.permute.xlu1 %1532 }
 0x1f0   : > { %v8348_v54 = vsel %vm6266_vm11, 4294967295, %v8347_v54  ;;  %vm6273_vm4 = vmor %vm625_vm3, %vm8349_vm15  ;;  %vm882_vm3 = vcmp.eq.s32.totalorder %v5050_v14, %v8316_v42  ;;  %v8457_v42 = vld [vmem:[#allocation29_spill] sm:$0xff] }
 0x1f1   : > { %v8351_v41 = vsel %vm6273_vm4, 4294967295, %v8350_v41  ;;  %vm6286_vm0 = vmor %vm6168_vm9, %vm1640_vm13  ;;  %vm1299_vm9 = vcmp.eq.s32.totalorder %v5035_v37, %v5025_v9  ;;  %vm8356_vm13 = vnez %v8287_v61  ;;  %vm8371_vm4 = vnez %v8319_v22 }
 0x1f2   : > { %v8353_v3 = vsel %vm6286_vm0, 4294967295, %v8352_v3  ;;  %vm6299_vm15 = vmor %vm6137_vm5, %vm1641_vm14  ;;  %vm626_vm5 = vcmp.eq.s32.totalorder %v5050_v14, %v8339_v53  ;;  %vm1300_vm14 = vcmp.eq.s32.totalorder %v5050_v14, %v5025_v9  ;;  %vm8368_vm0 = vnez %v8060_v28  ;;  %v1572_v44 = vpop.permute.xlu0 %1571  ;;  %v1264_v7 = vpop.permute.xlu2 %1263  ;;  %v8473_v53 = vld [vmem:[#allocation30_spill] sm:$0xff] }
 0x1f3   : > { %v8355_v50 = vsel %vm6299_vm15, 4294967295, %v8354_v50  ;;  %vm8358_vm8 = vmpackc.low %vm8356_vm13, %vm8357_vm2  ;;  %v8369_v9 = vmov 0  ;;  %v8376_v28 = vmov 0  ;;  %v8421_v61 = vmov 0 }
 0x1f4   : > { %3627 = vmatmul.msk.bf16.gmra.mxu0 %vm8358_vm8, %v4253_v33  ;;  %vm6313_vm11 = vmor %vm8359_vm6, %vm1615_vm7  ;;  %vm8365_vm7 = vnez %v8293_v32  ;;  %vm8366_vm6 = vnez %v8302_v6  ;;  %v8426_v32 = vld [vmem:[#allocation28_spill] sm:$0xff]  ;;  %v8441_v6 = vmov 0  ;;  %v8458_v22 = vmov 0 }
 0x1f5   : > { %v8361_v26 = vsel %vm6313_vm11, 4294967295, %v8360_v26  ;;  %vm6327_vm2 = vmor %vm626_vm5, %vm882_vm3  ;;  %vm1297_vm3 = vcmp.eq.s32.totalorder %v5035_v37, %v5152_v8  ;;  %vm1643_vm5 = vcmp.eq.s32.totalorder %v5035_v37, %v1572_v44 }
 0x1f6   : > { %vm8367_vm13 = vmpackc.low %vm8365_vm7, %vm8366_vm6  ;;  %vm8378_vm6 = vnez %v8138_v39  ;;  %v8386_v39 = vmov 0 }
 0x1f7   : > { %3659 = vmatmul.msk.bf16.gmra.mxu1 %vm8367_vm13, %v4253_v33  ;;  %vm6339_vm15 = vmor %vm8368_vm0, %vm1616_vm12  ;;  %vm8375_vm0 = vnez %v8334_v38  ;;  %v8471_v38 = vld [vmem:[#allocation42_spill] sm:$0xff] }
 0x1f8   : > { %v8370_v9 = vsel %vm6339_vm15, 4294967295, %v8369_v9  ;;  %vm6345_vm8 = vmor %vm8371_vm4, %vm1299_vm9  ;;  %vm1323_vm4 = vcmp.eq.s32.totalorder %v5035_v37, %v1252_v52  ;;  %vm1324_vm9 = vcmp.eq.s32.totalorder %v5050_v14, %v1252_v52  ;;  %vm8385_vm15 = vnez %v8348_v54  ;;  %v8478_v54 = vld [vmem:[#allocation49_spill] sm:$0xff] }
 0x1f9   : > { %vm6357_vm12 = vmor %vm8375_vm0, %vm1300_vm14  ;;  %vm8382_vm14 = vnez %v8351_v41 }
 0x1fa   : > { %v8377_v28 = vsel %vm6357_vm12, 4294967295, %v8376_v28  ;;  %vm6365_vm13 = vmor %vm8378_vm6, %vm1642_vm10  ;;  %vm1644_vm12 = vcmp.eq.s32.totalorder %v5050_v14, %v1572_v44  ;;  %v1542_v10 = vpop.permute.xlu0 %1541  ;;  %v1584_v62 = vpop.permute.xlu2 %1583 }
 0x1fb   : > { %v8380_v5 = vsel %vm6365_vm13, 4294967295, %v8379_v5  ;;  %vm1387_vm7 = vmor %vm8381_vm1, %vm1323_vm4  ;;  %vm1298_vm1 = vcmp.eq.s32.totalorder %v5050_v14, %v5152_v8  ;;  %vm8388_vm4 = vnez %v8345_v30  ;;  %v8397_v8 = vmov 0 }
 0x1fc   : > { %vm6374_vm0 = vmor %vm8382_vm14, %vm1297_vm3  ;;  %vm8389_vm3 = vnez %v8326_v45  ;;  %vm8409_vm13 = vnez %v8315_v19  ;;  %vm8414_vm14 = vnez %v8330_v24  ;;  %v8455_v19 = vmov 0 }
 0x1fd   : > { %v8384_v25 = vsel %vm6374_vm0, 4294967295, %v8383_v25  ;;  %vm1388_vm11 = vmor %vm8385_vm15, %vm1324_vm9  ;;  %vm1620_vm9 = vcmp.eq.s32.totalorder %v5050_v14, %v6121_v16  ;;  %vm8394_vm0 = vnez %v8353_v3 }
 0x1fe   : > { %vm6381_vm10 = vmor %vm1387_vm7, %vm1643_vm5  ;;  %vm1619_vm5 = vcmp.eq.s32.totalorder %v5035_v37, %v6121_v16  ;;  %v8427_v16 = vld [vmem:[#allocation46_spill] sm:$0xff] }
 0x1ff   : > { %v8387_v39 = vsel %vm6381_vm10, 4294967295, %v8386_v39  ;;  %vm8390_vm6 = vmpackc.low %vm8388_vm4, %vm8389_vm3  ;;  %vm8395_vm4 = vnez %v8338_v2 }
 0x200   : > { %3641 = vmatmul.msk.bf16.gmra.mxu2 %vm8390_vm6, %v4253_v33  ;;  %vm6399_vm7 = vmor %vm1388_vm11, %vm1644_vm12  ;;  %vm1621_vm12 = vcmp.eq.s32.totalorder %v5035_v37, %v1539_v15 }
 0x201   : > { %v8393_v0 = vsel %vm6399_vm7, 4294967295, %v8392_v0  ;;  %vm8396_vm3 = vmpackc.low %vm8394_vm0, %vm8395_vm4  ;;  %vm8399_vm0 = vnez %v8377_v28 }
 0x202   : > { %3673 = vmatmul.msk.bf16.gmra.mxu3 %vm8396_vm3, %v4253_v33  ;;  %vm1362_vm11 = vmor %vm6327_vm2, %vm1298_vm1  ;;  %vm1617_vm3 = vcmp.eq.s32.totalorder %v5035_v37, %v1533_v58  ;;  %vm1618_vm2 = vcmp.eq.s32.totalorder %v5050_v14, %v1533_v58  ;;  %vm8402_vm1 = vnez %v8062_v17  ;;  %v8411_v17 = vmov 0  ;;  %v1267_v45 = vpop.permute.xlu2 %1266  ;;  %v1545_v2 = vpop.permute.xlu0 %1544 }
 0x203   : > { %vm6420_vm15 = vmor %vm6345_vm8, %vm1619_vm5  ;;  %vm8405_vm8 = vnez %v8384_v25  ;;  %v8499_v25 = vld [vmem:[#allocation48_spill] sm:$0xff] }
 0x204   : > { %v8398_v8 = vsel %vm6420_vm15, 4294967295, %v8397_v8  ;;  %vm6426_vm4 = vmor %vm8399_vm0, %vm1620_vm9  ;;  %vm1623_vm9 = vcmp.eq.s32.totalorder %v5035_v37, %v1542_v10  ;;  %vm8408_vm0 = vnez %v8361_v26 }
 0x205   : > { %v8401_v36 = vsel %vm6426_vm4, 4294967295, %v8400_v36  ;;  %vm6434_vm6 = vmor %vm8402_vm1, %vm1621_vm12  ;;  %vm653_vm12 = vcmp.eq.s32.totalorder %v5035_v37, %v8427_v16  ;;  %vm1326_vm4 = vcmp.eq.s32.totalorder %v5050_v14, %v5860_v18 }
 0x206   : > { %v8404_v11 = vsel %vm6434_vm6, 4294967295, %v8403_v11  ;;  %vm6440_vm5 = vmor %vm8405_vm8, %vm1617_vm3  ;;  %vm1622_vm3 = vcmp.eq.s32.totalorder %v5050_v14, %v1539_v15  ;;  %vm8413_vm8 = vnez %v8370_v9  ;;  %v8500_v15 = vld [vmem:[#allocation31_spill] sm:$0xff] }
 0x207   : > { %v8407_v31 = vsel %vm6440_vm5, 4294967295, %v8406_v31  ;;  %vm8410_vm7 = vmpackc.low %vm8408_vm0, %vm8409_vm13  ;;  %vm655_vm0 = vcmp.eq.s32.totalorder %v5035_v37, %v8426_v32  ;;  %vm1646_vm5 = vcmp.eq.s32.totalorder %v5050_v14, %v6282_v49 }
 0x208   : > { %3629 = vmatmul.msk.bf16.gmra.mxu0 %vm8410_vm7, %v4253_v33  ;;  %vm6455_vm1 = vmor %vm1362_vm11, %vm1618_vm2  ;;  %vm1624_vm7 = vcmp.eq.s32.totalorder %v5050_v14, %v1542_v10  ;;  %vm8416_vm11 = vnez %v8054_v12  ;;  %v1258_v12 = vpop.permute.xlu1 %1257 }
 0x209   : > { %v8412_v17 = vsel %vm6455_vm1, 4294967295, %v8411_v17  ;;  %vm8415_vm10 = vmpackc.low %vm8413_vm8, %vm8414_vm14  ;;  %vm8420_vm14 = vnez %v8064_v47  ;;  %v8433_v47 = vld [vmem:[#allocation27_spill] sm:$0xff] }
 0x20a   : > { %3661 = vmatmul.msk.bf16.gmra.mxu1 %vm8415_vm10, %v4253_v33  ;;  %vm6473_vm2 = vmor %vm8416_vm11, %vm1623_vm9  ;;  %vm911_vm10 = vcmp.eq.s32.totalorder %v5035_v37, %v8419_v40  ;;  %vm912_vm9 = vcmp.eq.s32.totalorder %v5050_v14, %v8419_v40  ;;  %vm8423_vm11 = vnez %v8056_v57  ;;  %v8428_v57 = vmov 0  ;;  %v1590_v3 = vpop.permute.xlu2 %1589 }
 0x20b   : > { %v8418_v20 = vsel %vm6473_vm2, 4294967295, %v8417_v20  ;;  %vm6485_vm8 = vmor %vm8420_vm14, %vm1622_vm3  ;;  %vm656_vm14 = vcmp.eq.s32.totalorder %v5050_v14, %v8426_v32  ;;  %vm8431_vm2 = vnez %v8355_v50  ;;  %vm909_vm3 = vcmp.eq.s32.totalorder %v5035_v37, %v8433_v47  ;;  %v2111_v50 = vpop.f32.mrf.mxu1 }
 0x20c   : > { %v8422_v61 = vsel %vm6485_vm8, 4294967295, %v8421_v61  ;;  %vm6493_vm13 = vmor %vm8423_vm11, %vm1624_vm7  ;;  %vm654_vm7 = vcmp.eq.s32.totalorder %v5050_v14, %v8427_v16  ;;  %vm8430_vm11 = vnez %v8387_v39 }
 0x20d   : > { %v8425_v21 = vsel %vm6493_vm13, 4294967295, %v8424_v21  ;;  %vm6507_vm6 = vmor %vm655_vm0, %vm911_vm10  ;;  %vm1325_vm0 = vcmp.eq.s32.totalorder %v5035_v37, %v5860_v18  ;;  %vm910_vm10 = vcmp.eq.s32.totalorder %v5050_v14, %v8433_v47 }
 0x20e   : > { %v8429_v57 = vsel %vm6507_vm6, 4294967295, %v8428_v57  ;;  %vm8432_vm1 = vmpackc.low %vm8430_vm11, %vm8431_vm2  ;;  %vm8437_vm2 = vnez %v8380_v5  ;;  %v8498_v5 = vld [vmem:[#allocation32_spill] sm:$0xff] }
 0x20f   : > { %vm6521_vm8 = vmor %vm656_vm14, %vm912_vm9  ;;  %vm1645_vm14 = vcmp.eq.s32.totalorder %v5035_v37, %v6282_v49 }
 0x210   : > { %3643 = vmatmul.msk.bf16.gmra.mxu2 %vm8432_vm1, %v4253_v33  ;;  %v8435_v51 = vsel %vm6521_vm8, 4294967295, %v8434_v51  ;;  %vm973_vm13 = vmor %vm653_vm12, %vm909_vm3  ;;  %vm8436_vm1 = vnez %v8393_v0  ;;  %vm1327_vm12 = vcmp.eq.s32.totalorder %v5035_v37, %v1258_v12  ;;  %vm1328_vm3 = vcmp.eq.s32.totalorder %v5050_v14, %v1258_v12  ;;  %v1578_v4 = vpop.permute.xlu1 %1577  ;;  %v1593_v0 = vpop.permute.xlu0 %1592 }
 0x211   : > { %vm8438_vm11 = vmpackc.low %vm8436_vm1, %vm8437_vm2 }
 0x212   : > { %3675 = vmatmul.msk.bf16.gmra.mxu3 %vm8438_vm11, %v4253_v33  ;;  %vm974_vm9 = vmor %vm654_vm7, %vm910_vm10  ;;  %vm8445_vm10 = vnez %v8407_v31  ;;  %v1276_v28 = vpop.permute.xlu2 %1275 }
 0x213   : > { %vm1389_vm8 = vmor %vm973_vm13, %vm1325_vm0  ;;  %vm8443_vm13 = vnez %v8429_v57  ;;  %vm1647_vm0 = vcmp.eq.s32.totalorder %v5035_v37, %v1578_v4  ;;  %v2113_v52 = vpop.f32.mrf.mxu1 }
 0x214   : > { %vm1390_vm15 = vmor %vm974_vm9, %vm1326_vm4  ;;  %vm8444_vm4 = vnez %v8398_v8  ;;  %vm8449_vm9 = vnez %v8412_v17 }
 0x215   : > { %vm6543_vm6 = vmor %vm1389_vm8, %vm1645_vm14  ;;  %vm8447_vm8 = vnez %v8435_v51 }
 0x216   : > { %vm6547_vm1 = vmor %vm1390_vm15, %vm1646_vm5  ;;  %vm1648_vm15 = vcmp.eq.s32.totalorder %v5050_v14, %v1578_v4  ;;  %vm8448_vm5 = vnez %v8401_v36 }
 0x217   : > { %v8442_v6 = vsel %vm6547_vm1, 4294967295, %v8441_v6  ;;  %vm1391_vm7 = vmor %vm8443_vm13, %vm1327_vm12 }
 0x218   : > { %vm8446_vm2 = vmpackc.low %vm8444_vm4, %vm8445_vm10  ;;  %vm8451_vm4 = vnez %v8442_v6  ;;  %v1261_v55 = vpop.permute.xlu1 %1260 }
 0x219   : > { %3631 = vmatmul.msk.bf16.gmra.mxu0 %vm8446_vm2, %v4253_v33  ;;  %vm1392_vm11 = vmor %vm8447_vm8, %vm1328_vm3  ;;  %vm913_vm3 = vcmp.eq.s32.totalorder %v5035_v37, %v8452_v59  ;;  %vm914_vm2 = vcmp.eq.s32.totalorder %v5050_v14, %v8452_v59  ;;  %vm660_vm8 = vcmp.eq.s32.totalorder %v5050_v14, %v8454_v13 }
 0x21a   : > { %vm8450_vm14 = vmpackc.low %vm8448_vm5, %vm8449_vm9  ;;  %vm1331_vm5 = vcmp.eq.s32.totalorder %v5035_v37, %v1264_v7  ;;  %vm916_vm9 = vcmp.eq.s32.totalorder %v5050_v14, %v8457_v42 }
 0x21b   : > { %3663 = vmatmul.msk.bf16.gmra.mxu1 %vm8450_vm14, %v4253_v33  ;;  %vm1711_vm12 = vmor %vm1391_vm7, %vm1647_vm0  ;;  %vm657_vm7 = vcmp.eq.s32.totalorder %v5035_v37, %v8453_v27  ;;  %vm658_vm0 = vcmp.eq.s32.totalorder %v5050_v14, %v8453_v27 }
 0x21c   : > { %vm3644_vm13 = vmpackc.low %vm1711_vm12, %vm6543_vm6  ;;  %vm659_vm6 = vcmp.eq.s32.totalorder %v5035_v37, %v8454_v13  ;;  %vm1332_vm12 = vcmp.eq.s32.totalorder %v5050_v14, %v1264_v7 }
 0x21d   : > { %vm1712_vm1 = vmor %vm1392_vm11, %vm1648_vm15  ;;  %vm915_vm11 = vcmp.eq.s32.totalorder %v5035_v37, %v8457_v42 }
 0x21e   : > { %vm3676_vm10 = vmpackc.low %vm1712_vm1, %vm8451_vm4  ;;  %vm1651_vm4 = vcmp.eq.s32.totalorder %v5035_v37, %v1584_v62 }
 0x21f   : > { %vm6584_vm1 = vmor %vm657_vm7, %vm913_vm3 }
 0x220   : > { %3645 = vmatmul.msk.bf16.gmra.mxu2 %vm3644_vm13, %v4253_v33  ;;  %v8456_v19 = vsel %vm6584_vm1, 4294967295, %v8455_v19  ;;  %vm6593_vm15 = vmor %vm658_vm0, %vm914_vm2  ;;  %vm1329_vm2 = vcmp.eq.s32.totalorder %v5035_v37, %v1261_v55  ;;  %vm1330_vm0 = vcmp.eq.s32.totalorder %v5050_v14, %v1261_v55  ;;  %vm8461_vm1 = vnez %v8404_v11  ;;  %v1581_v24 = vpop.permute.xlu1 %1580 }
 0x221   : > { %v8459_v22 = vsel %vm6593_vm15, 4294967295, %v8458_v22  ;;  %vm979_vm14 = vmor %vm659_vm6, %vm915_vm11  ;;  %vm8460_vm15 = vnez %v8418_v20 }
 0x222   : > { %3677 = vmatmul.msk.bf16.gmra.mxu3 %vm3676_vm10, %v4253_v33  ;;  %vm980_vm13 = vmor %vm660_vm8, %vm916_vm9  ;;  %vm1652_vm10 = vcmp.eq.s32.totalorder %v5050_v14, %v1584_v62 }
 0x223   : > { %vm1395_vm3 = vmor %vm979_vm14, %vm1331_vm5  ;;  %vm8467_vm5 = vnez %v8456_v19  ;;  %vm8468_vm14 = vnez %v8425_v21 }
 0x224   : > { %vm1396_vm7 = vmor %vm980_vm13, %vm1332_vm12  ;;  %vm8469_vm12 = vnez %v8422_v61  ;;  %vm917_vm13 = vcmp.eq.s32.totalorder %v5035_v37, %v8471_v38 }
 0x225   : > { %vm8462_vm6 = vmpackc.low %vm8460_vm15, %vm8461_vm1  ;;  %vm1649_vm15 = vcmp.eq.s32.totalorder %v5035_v37, %v1581_v24 }
 0x226   : > { %vm6611_vm11 = vmor %vm1395_vm3, %vm1651_vm4  ;;  %vm8472_vm4 = vnez %v8459_v22 }
 0x227   : > { %vm6615_vm8 = vmor %vm1396_vm7, %vm1652_vm10  ;;  %vm1650_vm10 = vcmp.eq.s32.totalorder %v5050_v14, %v1581_v24 }
 0x228   : > { %vm1393_vm9 = vmor %vm8467_vm5, %vm1329_vm2  ;;  %vm661_vm2 = vcmp.eq.s32.totalorder %v5035_v37, %v8473_v53  ;;  %v1548_v30 = vpop.permute.xlu1 %1547 }
 0x229   : > { %3633 = vmatmul.msk.bf16.gmra.mxu0 %vm8462_vm6, %v4253_v33  ;;  %vm8470_vm1 = vmpackc.low %vm8468_vm14, %vm8469_vm12  ;;  %vm918_vm6 = vcmp.eq.s32.totalorder %v5050_v14, %v8471_v38  ;;  %vm1625_vm12 = vcmp.eq.s32.totalorder %v5035_v37, %v1545_v2 }
 0x22a   : > { %vm1394_vm3 = vmor %vm8472_vm4, %vm1330_vm0  ;;  %vm662_vm0 = vcmp.eq.s32.totalorder %v5050_v14, %v8473_v53 }
 0x22b   : > { %3665 = vmatmul.msk.bf16.gmra.mxu1 %vm8470_vm1, %v4253_v33  ;;  %vm1713_vm7 = vmor %vm1393_vm9, %vm1649_vm15  ;;  %vm1626_vm9 = vcmp.eq.s32.totalorder %v5050_v14, %v1545_v2 }
 0x22c   : > { %vm3646_vm5 = vmpackc.low %vm6611_vm11, %vm1713_vm7  ;;  %vm8479_vm11 = vnez %v8478_v54 }
 0x22d   : > { %vm6639_vm14 = vmor %vm661_vm2, %vm917_vm13  ;;  %vm8485_vm2 = vnez %v8096_v48 }
 0x22e   : > { %vm1714_vm1 = vmor %vm1394_vm3, %vm1650_vm10  ;;  %vm1627_vm3 = vcmp.eq.s32.totalorder %v5035_v37, %v1548_v30  ;;  %vm1628_vm10 = vcmp.eq.s32.totalorder %v5050_v14, %v1548_v30 }
 0x22f   : > { %vm3678_vm15 = vmpackc.low %vm6615_vm8, %vm1714_vm1  ;;  %vm8482_vm8 = vnez %v8016_v1  ;;  %vm1334_vm1 = vcmp.eq.s32.totalorder %v5050_v14, %v1267_v45  ;;  %v2022_v1 = vpop.f32.mrf.mxu0 }
 0x230   : > { %vm6649_vm4 = vmor %vm662_vm0, %vm918_vm6  ;;  %3647 = vmatmul.msk.bf16.gmra.mxu2 %vm3646_vm5, %v4253_v33  ;;  %vm1333_vm5 = vcmp.eq.s32.totalorder %v5035_v37, %v1267_v45  ;;  %vm8486_vm0 = vnez %v8101_v63  ;;  %v6694_v26 = vadd.f32 %v2111_v50, %v2022_v1  ;;  %v1587_v56 = vpop.permute.xlu1 %1586 }
 0x231   : > { %vm6656_vm13 = vmor %vm8479_vm11, %vm1625_vm12 }
 0x232   : > { %3679 = vmatmul.msk.bf16.gmra.mxu3 %vm3678_vm15, %v4253_v33  ;;  %vm6665_vm7 = vmor %vm8482_vm8, %vm1626_vm9  ;;  %vm1655_vm9 = vcmp.eq.s32.totalorder %v5035_v37, %v1590_v3  ;;  %2191 = vst [vmem:[%s4434_s20] sm:$0xff] %v6694_v26  ;;  %2223 = vrot.lane.b32.xlu2 %v6694_v26, %s4254_s9 }
 0x233   : > { %vm1691_vm6 = vmor %vm8485_vm2, %vm1627_vm3  ;;  %vm8494_vm2 = vnez %v8274_v35  ;;  %v8497_v35 = vld [vmem:[#allocation44_spill] sm:$0xff] }
 0x234   : > { %vm3634_vm12 = vmpackc.low %vm1691_vm6, %vm6656_vm13  ;;  %vm1656_vm13 = vcmp.eq.s32.totalorder %v5050_v14, %v1590_v3 }
 0x235   : > { %vm1692_vm15 = vmor %vm8486_vm0, %vm1628_vm10  ;;  %vm8491_vm10 = vnez %v8268_v29 }
 0x236   : > { %vm3666_vm11 = vmpackc.low %vm1692_vm15, %vm6665_vm7  ;;  %vm1653_vm7 = vcmp.eq.s32.totalorder %v5035_v37, %v1587_v56  ;;  %vm923_vm15 = vcmp.eq.s32.totalorder %v5035_v37, %v8497_v35 }
 0x237   : > { %vm6682_vm3 = vmor %vm6639_vm14, %vm1333_vm5  ;;  %v2024_v29 = vpop.f32.mrf.mxu0 }
 0x238   : > { %vm6689_vm8 = vmor %vm6649_vm4, %vm1334_vm1  ;;  %vm1654_vm4 = vcmp.eq.s32.totalorder %v5050_v14, %v1587_v56  ;;  %v6728_v44 = vadd.f32 %v2113_v52, %v2024_v29  ;;  %v1273_v39 = vpop.permute.xlu1 %1272  ;;  %v2116_v58 = vpop.f32.mrf.mxu1 }
 0x239   : > { %3635 = vmatmul.msk.bf16.gmra.mxu0 %vm3634_vm12, %v4253_v33  ;;  %vm6698_vm14 = vmor %vm8491_vm10, %vm1655_vm9  ;;  %vm924_vm9 = vcmp.eq.s32.totalorder %v5050_v14, %v8497_v35  ;;  %vm666_vm10 = vcmp.eq.s32.totalorder %v5050_v14, %v8499_v25 }
 0x23a   : > { %vm6707_vm6 = vmor %vm8494_vm2, %vm1656_vm13  ;;  %vm668_vm13 = vcmp.eq.s32.totalorder %v5050_v14, %v8498_v5  ;;  %2192 = vst [vmem:[%s4434_s20 + $0x8] sm:$0xff] %v6728_v44  ;;  %2225 = vrot.lane.b32.xlu1 %v6728_v44, %s4254_s9  ;;  %vm922_vm2 = vcmp.eq.s32.totalorder %v5050_v14, %v8500_v15 }
 0x23b   : > { %3667 = vmatmul.msk.bf16.gmra.mxu1 %vm3666_vm11, %v4253_v33  ;;  %vm1717_vm5 = vmor %vm6682_vm3, %vm1653_vm7  ;;  %vm667_vm11 = vcmp.eq.s32.totalorder %v5035_v37, %v8498_v5  ;;  %vm665_vm3 = vcmp.eq.s32.totalorder %v5035_v37, %v8499_v25 }
 0x23c   : > { %vm3648_vm12 = vmpackc.low %vm6698_vm14, %vm1717_vm5  ;;  %vm921_vm14 = vcmp.eq.s32.totalorder %v5035_v37, %v8500_v15  ;;  %vm1337_vm5 = vcmp.eq.s32.totalorder %v5035_v37, %v1273_v39 }
 0x23d   : > { %vm1718_vm1 = vmor %vm6689_vm8, %vm1654_vm4  ;;  %vm1339_vm4 = vcmp.eq.s32.totalorder %v5035_v37, %v1276_v28 }
 0x23e   : > { %vm3680_vm0 = vmpackc.low %vm6707_vm6, %vm1718_vm1  ;;  %vm1338_vm1 = vcmp.eq.s32.totalorder %v5050_v14, %v1273_v39 }
 0x23f   : > { %vm987_vm8 = vmor %vm667_vm11, %vm923_vm15  ;;  %v2027_v10 = vpop.f32.mrf.mxu0 }
 0x240   : > { %3649 = vmatmul.msk.bf16.gmra.mxu2 %vm3648_vm12, %v4253_v33  ;;  %vm988_vm7 = vmor %vm668_vm13, %vm924_vm9  ;;  %vm1657_vm13 = vcmp.eq.s32.totalorder %v5035_v37, %v1593_v0  ;;  %v1596_v8 = vpop.permute.xlu1 %1595  ;;  %v6757_v36 = vadd.f32 %v2116_v58, %v2027_v10 }
 0x241   : > { %vm985_vm6 = vmor %vm665_vm3, %vm921_vm14  ;;  %vm1658_vm14 = vcmp.eq.s32.totalorder %v5050_v14, %v1593_v0 }
 0x242   : > { %3681 = vmatmul.msk.bf16.gmra.mxu3 %vm3680_vm0, %v4253_v33  ;;  %vm986_vm12 = vmor %vm666_vm10, %vm922_vm2  ;;  %vm1340_vm0 = vcmp.eq.s32.totalorder %v5050_v14, %v1276_v28  ;;  %vm1659_vm10 = vcmp.eq.s32.totalorder %v5035_v37, %v1596_v8  ;;  %2193 = vst [vmem:[%s4434_s20 + $0x10] sm:$0xff] %v6757_v36  ;;  %2227 = vrot.lane.b32.xlu2 %v6757_v36, %s4254_s9 }
 0x243   : > { %vm1403_vm15 = vmor %vm987_vm8, %vm1339_vm4  ;;  %vm1660_vm4 = vcmp.eq.s32.totalorder %v5050_v14, %v1596_v8  ;;  %v2118_v14 = vpop.f32.mrf.mxu1 }
 0x244   : > { %vm1401_vm11 = vmor %vm985_vm6, %vm1337_vm5 }
 0x245   : > { %vm1402_vm9 = vmor %vm986_vm12, %vm1338_vm1 }
 0x246   : > { %vm1404_vm3 = vmor %vm988_vm7, %vm1340_vm0 }
 0x247   : > { %vm1721_vm2 = vmor %vm1401_vm11, %vm1657_vm13  ;;  %v2029_v37 = vpop.f32.mrf.mxu0 }
 0x248   : > { %vm1722_vm8 = vmor %vm1402_vm9, %vm1658_vm14  ;;  %v6763_v11 = vadd.f32 %v2118_v14, %v2029_v37 }
 0x249   : > { %vm1723_vm5 = vmor %vm1403_vm15, %vm1659_vm10 }
 0x24a   : > { %vm3650_vm6 = vmpackc.low %vm1723_vm5, %vm1721_vm2  ;;  %2194 = vst [vmem:[%s4434_s20 + $0x18] sm:$0xff] %v6763_v11  ;;  %2229 = vrot.lane.b32.xlu0 %v6763_v11, %s4254_s9 }
 0x24b   : > { %vm1724_vm1 = vmor %vm1404_vm3, %vm1660_vm4 }
 0x24c   : > { %vm3682_vm12 = vmpackc.low %vm1724_vm1, %vm1722_vm8 }
 0x250   : > { %3651 = vmatmul.msk.bf16.gmra.mxu2 %vm3650_vm6, %v4253_v33 }
 0x251   : > { %v2151_v31 = vpop.f32.mrf.mxu3 }
 0x252   : > { %3683 = vmatmul.msk.bf16.gmra.mxu3 %vm3682_vm12, %v4253_v33  ;;  %v2062_v33 = vpop.f32.mrf.mxu2 }
 0x253   : > { %v6769_v20 = vadd.f32 %v2151_v31, %v2062_v33 }
 0x255   : > { %2207 = vst [vmem:[%s4434_s20 + $0x80] sm:$0xff] %v6769_v20 }
 0x256   : > { %v2032_v17 = vpop.f32.mrf.mxu0 }
 0x259   : > { %v2153_v21 = vpop.f32.mrf.mxu3 }
 0x25a   : > { %v2121_v40 = vpop.f32.mrf.mxu1  ;;  %v2064_v12 = vpop.f32.mrf.mxu2 }
 0x25b   : > { %v6773_v61 = vadd.f32 %v2121_v40, %v2032_v17  ;;  %v6779_v16 = vadd.f32 %v2153_v21, %v2064_v12 }
 0x25d   : > { %2195 = vst [vmem:[%s4434_s20 + $0x20] sm:$0xff] %v6773_v61  ;;  %2231 = vrot.lane.b32.xlu1 %v6773_v61, %s4254_s9 }
 0x25e   : > { %v2034_v32 = vpop.f32.mrf.mxu0  ;;  %2208 = vst [vmem:[%s4434_s20 + $0x88] sm:$0xff] %v6779_v16 }
 0x262   : > { %v2123_v57 = vpop.f32.mrf.mxu1 }
 0x263   : > { %v6783_v47 = vadd.f32 %v2123_v57, %v2034_v32 }
 0x265   : > { %2196 = vst [vmem:[%s4434_s20 + $0x28] sm:$0xff] %v6783_v47  ;;  %2233 = vrot.lane.b32.xlu2 %v6783_v47, %s4254_s9 }
 0x269   : > { %v2067_v51 = vpop.f32.mrf.mxu2 }
 0x26c   : > { %v2156_v7 = vpop.f32.mrf.mxu3 }
 0x26d   : > { %v6789_v4 = vadd.f32 %v2156_v7, %v2067_v51 }
 0x26f   : > { %2209 = vst [vmem:[%s4434_s20 + $0x90] sm:$0xff] %v6789_v4 }
 0x271   : > { %v2037_v18 = vpop.f32.mrf.mxu0  ;;  %v2069_v62 = vpop.f32.mrf.mxu2 }
 0x274   : > { %v2126_v6 = vpop.f32.mrf.mxu1  ;;  %v2158_v55 = vpop.f32.mrf.mxu3 }
 0x275   : > { %v6793_v59 = vadd.f32 %v2126_v6, %v2037_v18  ;;  %v6799_v13 = vadd.f32 %v2158_v55, %v2069_v62 }
 0x277   : > { %2197 = vst [vmem:[%s4434_s20 + $0x30] sm:$0xff] %v6793_v59  ;;  %2235 = vrot.lane.b32.xlu0 %v6793_v59, %s4254_s9 }
 0x278   : > { %2210 = vst [vmem:[%s4434_s20 + $0x98] sm:$0xff] %v6799_v13 }
 0x279   : > { %v2039_v27 = vpop.f32.mrf.mxu0 }
 0x27c   : > { %v2128_v19 = vpop.f32.mrf.mxu1 }
 0x27d   : > { %v6803_v42 = vadd.f32 %v2128_v19, %v2039_v27 }
 0x27f   : > { %2198 = vst [vmem:[%s4434_s20 + $0x38] sm:$0xff] %v6803_v42  ;;  %2237 = vrot.lane.b32.xlu1 %v6803_v42, %s4254_s9 }
 0x283   : > { %v2072_v22 = vpop.f32.mrf.mxu2 }
 0x285   : > { %v2161_v23 = vpop.f32.mrf.mxu3  ;;  %v2042_v45 = vpop.f32.mrf.mxu0 }
 0x286   : > { %v6809_v24 = vadd.f32 %v2161_v23, %v2072_v22 }
 0x287   : > { %v2131_v46 = vpop.f32.mrf.mxu1 }
 0x288   : > { %2211 = vst [vmem:[%s4434_s20 + $0xa0] sm:$0xff] %v6809_v24  ;;  %v6813_v38 = vadd.f32 %v2131_v46, %v2042_v45 }
 0x28a   : > { %2199 = vst [vmem:[%s4434_s20 + $0x40] sm:$0xff] %v6813_v38  ;;  %2239 = vrot.lane.b32.xlu2 %v6813_v38, %s4254_s9 }
 0x28b   : > { %v2074_v2 = vpop.f32.mrf.mxu2 }
 0x28d   : > { %v2163_v53 = vpop.f32.mrf.mxu3  ;;  %v2044_v34 = vpop.f32.mrf.mxu0 }
 0x28e   : > { %v6819_v43 = vadd.f32 %v2163_v53, %v2074_v2 }
 0x28f   : > { %v2133_v30 = vpop.f32.mrf.mxu1 }
 0x290   : > { %2212 = vst [vmem:[%s4434_s20 + $0xa8] sm:$0xff] %v6819_v43  ;;  %v6823_v54 = vadd.f32 %v2133_v30, %v2044_v34 }
 0x292   : > { %2200 = vst [vmem:[%s4434_s20 + $0x48] sm:$0xff] %v6823_v54  ;;  %2241 = vrot.lane.b32.xlu0 %v6823_v54, %s4254_s9 }
 0x293   : > { %v2077_v41 = vpop.f32.mrf.mxu2 }
 0x295   : > { %v2166_v49 = vpop.f32.mrf.mxu3 }
 0x296   : > { %v6829_v3 = vadd.f32 %v2166_v49, %v2077_v41  ;;  %v2047_v1 = vpop.f32.mrf.mxu0  ;;  %v2224_v41 = vpop.permute.xlu2 %2223 }
 0x297   : > { %v2287_v49 = vmul.f32 %v2224_v41, %v6694_v26 }
 0x298   : > { %v2136_v48 = vpop.f32.mrf.mxu1  ;;  %2213 = vst [vmem:[%s4434_s20 + $0xb0] sm:$0xff] %v6829_v3 }
 0x299   : > { %v6833_v63 = vadd.f32 %v2136_v48, %v2047_v1 }
 0x29b   : > { %2201 = vst [vmem:[%s4434_s20 + $0x50] sm:$0xff] %v6833_v63  ;;  %2243 = vrot.lane.b32.xlu1 %v6833_v63, %s4254_s9  ;;  %v2079_v50 = vpop.f32.mrf.mxu2 }
 0x29d   : > { %v2168_v56 = vpop.f32.mrf.mxu3 }
 0x29e   : > { %v6839_v9 = vadd.f32 %v2168_v56, %v2079_v50  ;;  %v2049_v60 = vpop.f32.mrf.mxu0 }
 0x2a0   : > { %v2138_v29 = vpop.f32.mrf.mxu1  ;;  %2214 = vst [vmem:[%s4434_s20 + $0xb8] sm:$0xff] %v6839_v9 }
 0x2a1   : > { %v6843_v35 = vadd.f32 %v2138_v29, %v2049_v60  ;;  %v2228_v60 = vpop.permute.xlu2 %2227 }
 0x2a2   : > { %v2289_v29 = vmul.f32 %v2228_v60, %v6757_v36 }
 0x2a3   : > { %2202 = vst [vmem:[%s4434_s20 + $0x58] sm:$0xff] %v6843_v35  ;;  %2245 = vrot.lane.b32.xlu2 %v6843_v35, %s4254_s9  ;;  %v2082_v52 = vpop.f32.mrf.mxu2 }
 0x2a5   : > { %v2171_v28 = vpop.f32.mrf.mxu3 }
 0x2a6   : > { %v6849_v5 = vadd.f32 %v2171_v28, %v2082_v52  ;;  %v2052_v25 = vpop.f32.mrf.mxu0 }
 0x2a8   : > { %v2141_v39 = vpop.f32.mrf.mxu1  ;;  %2215 = vst [vmem:[%s4434_s20 + $0xc0] sm:$0xff] %v6849_v5 }
 0x2a9   : > { %v6853_v15 = vadd.f32 %v2141_v39, %v2052_v25 }
 0x2ab   : > { %2203 = vst [vmem:[%s4434_s20 + $0x60] sm:$0xff] %v6853_v15  ;;  %2247 = vrot.lane.b32.xlu0 %v6853_v15, %s4254_s9  ;;  %v2084_v0 = vpop.f32.mrf.mxu2 }
 0x2ac   : > { %v2226_v1 = vpop.permute.xlu1 %2225 }
 0x2ad   : > { %v2173_v8 = vpop.f32.mrf.mxu3  ;;  %v2288_v50 = vmul.f32 %v2226_v1, %v6728_v44  ;;  %v4255_v1 = vmov 0.0  }
 0x2ae   : > { %v6859_v10 = vadd.f32 %v2173_v8, %v2084_v0  ;;  %v2054_v58 = vpop.f32.mrf.mxu0 }
 0x2b0   : > { %v2143_v37 = vpop.f32.mrf.mxu1  ;;  %2216 = vst [vmem:[%s4434_s20 + $0xc8] sm:$0xff] %v6859_v10 }
 0x2b1   : > { %v6863_v14 = vadd.f32 %v2143_v37, %v2054_v58 }
 0x2b3   : > { %2204 = vst [vmem:[%s4434_s20 + $0x68] sm:$0xff] %v6863_v14  ;;  %2249 = vrot.lane.b32.xlu1 %v6863_v14, %s4254_s9  ;;  %v2087_v33 = vpop.f32.mrf.mxu2 }
 0x2b5   : > { %v2176_v31 = vpop.f32.mrf.mxu3 }
 0x2b6   : > { %v6869_v17 = vadd.f32 %v2176_v31, %v2087_v33  ;;  %v2057_v40 = vpop.f32.mrf.mxu0 }
 0x2b8   : > { %v2146_v12 = vpop.f32.mrf.mxu1  ;;  %2217 = vst [vmem:[%s4434_s20 + $0xd0] sm:$0xff] %v6869_v17 }
 0x2b9   : > { %v6873_v21 = vadd.f32 %v2146_v12, %v2057_v40 }
 0x2bb   : > { %2205 = vst [vmem:[%s4434_s20 + $0x70] sm:$0xff] %v6873_v21  ;;  %2255 = vrot.lane.b32.xlu1 %v6769_v20, %s4254_s9  ;;  %2251 = vrot.lane.b32.xlu2 %v6873_v21, %s4254_s9  ;;  %v2089_v32 = vpop.f32.mrf.mxu2 }
 0x2bc   : > { %v2230_v48 = vpop.permute.xlu0 %2229 }
 0x2bd   : > { %v2178_v57 = vpop.f32.mrf.mxu3  ;;  %v2290_v56 = vmul.f32 %v2230_v48, %v6763_v11 }
 0x2be   : > { %v6881_v51 = vadd.f32 %v2178_v57, %v2089_v32  ;;  %v2059_v7 = vpop.f32.mrf.mxu0 }
 0x2bf   : > { %v2234_v26 = vpop.permute.xlu2 %2233 }
 0x2c0   : > { %v2148_v18 = vpop.f32.mrf.mxu1  ;;  %2218 = vst [vmem:[%s4434_s20 + $0xd8] sm:$0xff] %v6881_v51  ;;  %v2292_v44 = vmul.f32 %v2234_v26, %v6783_v47 }
 0x2c1   : > { %v6885_v6 = vadd.f32 %v2148_v18, %v2059_v7 }
 0x2c3   : > { %2206 = vst [vmem:[%s4434_s20 + $0x78] sm:$0xff] %v6885_v6  ;;  %2253 = vrot.lane.b32.xlu0 %v6885_v6, %s4254_s9  ;;  %2261 = vrot.lane.b32.xlu1 %v6799_v13, %s4254_s9  ;;  %v2092_v62 = vpop.f32.mrf.mxu2 }
 0x2c4   : > { %2257 = vrot.lane.b32.xlu2 %v6779_v16, %s4254_s9 }
 0x2c5   : > { %v2181_v55 = vpop.f32.mrf.mxu3 }
 0x2c6   : > { %v6895_v27 = vadd.f32 %v2181_v55, %v2092_v62 }
 0x2c8   : > { %2219 = vst [vmem:[%s4434_s20 + $0xe0] sm:$0xff] %v6895_v27 }
 0x2cb   : > { %2259 = vrot.lane.b32.xlu0 %v6789_v4, %s4254_s9  ;;  %v2094_v19 = vpop.f32.mrf.mxu2 }
 0x2cc   : > { %2263 = vrot.lane.b32.xlu2 %v6809_v24, %s4254_s9 }
 0x2cd   : > { %v2183_v22 = vpop.f32.mrf.mxu3 }
 0x2ce   : > { %v6903_v23 = vadd.f32 %v2183_v22, %v2094_v19 }
 0x2cf   : > { %v2232_v52 = vpop.permute.xlu1 %2231 }
 0x2d0   : > { %2220 = vst [vmem:[%s4434_s20 + $0xe8] sm:$0xff] %v6903_v23  ;;  %v2291_v28 = vmul.f32 %v2232_v52, %v6773_v61 }
 0x2d3   : > { %2265 = vrot.lane.b32.xlu0 %v6819_v43, %s4254_s9  ;;  %v2097_v45 = vpop.f32.mrf.mxu2 }
 0x2d5   : > { %v2186_v46 = vpop.f32.mrf.mxu3 }
 0x2d6   : > { %v6909_v2 = vadd.f32 %v2186_v46, %v2097_v45 }
 0x2d8   : > { %8501 = vst [vmem:[#allocation38_spill] sm:$0xff] %v6909_v2 }
 0x2d9   : > { %2221 = vst [vmem:[%s4434_s20 + $0xf0] sm:$0xff] %v6909_v2 }
 0x2db   : > { %2267 = vrot.lane.b32.xlu0 %v6829_v3, %s4254_s9  ;;  %v2099_v53 = vpop.f32.mrf.mxu2 }
 0x2dd   : > { %v2188_v34 = vpop.f32.mrf.mxu3 }
 0x2de   : > { %v6915_v30 = vadd.f32 %v2188_v34, %v2099_v53  ;;  %v3744_v34 = vld [vmem:[%s4432_s15] sm:$0xff]  }
 0x2e0   : > { %8502 = vst [vmem:[#allocation21_spill] sm:$0xff] %v6915_v30 }
 0x2e1   : > { %2222 = vst [vmem:[%s4434_s20 + $0xf8] sm:$0xff] %v6915_v30  ;;  %s8516_s20 = sand.u32 1, %s4224_s22  }
 0x2e2   : > { %s3299_s29 = scalar_lea.sflag [#allocation3], %s8516_s20 }
 0x2e4   : > { %v2240_v47 = vpop.permute.xlu2 %2239 }
 0x2e5   : > { %v2295_v39 = vmul.f32 %v2240_v47, %v6813_v38 }
 0x2e9   : > { %v2236_v36 = vpop.permute.xlu0 %2235 }
 0x2ea   : > { %v2293_v11 = vmul.f32 %v2236_v36, %v6793_v59 }
 0x2ed   : > { %2319 = vadd.xlane.f32.xlu1 %v2287_v49 }
 0x2f1   : > { %v2238_v61 = vpop.permute.xlu1 %2237 }
 0x2f2   : > { %v2294_v59 = vmul.f32 %v2238_v61, %v6803_v42  ;;  %v8503_v42 = vlaneseq }
 0x2f4   : > { %v6957_v57 = vshrl.u32 %v8503_v42, 7 }
 0x2f5   : > { %2321 = vadd.xlane.f32.xlu2 %v2288_v50  ;;  %2325 = vadd.xlane.f32.xlu1 %v2290_v56  ;;  %v3745_v56 = vunpack.c.l.bf16 %v3744_v34 }
 0x2f6   : > { %v2417_v18 = vadd.s32 8, %v6957_v57 }
 0x2fd   : > { %v6942_v8 = vpop.permute.xlu2 %2245 }
 0x304   : > { %v2242_v0 = vpop.permute.xlu0 %2241 }
 0x305   : > { %2323 = vadd.xlane.f32.xlu0 %v2289_v29  ;;  %v2296_v22 = vmul.f32 %v2242_v0, %v6823_v54  ;;  %v3746_v29 = vunpack.c.h.bf16 %v3744_v34  ;;  %v2419_v0 = vadd.s32 24, %v6957_v57 }
 0x30d   : > { %2269 = vrot.lane.b32.xlu2 %v6839_v9, %s4254_s9  ;;  %2327 = vadd.xlane.f32.xlu0 %v2291_v28  ;;  %v2244_v25 = vpop.permute.xlu1 %2243 }
 0x30e   : > { %2271 = vrot.lane.b32.xlu1 %v6849_v5, %s4254_s9  ;;  %v2297_v37 = vmul.f32 %v2244_v25, %v6833_v63  ;;  %v6963_v63 = vstv %s3685_s8 }
 0x30f   : > { %v2452_v62 = vadd.s32 %v6963_v63, %v6957_v57  ;;  %v2453_v46 = vadd.s32 %v6963_v63, %v2417_v18  ;;  %v2418_v18 = vadd.s32 16, %v6957_v57 }
 0x311   : > { %vm2484_vm7 = vcmp.lt.s32.totalorder %v2452_v62, 600  ;;  %vm2485_vm0 = vcmp.lt.s32.totalorder %v2453_v46, 600  ;;  %v2455_v46 = vadd.s32 %v6963_v63, %v2419_v0  ;;  %v2454_v34 = vadd.s32 %v6963_v63, %v2418_v18 }
 0x312   : > { %v6983_v48 = vsel %vm2484_vm7, 1.0, %v4255_v1  ;;  %v6987_v60 = vsel %vm2485_vm0, 1.0, %v4255_v1 }
 0x313   : > { %vm2487_vm15 = vcmp.lt.s32.totalorder %v2455_v46, 600  ;;  %vm2486_vm11 = vcmp.lt.s32.totalorder %v2454_v34, 600  ;;  %v2421_v34 = vadd.s32 40, %v6957_v57 }
 0x315   : > { %2273 = vrot.lane.b32.xlu2 %v6859_v10, %s4254_s9  ;;  %2329 = vadd.xlane.f32.xlu0 %v2292_v44  ;;  %v2252_v31 = vpop.permute.xlu2 %2251 }
 0x316   : > { %2277 = vrot.lane.b32.xlu1 %v6881_v51, %s4254_s9 }
 0x31d   : > { %2275 = vrot.lane.b32.xlu2 %v6869_v17, %s4254_s9  ;;  %2331 = vadd.xlane.f32.xlu0 %v2293_v11  ;;  %v2248_v33 = vpop.permute.xlu0 %2247 }
 0x31e   : > { %v6951_v38 = vpop.permute.xlu2 %2257  ;;  %v2299_v50 = vmul.f32 %v2248_v33, %v6853_v15 }
 0x325   : > { %v6944_v58 = vpop.permute.xlu1 %2249 }
 0x326   : > { %v6970_v55 = vpop.permute.xlu2 %2263 }
 0x32d   : > { %v6947_v40 = vpop.permute.xlu1 %2255 }
 0x331   : > { %2279 = vrot.lane.b32.xlu0 %v6895_v27, %s4254_s9 }
 0x335   : > { %v6949_v12 = vpop.permute.xlu0 %2253  ;;  %v6953_v32 = vpop.permute.xlu1 %2261 }
 0x339   : > { %2281 = vrot.lane.b32.xlu0 %v6903_v23, %s4254_s9 }
 0x33d   : > { %v6959_v7 = vpop.permute.xlu0 %2259 }
 0x340   : > { %2335 = vadd.xlane.f32.xlu1 %v2295_v39 }
 0x345   : > { %v6980_v49 = vpop.permute.xlu0 %2265 }
 0x346   : > { %2333 = vadd.xlane.f32.xlu2 %v2294_v59 }
 0x348   : > { %2339 = vadd.xlane.f32.xlu1 %v2297_v37 }
 0x34d   : > { %v7001_v62 = vpop.permute.xlu0 %2267 }
 0x35e   : > { %2283 = vrot.lane.b32.xlu2 %v6909_v2, %s4254_s9 }
 0x360   : > { %v2320_v19 = vpop.xlane.xlu1 %2319 }
 0x361   : > { %v6973_v45 = vmul.f32 0.5, %v2320_v19  ;;  %2285 = vrot.lane.b32.xlu1 %v6915_v30, %s4254_s9 }
 0x363   : > { %v2612_v53 = vand.u32 2147483647, %v6973_v45  ;;  %2337 = vadd.xlane.f32.xlu0 %v2296_v22  ;;  %v3092_v26 = vmul.f32 %v6983_v48, %v6973_v45  ;;  %v2301_v22 = vmul.f32 %v2252_v31, %v6873_v21  ;;  %v7008_v21 = vsel %vm2487_vm15, 1.0, %v4255_v1  ;;  %v3807_v31 = vld [vmem:[%s4432_s15 + $0x8] sm:$0xff]  }
 0x364   : > { %v3750_v0 = vunpack.c.h.bf16 %v3807_v31 }
 0x365   : > { %v2644_v41 = vsub.f32 0.0, %v2612_v53  ;;  %v3225_v47 = vmul.f32 %v3745_v56, %v3092_v26  ;;  %v2302_v26 = vmul.f32 %v6949_v12, %v6885_v6  ;;  %v2303_v6 = vmul.f32 %v6947_v40, %v6769_v20 }
 0x367   : > { %v2676_v54 = vmul.f32 1.442695, %v2644_v41  ;;  %v2420_v41 = vadd.s32 32, %v6957_v57 }
 0x368   : > { %v2322_v52 = vpop.xlane.xlu2 %2321  ;;  %v2326_v28 = vpop.xlane.xlu1 %2325 }
 0x369   : > { %3970 = vpow2.f32 %v2676_v54  ;;  %v6991_v44 = vmul.f32 0.5, %v2322_v52  ;;  %v6993_v36 = vmul.f32 0.5, %v2326_v28  ;;  %v2456_v28 = vadd.s32 %v6963_v63, %v2420_v41 }
 0x36a   : > { %v2580_v41 = vmax.f32 %v6973_v45, 0.0 }
 0x36b   : > { %v2613_v11 = vand.u32 2147483647, %v6991_v44  ;;  %v3093_v15 = vmul.f32 %v6987_v60, %v6991_v44  ;;  %2343 = vadd.xlane.f32.xlu0 %v2299_v50  ;;  %v2615_v61 = vand.u32 2147483647, %v6993_v36  ;;  %vm2488_vm9 = vcmp.lt.s32.totalorder %v2456_v28, 600 }
 0x36c   : > { %v7043_v45 = vsel %vm2488_vm9, 1.0, %v4255_v1 }
 0x36d   : > { %v2645_v25 = vsub.f32 0.0, %v2613_v11  ;;  %v3226_v39 = vmul.f32 %v3746_v29, %v3093_v15  ;;  %v2647_v42 = vsub.f32 0.0, %v2615_v61 }
 0x36f   : > { %v3971_v59 = vpop.eup %3970  ;;  %v2678_v37 = vmul.f32 1.442695, %v2645_v25  ;;  %v3257_v33 = vadd.f32 %v3226_v39, %v3225_v47  ;;  %v2682_v53 = vmul.f32 1.442695, %v2647_v42  ;;  %v7017_v25 = vsel %vm2486_vm11, 1.0, %v4255_v1 }
 0x370   : > { %v2740_v19 = vadd.f32 1.0, %v3971_v59  ;;  %v2743_v54 = vmul.f32 -0.5, %v3971_v59  ;;  %v2746_v47 = vand.u32 2147483647, %v3971_v59  ;;  %v3749_v42 = vunpack.c.l.bf16 %v3807_v31 }
 0x371   : > { %3972 = vpow2.f32 %v2678_v37  ;;  %v3095_v37 = vmul.f32 %v7008_v21, %v6993_v36 }
 0x372   : > { %3974 = vlog2.f32 %v2740_v19  ;;  %v2744_v11 = vadd.f32 1.0, %v2743_v54  ;;  %vm7033_vm13 = vcmp.lt.f32.partialorder %v2746_v47, 0.0004427343  ;;  %v2304_v54 = vmul.f32 %v6951_v38, %v6779_v16 }
 0x373   : > { %2347 = vadd.xlane.f32.xlu0 %v2301_v22  ;;  %3976 = vpow2.f32 %v2682_v53  ;;  %v7029_v53 = vld [vmem:[%s4432_s15 + $0x10] sm:$0xff]  }
 0x374   : > { %v2745_v19 = vmul.f32 %v3971_v59, %v2744_v11  ;;  %v2581_v59 = vmax.f32 %v6991_v44, 0.0 }
 0x377   : > { %v3973_v50 = vpop.eup %3972 }
 0x378   : > { %v3975_v56 = vpop.eup %3974  ;;  %v2749_v29 = vadd.f32 1.0, %v3973_v50  ;;  %v2324_v52 = vpop.xlane.xlu0 %2323  ;;  %v2752_v15 = vmul.f32 -0.5, %v3973_v50  ;;  %v2755_v20 = vand.u32 2147483647, %v3973_v50 }
 0x379   : > { %v7014_v61 = vmul.f32 0.5, %v2324_v52  ;;  %v2742_v39 = vmul.f32 0.6931472, %v3975_v56  ;;  %v7024_v18 = vpop.eup %3976 }
 0x37a   : > { %3978 = vlog2.f32 %v2749_v29  ;;  %v2753_v22 = vadd.f32 1.0, %v2752_v15  ;;  %v3228_v29 = vmul.f32 %v3750_v0, %v3095_v37  ;;  %v3753_v15 = vunpack.c.l.bf16 %v7029_v53 }
 0x37b   : > { %2349 = vadd.xlane.f32.xlu0 %v2302_v26  ;;  %v2614_v12 = vand.u32 2147483647, %v7014_v61  ;;  %v3094_v46 = vmul.f32 %v7017_v25, %v7014_v61  ;;  %v2748_v56 = vsel %vm7033_vm13, %v2745_v19, %v2742_v39  ;;  %v2767_v26 = vadd.f32 1.0, %v7024_v18 }
 0x37c   : > { %v2754_v30 = vmul.f32 %v3973_v50, %v2753_v22  ;;  %v2457_v39 = vadd.s32 %v6963_v63, %v2421_v34  ;;  %v3028_v19 = vadd.f32 %v2748_v56, %v2580_v41  ;;  %vm2756_vm3 = vcmp.lt.f32.partialorder %v2755_v20, 0.0004427343 }
 0x37d   : > { %v2646_v40 = vsub.f32 0.0, %v2614_v12  ;;  %v3227_v31 = vmul.f32 %v3749_v42, %v3094_v46  ;;  %v2422_v50 = vadd.s32 48, %v6957_v57 }
 0x37e   : > { %vm2489_vm14 = vcmp.lt.s32.totalorder %v2457_v39, 600  ;;  %v3060_v22 = vmul.f32 %v6983_v48, %v3028_v19 }
 0x37f   : > { %v2680_v11 = vmul.f32 1.442695, %v2646_v40  ;;  %v3258_v12 = vadd.f32 %v3257_v33, %v3227_v31  ;;  %v2298_v33 = vmul.f32 %v6942_v8, %v6843_v35  ;;  %v2300_v8 = vmul.f32 %v6944_v58, %v6863_v14  ;;  %v7073_v58 = vpop.permute.xlu2 %2269 }
 0x380   : > { %v3979_v52 = vpop.eup %3978  ;;  %v2328_v2 = vpop.xlane.xlu0 %2327  ;;  %v3754_v31 = vunpack.c.h.bf16 %v7029_v53  ;;  %v2458_v38 = vadd.s32 %v6963_v63, %v2422_v50  ;;  %v2773_v14 = vand.u32 2147483647, %v7024_v18  ;;  %v2305_v53 = vmul.f32 %v6959_v7, %v6789_v4 }
 0x381   : > { %v2751_v47 = vmul.f32 0.6931472, %v3979_v52  ;;  %3980 = vpow2.f32 %v2680_v11  ;;  %v7047_v44 = vmul.f32 0.5, %v2328_v2  ;;  %v3259_v37 = vadd.f32 %v3258_v12, %v3228_v29  ;;  %v7081_v12 = vld [vmem:[%s4432_s15 + $0x18] sm:$0xff]  }
 0x382   : > { %3982 = vlog2.f32 %v2767_v26  ;;  %vm2490_vm2 = vcmp.lt.s32.totalorder %v2458_v38, 600  ;;  %vm7088_vm10 = vcmp.lt.f32.partialorder %v2773_v14, 0.0004427343  ;;  %v3757_v50 = vunpack.c.l.bf16 %v7081_v12 }
 0x383   : > { %v2757_v0 = vsel %vm2756_vm3, %v2754_v30, %v2751_v47  ;;  %2351 = vadd.xlane.f32.xlu0 %v2303_v6  ;;  %v2616_v28 = vand.u32 2147483647, %v7047_v44  ;;  %v3096_v46 = vmul.f32 %v7043_v45, %v7047_v44  ;;  %v2770_v6 = vmul.f32 -0.5, %v7024_v18 }
 0x384   : > { %v3029_v42 = vadd.f32 %v2757_v0, %v2581_v59  ;;  %v2306_v0 = vmul.f32 %v6953_v32, %v6799_v13  ;;  %v2308_v14 = vmul.f32 %v6980_v49, %v6819_v43  ;;  %v2272_v43 = vpop.permute.xlu1 %2271 }
 0x385   : > { %v2648_v30 = vsub.f32 0.0, %v2616_v28  ;;  %v3229_v34 = vmul.f32 %v3753_v15, %v3096_v46  ;;  %v2771_v52 = vadd.f32 1.0, %v2770_v6  ;;  %v2583_v6 = vmax.f32 %v6993_v36, 0.0 }
 0x386   : > { %v3061_v2 = vmul.f32 %v6987_v60, %v3029_v42  ;;  %v7066_v60 = vsel %vm2489_vm14, 1.0, %v4255_v1 }
 0x387   : > { %2341 = vadd.xlane.f32.xlu2 %v2298_v33  ;;  %v3981_v41 = vpop.eup %3980  ;;  %v2684_v40 = vmul.f32 1.442695, %v2648_v30  ;;  %v3260_v35 = vadd.f32 %v3259_v37, %v3229_v34  ;;  %v2309_v37 = vmul.f32 %v7001_v62, %v6829_v3  ;;  %v2772_v42 = vmul.f32 %v7024_v18, %v2771_v52 }
 0x388   : > { %v7060_v20 = vadd.f32 %v3061_v2, %v3060_v22  ;;  %v2758_v56 = vadd.f32 1.0, %v3981_v41  ;;  %v2761_v48 = vmul.f32 -0.5, %v3981_v41  ;;  %v2330_v59 = vpop.xlane.xlu0 %2329  ;;  %v3983_v29 = vpop.eup %3982  ;;  %v2764_v28 = vand.u32 2147483647, %v3981_v41 }
 0x389   : > { %3984 = vpow2.f32 %v2684_v40  ;;  %v7069_v16 = vmul.f32 0.5, %v2330_v59  ;;  %v2769_v15 = vmul.f32 0.6931472, %v3983_v29  ;;  %v7096_v3 = vsel %vm2490_vm2, 1.0, %v4255_v1  ;;  %v2274_v59 = vpop.permute.xlu2 %2273 }
 0x38a   : > { %3986 = vlog2.f32 %v2758_v56  ;;  %v2762_v47 = vadd.f32 1.0, %v2761_v48  ;;  %vm2765_vm4 = vcmp.lt.f32.partialorder %v2764_v28, 0.0004427343 }
 0x38b   : > { %2345 = vadd.xlane.f32.xlu1 %v2300_v8  ;;  %2353 = vadd.xlane.f32.xlu0 %v2304_v54  ;;  %v2617_v26 = vand.u32 2147483647, %v7069_v16  ;;  %v3097_v11 = vmul.f32 %v7066_v60, %v7069_v16  ;;  %v2775_v13 = vsel %vm7088_vm10, %v2772_v42, %v2769_v15  ;;  %v2582_v54 = vmax.f32 %v7014_v61, 0.0 }
 0x38c   : > { %v2763_v32 = vmul.f32 %v3981_v41, %v2762_v47  ;;  %v2307_v8 = vmul.f32 %v6970_v55, %v6809_v24  ;;  %v3031_v56 = vadd.f32 %v2775_v13, %v2583_v6  ;;  %v2312_v55 = vmul.f32 %v2274_v59, %v6859_v10 }
 0x38d   : > { %v2649_v39 = vsub.f32 0.0, %v2617_v26  ;;  %v3230_v19 = vmul.f32 %v3754_v31, %v3097_v11 }
 0x38e   : > { %v3063_v24 = vmul.f32 %v7008_v21, %v3031_v56  ;;  %v2310_v21 = vmul.f32 %v7073_v58, %v6839_v9 }
 0x38f   : > { %2355 = vadd.xlane.f32.xlu2 %v2305_v53  ;;  %v3985_v46 = vpop.eup %3984  ;;  %v2686_v7 = vmul.f32 1.442695, %v2649_v39  ;;  %v3261_v33 = vadd.f32 %v3260_v35, %v3230_v19 }
 0x390   : > { %v3987_v22 = vpop.eup %3986  ;;  %v2776_v2 = vadd.f32 1.0, %v3985_v46  ;;  %v2332_v62 = vpop.xlane.xlu0 %2331  ;;  %v2779_v30 = vmul.f32 -0.5, %v3985_v46  ;;  %v2782_v38 = vand.u32 2147483647, %v3985_v46 }
 0x391   : > { %v2760_v18 = vmul.f32 0.6931472, %v3987_v22  ;;  %3988 = vpow2.f32 %v2686_v7  ;;  %v7098_v34 = vmul.f32 0.5, %v2332_v62 }
 0x392   : > { %3990 = vlog2.f32 %v2776_v2  ;;  %v2780_v29 = vadd.f32 1.0, %v2779_v30  ;;  %vm2783_vm8 = vcmp.lt.f32.partialorder %v2782_v38, 0.0004427343  ;;  %v2585_v2 = vmax.f32 %v7069_v16, 0.0  ;;  %v2278_v30 = vpop.permute.xlu1 %2277 }
 0x393   : > { %2363 = vadd.xlane.f32.xlu1 %v2309_v37  ;;  %2357 = vadd.xlane.f32.xlu0 %v2306_v0  ;;  %v2766_v40 = vsel %vm2765_vm4, %v2763_v32, %v2760_v18  ;;  %v2618_v41 = vand.u32 2147483647, %v7098_v34  ;;  %v3098_v35 = vmul.f32 %v7096_v3, %v7098_v34  ;;  %v2584_v0 = vmax.f32 %v7047_v44, 0.0 }
 0x394   : > { %v3030_v48 = vadd.f32 %v2766_v40, %v2582_v54  ;;  %v2781_v19 = vmul.f32 %v3985_v46, %v2780_v29  ;;  %v2311_v44 = vmul.f32 %v2272_v43, %v6849_v5  ;;  %v2314_v16 = vmul.f32 %v2278_v30, %v6881_v51 }
 0x395   : > { %v2650_v36 = vsub.f32 0.0, %v2618_v41  ;;  %v3231_v31 = vmul.f32 %v3757_v50, %v3098_v35  ;;  %v2276_v50 = vpop.permute.xlu2 %2275  ;;  %v2586_v56 = vmax.f32 %v7098_v34, 0.0  ;;  %v2423_v29 = vadd.s32 56, %v6957_v57 }
 0x396   : > { %v3062_v61 = vmul.f32 %v7017_v25, %v3030_v48  ;;  %v2313_v62 = vmul.f32 %v2276_v50, %v6869_v17 }
 0x397   : > { %2359 = vadd.xlane.f32.xlu2 %v2307_v8  ;;  %v3989_v52 = vpop.eup %3988  ;;  %v2688_v26 = vmul.f32 1.442695, %v2650_v36  ;;  %v7110_v11 = vadd.f32 %v3261_v33, %v3231_v31  ;;  %v2459_v34 = vadd.s32 %v6963_v63, %v2423_v29 }
 0x398   : > { %v3991_v53 = vpop.eup %3990  ;;  %v3189_v15 = vadd.f32 %v7060_v20, %v3062_v61  ;;  %v2785_v47 = vadd.f32 1.0, %v3989_v52  ;;  %v2788_v25 = vmul.f32 -0.5, %v3989_v52  ;;  %v2791_v28 = vand.u32 2147483647, %v3989_v52 }
 0x399   : > { %v2778_v39 = vmul.f32 0.6931472, %v3991_v53  ;;  %3992 = vpow2.f32 %v2688_v26  ;;  %vm2491_vm12 = vcmp.lt.s32.totalorder %v2459_v34, 600 }
 0x39a   : > { %v3190_v37 = vadd.f32 %v3189_v15, %v3063_v24  ;;  %3994 = vlog2.f32 %v2785_v47  ;;  %v2789_v42 = vadd.f32 1.0, %v2788_v25  ;;  %vm2792_vm5 = vcmp.lt.f32.partialorder %v2791_v28, 0.0004427343 }
 0x39b   : > { %2361 = vadd.xlane.f32.xlu0 %v2308_v14  ;;  %2369 = vadd.xlane.f32.xlu1 %v2312_v55  ;;  %v2784_v49 = vsel %vm2783_vm8, %v2781_v19, %v2778_v39  ;;  %v3758_v55 = vunpack.c.h.bf16 %v7081_v12  ;;  %v8508_v12 = vld [vmem:[#allocation38_spill] sm:$0xff] }
 0x39c   : > { %v3032_v10 = vadd.f32 %v2784_v49, %v2584_v0  ;;  %v2790_v13 = vmul.f32 %v3989_v52, %v2789_v42  ;;  %v7138_v52 = vld [vmem:[%s4432_s15 + $0x20] sm:$0xff]  }
 0x39d   : > { %v3761_v47 = vunpack.c.l.bf16 %v7138_v52 }
 0x39e   : > { %v3064_v20 = vmul.f32 %v7043_v45, %v3032_v10 }
 0x39f   : > { %2365 = vadd.xlane.f32.xlu2 %v2310_v21  ;;  %v3993_v46 = vpop.eup %3992 }
 0x3a0   : > { %v3995_v4 = vpop.eup %3994  ;;  %v3191_v7 = vadd.f32 %v3190_v37, %v3064_v20  ;;  %v2794_v33 = vadd.f32 1.0, %v3993_v46  ;;  %v2797_v32 = vmul.f32 -0.5, %v3993_v46  ;;  %v2800_v54 = vand.u32 2147483647, %v3993_v46 }
 0x3a1   : > { %v2787_v22 = vmul.f32 0.6931472, %v3995_v4 }
 0x3a2   : > { %3996 = vlog2.f32 %v2794_v33  ;;  %v2798_v5 = vadd.f32 1.0, %v2797_v32  ;;  %vm2801_vm6 = vcmp.lt.f32.partialorder %v2800_v54, 0.0004427343 }
 0x3a3   : > { %v2280_v9 = vpop.permute.xlu0 %2279  ;;  %2367 = vadd.xlane.f32.xlu0 %v2311_v44  ;;  %v2793_v58 = vsel %vm2792_vm5, %v2790_v13, %v2787_v22 }
 0x3a4   : > { %v2315_v45 = vmul.f32 %v2280_v9, %v6895_v27  ;;  %v3033_v18 = vadd.f32 %v2793_v58, %v2585_v2  ;;  %v2799_v8 = vmul.f32 %v3993_v46, %v2798_v5  ;;  %v2425_v58 = vadd.s32 72, %v6957_v57 }
 0x3a6   : > { %2375 = vadd.xlane.f32.xlu1 %v2315_v45  ;;  %v3065_v6 = vmul.f32 %v7066_v60, %v3033_v18  ;;  %v2424_v60 = vadd.s32 64, %v6957_v57 }
 0x3a7   : > { %2371 = vadd.xlane.f32.xlu2 %v2313_v62 }
 0x3a8   : > { %v3997_v40 = vpop.eup %3996  ;;  %v3192_v41 = vadd.f32 %v3191_v7, %v3065_v6  ;;  %v2460_v31 = vadd.s32 %v6963_v63, %v2424_v60 }
 0x3a9   : > { %v2796_v35 = vmul.f32 0.6931472, %v3997_v40  ;;  %v2461_v40 = vadd.s32 %v6963_v63, %v2425_v58 }
 0x3aa   : > { %vm2492_vm1 = vcmp.lt.s32.totalorder %v2460_v31, 600 }
 0x3ab   : > { %v2282_v27 = vpop.permute.xlu0 %2281  ;;  %2373 = vadd.xlane.f32.xlu0 %v2314_v16  ;;  %v2802_v17 = vsel %vm2801_vm6, %v2799_v8, %v2796_v35  ;;  %v7141_v26 = vsel %vm2492_vm1, 1.0, %v4255_v1  ;;  %vm2493_vm11 = vcmp.lt.s32.totalorder %v2461_v40, 600 }
 0x3ac   : > { %v2316_v48 = vmul.f32 %v2282_v27, %v6903_v23  ;;  %v3034_v59 = vadd.f32 %v2802_v17, %v2586_v56 }
 0x3ae   : > { %v3066_v36 = vmul.f32 %v7096_v3, %v3034_v59  ;;  %v3693_v3 = vsel %vm2491_vm12, 1.0, %v4255_v1  ;;  %v8509_v59 = vld [vmem:[#allocation21_spill] sm:$0xff] }
 0x3af   : > { %2377 = vadd.xlane.f32.xlu2 %v2316_v48 }
 0x3b0   : > { %v7130_v51 = vadd.f32 %v3192_v41, %v3066_v36 }
 0x3b3   : > { %v2336_v61 = vpop.xlane.xlu1 %2335 }
 0x3b4   : > { %v7134_v38 = vmul.f32 0.5, %v2336_v61 }
 0x3b6   : > { %v2620_v23 = vand.u32 2147483647, %v7134_v38  ;;  %v3100_v39 = vmul.f32 %v7141_v26, %v7134_v38  ;;  %v2588_v56 = vmax.f32 %v7134_v38, 0.0  ;;  %v7166_v38 = vsel %vm2493_vm11, 1.0, %v4255_v1 }
 0x3b8   : > { %v2652_v14 = vsub.f32 0.0, %v2620_v23  ;;  %v3233_v43 = vmul.f32 %v3761_v47, %v3100_v39  ;;  %v7163_v23 = vld [vmem:[%s4432_s15 + $0x28] sm:$0xff]  }
 0x3b9   : > { %v2334_v53 = vpop.xlane.xlu2 %2333 }
 0x3ba   : > { %v2692_v24 = vmul.f32 1.442695, %v2652_v14  ;;  %v2390_v15 = vmul.f32 0.5, %v2334_v53  ;;  %v3762_v53 = vunpack.c.h.bf16 %v7138_v52 }
 0x3bb   : > { %v2340_v10 = vpop.xlane.xlu1 %2339 }
 0x3bc   : > { %3998 = vpow2.f32 %v2692_v24  ;;  %v2619_v19 = vand.u32 2147483647, %v2390_v15  ;;  %v3099_v25 = vmul.f32 %v3693_v3, %v2390_v15  ;;  %v7150_v44 = vmul.f32 0.5, %v2340_v10 }
 0x3bd   : > { %v2587_v27 = vmax.f32 %v2390_v15, 0.0 }
 0x3be   : > { %v2651_v0 = vsub.f32 0.0, %v2619_v19  ;;  %v3232_v37 = vmul.f32 %v3758_v55, %v3099_v25  ;;  %v2622_v50 = vand.u32 2147483647, %v7150_v44 }
 0x3c0   : > { %v2690_v49 = vmul.f32 1.442695, %v2651_v0  ;;  %v3263_v21 = vadd.f32 %v7110_v11, %v3232_v37  ;;  %v2426_v11 = vadd.s32 80, %v6957_v57  ;;  %v2654_v9 = vsub.f32 0.0, %v2622_v50 }
 0x3c1   : > { %v2284_v42 = vpop.permute.xlu2 %2283 }
 0x3c2   : > { %v3999_v20 = vpop.eup %3998  ;;  %4000 = vpow2.f32 %v2690_v49  ;;  %v2317_v28 = vmul.f32 %v2284_v42, %v8508_v12  ;;  %v3264_v46 = vadd.f32 %v3263_v21, %v3233_v43  ;;  %v2462_v5 = vadd.s32 %v6963_v63, %v2426_v11 }
 0x3c3   : > { %v2812_v4 = vadd.f32 1.0, %v3999_v20  ;;  %v2815_v33 = vmul.f32 -0.5, %v3999_v20  ;;  %v2818_v45 = vand.u32 2147483647, %v3999_v20  ;;  %v2696_v54 = vmul.f32 1.442695, %v2654_v9 }
 0x3c4   : > { %2379 = vadd.xlane.f32.xlu0 %v2317_v28  ;;  %vm2494_vm15 = vcmp.lt.s32.totalorder %v2462_v5, 600 }
 0x3c5   : > { %4002 = vlog2.f32 %v2812_v4  ;;  %v2816_v2 = vadd.f32 1.0, %v2815_v33  ;;  %vm2819_vm7 = vcmp.lt.f32.partialorder %v2818_v45, 0.0004427343  ;;  %v7160_v61 = vsel %vm2494_vm15, 1.0, %v4255_v1 }
 0x3c6   : > { %v3102_v39 = vmul.f32 %v7160_v61, %v7150_v44 }
 0x3c7   : > { %v2817_v6 = vmul.f32 %v3999_v20, %v2816_v2  ;;  %v2430_v2 = vadd.s32 112, %v6957_v57 }
 0x3c8   : > { %v4001_v7 = vpop.eup %4000 }
 0x3c9   : > { %v2803_v22 = vadd.f32 1.0, %v4001_v7  ;;  %v2806_v13 = vmul.f32 -0.5, %v4001_v7  ;;  %v2809_v30 = vand.u32 2147483647, %v4001_v7 }
 0x3cb   : > { %v4003_v32 = vpop.eup %4002  ;;  %4004 = vlog2.f32 %v2803_v22  ;;  %v2807_v18 = vadd.f32 1.0, %v2806_v13  ;;  %vm2810_vm0 = vcmp.lt.f32.partialorder %v2809_v30, 0.0004427343  ;;  %v2428_v22 = vadd.s32 96, %v6957_v57 }
 0x3cc   : > { %v2814_v62 = vmul.f32 0.6931472, %v4003_v32  ;;  %4006 = vpow2.f32 %v2696_v54  ;;  %v2466_v54 = vadd.s32 %v6963_v63, %v2430_v2  ;;  %v2434_v2 = vadd.s32 144, %v6957_v57 }
 0x3cd   : > { %v2808_v8 = vmul.f32 %v4001_v7, %v2807_v18  ;;  %v2464_v45 = vadd.s32 %v6963_v63, %v2428_v22 }
 0x3ce   : > { %v2820_v41 = vsel %vm2819_vm7, %v2817_v6, %v2814_v62  ;;  %v2431_v62 = vadd.s32 120, %v6957_v57  ;;  %vm2498_vm14 = vcmp.lt.s32.totalorder %v2466_v54, 600 }
 0x3cf   : > { %v3036_v29 = vadd.f32 %v2820_v41, %v2588_v56  ;;  %vm2496_vm13 = vcmp.lt.s32.totalorder %v2464_v45, 600 }
 0x3d1   : > { %v4005_v16 = vpop.eup %4004  ;;  %v3068_v24 = vmul.f32 %v7141_v26, %v3036_v29 }
 0x3d2   : > { %v2805_v35 = vmul.f32 0.6931472, %v4005_v16  ;;  %v4007_v47 = vpop.eup %4006  ;;  %v2590_v16 = vmax.f32 %v7150_v44, 0.0 }
 0x3d3   : > { %v2286_v17 = vpop.permute.xlu1 %2285  ;;  %v2830_v52 = vadd.f32 1.0, %v4007_v47  ;;  %v2833_v20 = vmul.f32 -0.5, %v4007_v47  ;;  %v2836_v32 = vand.u32 2147483647, %v4007_v47 }
 0x3d4   : > { %v2811_v48 = vsel %vm2810_vm0, %v2808_v8, %v2805_v35  ;;  %v2318_v60 = vmul.f32 %v2286_v17, %v8509_v59 }
 0x3d5   : > { %v3035_v36 = vadd.f32 %v2811_v48, %v2587_v27  ;;  %v2834_v13 = vadd.f32 1.0, %v2833_v20  ;;  %vm7193_vm9 = vcmp.lt.f32.partialorder %v2836_v32, 0.0004427343  ;;  %v2467_v27 = vadd.s32 %v6963_v63, %v2431_v62  ;;  %v7204_v48 = vld [vmem:[%s4432_s15 + $0x30] sm:$0xff]  }
 0x3d6   : > { %v2338_v31 = vpop.xlane.xlu0 %2337  ;;  %2381 = vadd.xlane.f32.xlu1 %v2318_v60  ;;  %v2432_v60 = vadd.s32 128, %v6957_v57 }
 0x3d7   : > { %v3067_v34 = vmul.f32 %v3693_v3, %v3035_v36  ;;  %v7168_v14 = vmul.f32 0.5, %v2338_v31  ;;  %v3765_v3 = vunpack.c.l.bf16 %v7163_v23  ;;  %v2835_v18 = vmul.f32 %v4007_v47, %v2834_v13 }
 0x3d8   : > { %v2427_v36 = vadd.s32 88, %v6957_v57  ;;  %vm2499_vm2 = vcmp.lt.s32.totalorder %v2467_v27, 600 }
 0x3d9   : > { %v3194_v55 = vadd.f32 %v7130_v51, %v3067_v34  ;;  %v2621_v15 = vand.u32 2147483647, %v7168_v14  ;;  %v3101_v19 = vmul.f32 %v7166_v38, %v7168_v14  ;;  %v3235_v26 = vmul.f32 %v3765_v3, %v3102_v39 }
 0x3da   : > { %v2589_v17 = vmax.f32 %v7168_v14, 0.0  ;;  %v7209_v34 = vsel %vm2496_vm13, 1.0, %v4255_v1  ;;  %v7220_v3 = vsel %vm2498_vm14, 1.0, %v4255_v1 }
 0x3db   : > { %v2653_v25 = vsub.f32 0.0, %v2621_v15  ;;  %v7179_v0 = vadd.f32 %v3194_v55, %v3068_v24  ;;  %v3234_v37 = vmul.f32 %v3762_v53, %v3101_v19  ;;  %v7212_v53 = vld [vmem:[%s4432_s15 + $0x38] sm:$0xff]   ;;  %v3769_v55 = vunpack.c.l.bf16 %v7204_v48 }
 0x3dc   : > { %v2429_v15 = vadd.s32 104, %v6957_v57  ;;  %v2468_v19 = vadd.s32 %v6963_v63, %v2432_v60 }
 0x3dd   : > { %v2694_v43 = vmul.f32 1.442695, %v2653_v25  ;;  %v3265_v49 = vadd.f32 %v3264_v46, %v3234_v37 }
 0x3de   : > { %v2344_v51 = vpop.xlane.xlu0 %2343  ;;  %vm2500_vm10 = vcmp.lt.s32.totalorder %v2468_v19, 600 }
 0x3df   : > { %4008 = vpow2.f32 %v2694_v43  ;;  %v7181_v21 = vmul.f32 0.5, %v2344_v51  ;;  %v7183_v10 = vadd.f32 %v3265_v49, %v3235_v26  ;;  %v2463_v43 = vadd.s32 %v6963_v63, %v2427_v36 }
 0x3e0   : > { %4010 = vlog2.f32 %v2830_v52  ;;  %v3773_v52 = vunpack.c.l.bf16 %v7212_v53 }
 0x3e1   : > { %v2624_v42 = vand.u32 2147483647, %v7181_v21  ;;  %v3104_v37 = vmul.f32 %v7209_v34, %v7181_v21  ;;  %v2592_v20 = vmax.f32 %v7181_v21, 0.0  ;;  %vm2495_vm4 = vcmp.lt.s32.totalorder %v2463_v43, 600 }
 0x3e3   : > { %v2656_v28 = vsub.f32 0.0, %v2624_v42 }
 0x3e5   : > { %v4009_v12 = vpop.eup %4008  ;;  %v2700_v11 = vmul.f32 1.442695, %v2656_v28  ;;  %v2465_v28 = vadd.s32 %v6963_v63, %v2429_v15 }
 0x3e6   : > { %v2821_v4 = vadd.f32 1.0, %v4009_v12  ;;  %v2348_v7 = vpop.xlane.xlu0 %2347  ;;  %v4011_v33 = vpop.eup %4010  ;;  %v2824_v50 = vmul.f32 -0.5, %v4009_v12  ;;  %v2827_v30 = vand.u32 2147483647, %v4009_v12 }
 0x3e7   : > { %v7187_v46 = vmul.f32 0.5, %v2348_v7  ;;  %v2832_v9 = vmul.f32 0.6931472, %v4011_v33  ;;  %vm2497_vm8 = vcmp.lt.s32.totalorder %v2465_v28, 600 }
 0x3e8   : > { %4012 = vlog2.f32 %v2821_v4  ;;  %v2825_v58 = vadd.f32 1.0, %v2824_v50  ;;  %vm2828_vm3 = vcmp.lt.f32.partialorder %v2827_v30, 0.0004427343  ;;  %v7245_v50 = vld [vmem:[%s4432_s15 + $0x40] sm:$0xff]  }
 0x3e9   : > { %v2626_v5 = vand.u32 2147483647, %v7187_v46  ;;  %4014 = vpow2.f32 %v2700_v11  ;;  %v2838_v41 = vsel %vm7193_vm9, %v2835_v18, %v2832_v9  ;;  %v3106_v33 = vmul.f32 %v7220_v3, %v7187_v46 }
 0x3ea   : > { %v2826_v56 = vmul.f32 %v4009_v12, %v2825_v58  ;;  %v3038_v29 = vadd.f32 %v2838_v41, %v2590_v16  ;;  %v2433_v11 = vadd.s32 136, %v6957_v57  ;;  %v7251_v58 = vsel %vm2500_vm10, 1.0, %v4255_v1 }
 0x3eb   : > { %v2658_v59 = vsub.f32 0.0, %v2626_v5  ;;  %v3777_v18 = vunpack.c.l.bf16 %v7245_v50  ;;  %v7257_v5 = vsel %vm2495_vm4, 1.0, %v4255_v1  ;;  %v2594_v6 = vmax.f32 %v7187_v46, 0.0 }
 0x3ec   : > { %v3070_v25 = vmul.f32 %v7160_v61, %v3038_v29  ;;  %v3774_v61 = vunpack.c.h.bf16 %v7212_v53  ;;  %v7260_v54 = vmul.f32 %v3773_v52, %v3106_v33  ;;  %v2469_v27 = vadd.s32 %v6963_v63, %v2433_v11 }
 0x3ed   : > { %v2704_v39 = vmul.f32 1.442695, %v2658_v59  ;;  %v2470_v59 = vadd.s32 %v6963_v63, %v2434_v2 }
 0x3ee   : > { %v4013_v40 = vpop.eup %4012  ;;  %v2350_v35 = vpop.xlane.xlu0 %2349  ;;  %vm2501_vm6 = vcmp.lt.s32.totalorder %v2469_v27, 600  ;;  %v7324_v27 = vadd.s32 160, %v6957_v57 }
 0x3ef   : > { %v2823_v8 = vmul.f32 0.6931472, %v4013_v40  ;;  %v7214_v24 = vmul.f32 0.5, %v2350_v35  ;;  %v4015_v14 = vpop.eup %4014  ;;  %4016 = vpow2.f32 %v2704_v39  ;;  %v3766_v40 = vunpack.c.h.bf16 %v7163_v23 }
 0x3f0   : > { %v2848_v49 = vadd.f32 1.0, %v4015_v14  ;;  %v2851_v4 = vmul.f32 -0.5, %v4015_v14  ;;  %v2854_v9 = vand.u32 2147483647, %v4015_v14  ;;  %vm2502_vm1 = vcmp.lt.s32.totalorder %v2470_v59, 600 }
 0x3f1   : > { %v2829_v44 = vsel %vm2828_vm3, %v2826_v56, %v2823_v8  ;;  %v2627_v51 = vand.u32 2147483647, %v7214_v24  ;;  %v7267_v8 = vsel %vm2497_vm8, 1.0, %v4255_v1  ;;  %v2595_v23 = vmax.f32 %v7214_v24, 0.0 }
 0x3f2   : > { %v3037_v31 = vadd.f32 %v2829_v44, %v2589_v17  ;;  %4018 = vlog2.f32 %v2848_v49  ;;  %v2852_v62 = vadd.f32 1.0, %v2851_v4  ;;  %vm7271_vm5 = vcmp.lt.f32.partialorder %v2854_v9, 0.0004427343 }
 0x3f3   : > { %v2659_v13 = vsub.f32 0.0, %v2627_v51  ;;  %v3770_v44 = vunpack.c.h.bf16 %v7204_v48  ;;  %v2438_v49 = vadd.s32 176, %v6957_v57  ;;  %v7306_v11 = vsel %vm2501_vm6, 1.0, %v4255_v1 }
 0x3f4   : > { %v3069_v47 = vmul.f32 %v7166_v38, %v3037_v31  ;;  %v7230_v38 = vsel %vm2499_vm2, 1.0, %v4255_v1  ;;  %v2853_v31 = vmul.f32 %v4015_v14, %v2852_v62  ;;  %v3778_v14 = vunpack.c.h.bf16 %v7245_v50 }
 0x3f5   : > { %v7264_v41 = vpop.eup %4016  ;;  %v2706_v35 = vmul.f32 1.442695, %v2659_v13  ;;  %v7309_v2 = vsel %vm2502_vm1, 1.0, %v4255_v1 }
 0x3f6   : > { %v3196_v26 = vadd.f32 %v7179_v0, %v3069_v47  ;;  %v2352_v42 = vpop.xlane.xlu0 %2351  ;;  %v7240_v0 = vmul.f32 %v3769_v55, %v3104_v37  ;;  %v3107_v55 = vmul.f32 %v7230_v38, %v7214_v24  ;;  %v2866_v39 = vadd.f32 1.0, %v7264_v41 }
 0x3f7   : > { %v7235_v12 = vmul.f32 0.5, %v2352_v42  ;;  %4020 = vpow2.f32 %v2706_v35  ;;  %v2869_v51 = vmul.f32 -0.5, %v7264_v41  ;;  %v2872_v33 = vand.u32 2147483647, %v7264_v41 }
 0x3f8   : > { %v7238_v7 = vadd.f32 %v3196_v26, %v3070_v25  ;;  %v4019_v36 = vpop.eup %4018  ;;  %v7289_v26 = vld [vmem:[%s4432_s15 + $0x48] sm:$0xff]  }
 0x3f9   : > { %v2628_v22 = vand.u32 2147483647, %v7235_v12  ;;  %v2850_v43 = vmul.f32 0.6931472, %v4019_v36  ;;  %v3781_v9 = vunpack.c.l.bf16 %v7289_v26  ;;  %v3108_v35 = vmul.f32 %v7251_v58, %v7235_v12  ;;  %v7340_v36 = vld [vmem:[%s4432_s15 + $0x58] sm:$0xff]  }
 0x3fa   : > { %v2342_v32 = vpop.xlane.xlu2 %2341  ;;  %vm7332_vm12 = vcmp.lt.f32.partialorder %v2872_v33, 0.0004427343 }
 0x3fb   : > { %v7253_v45 = vmul.f32 0.5, %v2342_v32  ;;  %v2660_v30 = vsub.f32 0.0, %v2628_v22  ;;  %v7297_v22 = vmul.f32 %v3774_v61, %v3107_v55  ;;  %v2856_v53 = vsel %vm7271_vm5, %v2853_v31, %v2850_v43 }
 0x3fc   : > { %v3040_v55 = vadd.f32 %v2856_v53, %v2592_v20 }
 0x3fd   : > { %v2623_v16 = vand.u32 2147483647, %v7253_v45  ;;  %v2708_v15 = vmul.f32 1.442695, %v2660_v30  ;;  %v3103_v25 = vmul.f32 %v7257_v5, %v7253_v45  ;;  %v2474_v30 = vadd.s32 %v6963_v63, %v2438_v49 }
 0x3fe   : > { %v2346_v56 = vpop.xlane.xlu1 %2345  ;;  %v2354_v17 = vpop.xlane.xlu0 %2353 }
 0x3ff   : > { %v2655_v29 = vsub.f32 0.0, %v2623_v16  ;;  %v7279_v47 = vmul.f32 0.5, %v2346_v56  ;;  %v7284_v37 = vmul.f32 0.5, %v2354_v17  ;;  %v3236_v13 = vmul.f32 %v3766_v40, %v3103_v25  ;;  %v7318_v40 = vpop.eup %4020 }
 0x400   : > { %v2870_v16 = vadd.f32 1.0, %v2869_v51  ;;  %v2435_v56 = vadd.s32 152, %v6957_v57 }
 0x401   : > { %v2698_v19 = vmul.f32 1.442695, %v2655_v29  ;;  %v2625_v52 = vand.u32 2147483647, %v7279_v47  ;;  %v2629_v28 = vand.u32 2147483647, %v7284_v37  ;;  %v3267_v60 = vadd.f32 %v7183_v10, %v3236_v13 }
 0x402   : > { %v2356_v4 = vpop.xlane.xlu2 %2355  ;;  %v3105_v29 = vmul.f32 %v7267_v8, %v7279_v47 }
 0x403   : > { %4022 = vpow2.f32 %v2698_v19  ;;  %v2657_v42 = vsub.f32 0.0, %v2625_v52  ;;  %v2661_v61 = vsub.f32 0.0, %v2629_v28  ;;  %v7314_v62 = vmul.f32 0.5, %v2356_v4 }
 0x404   : > { %4024 = vpow2.f32 %v2708_v15  ;;  %v2596_v15 = vmax.f32 %v7235_v12, 0.0 }
 0x405   : > { %4026 = vlog2.f32 %v2866_v39  ;;  %v2702_v32 = vmul.f32 1.442695, %v2657_v42  ;;  %v2710_v19 = vmul.f32 1.442695, %v2661_v61 }
 0x407   : > { %4028 = vpow2.f32 %v2702_v32 }
 0x409   : > { %v7330_v17 = vpop.eup %4022 }
 0x40a   : > { %v7342_v31 = vpop.eup %4024  ;;  %v2839_v39 = vadd.f32 1.0, %v7330_v17 }
 0x40b   : > { %4125 = shalt.err (!%p4122_p1)
}
 0x40c   : > { %s4256_s9 = smov 128   ;;  %s4257_s8 = smov 8   ;;  %v4027_v21 = vpop.eup %4026  ;;  %v2875_v10 = vadd.f32 1.0, %v7318_v40  ;;  %v2842_v20 = vmul.f32 -0.5, %v7330_v17  ;;  %v2630_v25 = vand.u32 2147483647, %v7314_v62  ;;  %v2871_v52 = vmul.f32 %v7264_v41, %v2870_v16  ;;  %v2364_v51 = vpop.xlane.xlu1 %2363 }
 0x40d   : > { %3838 = dma.vmem_to_hbm [thread:$0]  (%p4363_p5), %s7326_s16, 4096, %s7328_s17, %s3299_s29, %s4256_s9, %s4256_s9, %s4257_s8   ;;  %vm2506_vm7 = vcmp.lt.s32.totalorder %v2474_v30, 600  ;;  %v7369_v43 = vmul.f32 %v3777_v18, %v3108_v35  ;;  %4030 = vlog2.f32 %v2839_v39  ;;  %v3789_v49 = vunpack.c.l.bf16 %v7340_v36  ;;  %v4029_v18 = vpop.eup %4028  ;;  %v2358_v35 = vpop.xlane.xlu0 %2357 }
 0x40e   : > { %v2884_v42 = vadd.f32 1.0, %v7342_v31  ;;  %v3238_v28 = vmul.f32 %v3770_v44, %v3105_v29  ;;  %v3268_v4 = vadd.f32 %v3267_v60, %v7240_v0  ;;  %v2662_v33 = vsub.f32 0.0, %v2630_v25  ;;  %s3723_s12 = sshll.u32 %s4236_s25, 3  ;;  %s3335_s13 = sshll.u32 %s4436_s14, 4  ;;  %s3336_s13 = int_to_ptr.vmem [resolvable:$true] %s3335_s13 }
 0x40f   : > { %v2868_v13 = vmul.f32 0.6931472, %v4027_v21  ;;  %v2878_v32 = vmul.f32 -0.5, %v7318_v40  ;;  %4032 = vpow2.f32 %v2710_v19  ;;  %v7378_v41 = vsel %vm2506_vm7, 1.0, %v4255_v1  ;;  %s3333_s11 = scalar_lea.hbm %s7885_s5, %s3723_s12  ;;  %s8547_s17 = sand.u32 1, %s4212_s19  }
 0x410   : > { %v7381_v53 = vmul.f32 %v7209_v34, %v3040_v55  ;;  %4034 = vlog2.f32 %v2875_v10  ;;  %v2843_v61 = vadd.f32 1.0, %v2842_v20  ;;  %v7383_v30 = vmul.f32 0.5, %v2364_v51  ;;  %s3337_s16 = sshll.u32 %s3333_s11, 4  ;;  %s3304_s25 = scalar_lea.sflag [#allocation5], %s8547_s17  ;;  %s3338_s16 = int_to_ptr.hbm [resolvable:$true] %s3337_s16 }
 0x411   : > { %v2845_v48 = vand.u32 2147483647, %v7330_v17  ;;  %v2857_v44 = vadd.f32 1.0, %v4029_v18  ;;  %v7387_v0 = vadd.s32 %v6963_v63, %v2435_v56  ;;  %v3782_v16 = vunpack.c.h.bf16 %v7289_v26  ;;  %s4140_s20 = sshra.s32 %s3338_s16, 4  ;;  %s4146_s24 = scalar_lea.hbm %s7885_s5, 16  ;;  %s4141_s20 = int_to_ptr.hbm [resolvable:$true] %s4140_s20 }
 0x412   : > { %4036 = vlog2.f32 %v2884_v42  ;;  %v2860_v60 = vmul.f32 -0.5, %v4029_v18  ;;  %v3269_v29 = vadd.f32 %v3268_v4, %v3238_v28  ;;  %v2712_v39 = vmul.f32 1.442695, %v2662_v33  ;;  %s4142_s29 = scalar_lea.hbm %s4141_s20, 8  ;;  %p4147_p4 = scmp.lt.s32.totalorder %s4141_s20, %s7885_s5 }
 0x413   : > { %v4031_v19 = vpop.eup %4030  ;;  %v2874_v34 = vsel %vm7332_vm12, %v2871_v52, %v2868_v13  ;;  %v2879_v55 = vadd.f32 1.0, %v2878_v32  ;;  %v2881_v21 = vand.u32 2147483647, %v7318_v40  ;;  %4038 = vlog2.f32 %v2857_v44  ;;  %p4143_p5 = scmp.ne.s32.totalorder %s4141_s20, %s4142_s29  ;;  %p4148_p6 = scmp.lt.s32.totalorder %s4146_s24, %s4142_s29 }
 0x414   : > { %v2841_v10 = vmul.f32 0.6931472, %v4031_v19  ;;  %v2844_v20 = vmul.f32 %v7330_v17, %v2843_v61  ;;  %v2634_v56 = vand.u32 2147483647, %v7383_v30  ;;  %v7395_v25 = vmul.f32 0.5, %v2358_v35 }
 0x415   : > { %v7397_v51 = vpop.eup %4032  ;;  %v2887_v42 = vmul.f32 -0.5, %v7342_v31  ;;  %v2591_v28 = vmax.f32 %v7253_v45, 0.0  ;;  %vm2846_vm0 = vcmp.lt.f32.partialorder %v2845_v48, 0.0004427343  ;;  %v7403_v59 = vadd.s32 %v6963_v63, %v7324_v27  ;;  %v2360_v48 = vpop.xlane.xlu2 %2359  ;;  %p4144_p3 = pnand %p4143_p5, %p4396_p12  ;;  %p4149_p8 = por %p4148_p6, %p4147_p4 }
 0x416   : > { %v4035_v52 = vpop.eup %4034  ;;  %v2847_v4 = vsel %vm2846_vm0, %v2844_v20, %v2841_v10  ;;  %v2861_v33 = vadd.f32 1.0, %v2860_v60  ;;  %v3270_v17 = vadd.f32 %v3269_v29, %v7260_v54  ;;  %4040 = vpow2.f32 %v2712_v39 }
 0x417   : > { %vm2503_vm15 = vcmp.lt.s32.totalorder %v7387_v0, 600  ;;  %v3042_v13 = vadd.f32 %v2874_v34, %v2594_v6  ;;  %vm7409_vm11 = vcmp.lt.f32.partialorder %v2881_v21, 0.0004427343  ;;  %v3039_v45 = vadd.f32 %v2847_v4, %v2591_v28  ;;  %p4145_p2 = pneg %p4144_p3 }
 0x418   : > { %v2863_v61 = vand.u32 2147483647, %v4029_v18  ;;  %v4037_v27 = vpop.eup %4036  ;;  %v2880_v44 = vmul.f32 %v7318_v40, %v2879_v55  ;;  %v2893_v35 = vadd.f32 1.0, %v7397_v51  ;;  %v2666_v60 = vsub.f32 0.0, %v2634_v56 }
 0x419   : > { %v2631_v54 = vand.u32 2147483647, %v7395_v25  ;;  %v4039_v29 = vpop.eup %4038  ;;  %v2877_v39 = vmul.f32 0.6931472, %v4035_v52  ;;  %v2888_v19 = vadd.f32 1.0, %v2887_v42  ;;  %v2593_v46 = vmax.f32 %v7279_v47, 0.0  ;;  %p4150_p9 = pnand %p4149_p8, %p4145_p2 }
 0x41a   : > { %v3109_v6 = vmul.f32 %v7306_v11, %v7284_v37  ;;  %v2859_v34 = vmul.f32 0.6931472, %v4039_v29  ;;  %v2862_v21 = vmul.f32 %v4029_v18, %v2861_v33  ;;  %v3271_v10 = vadd.f32 %v3270_v17, %v7297_v22 }
 0x41b   : > { %v7420_v20 = vmul.f32 0.5, %v2360_v48  ;;  %v2890_v40 = vand.u32 2147483647, %v7342_v31  ;;  %v3071_v55 = vmul.f32 %v7257_v5, %v3039_v45  ;;  %vm7424_vm9 = vcmp.lt.f32.partialorder %v2863_v61, 0.0004427343 }
 0x41c   : > { %v2597_v42 = vmax.f32 %v7284_v37, 0.0  ;;  %v7429_v47 = vpop.eup %4040  ;;  %v2865_v28 = vsel %vm7424_vm9, %v2862_v21, %v2859_v34  ;;  %4042 = vlog2.f32 %v2893_v35  ;;  %v2720_v18 = vmul.f32 1.442695, %v2666_v60 }
 0x41d   : > { %v2663_v22 = vsub.f32 0.0, %v2631_v54  ;;  %v7434_v52 = vmul.f32 %v7220_v3, %v3042_v13  ;;  %v2883_v5 = vsel %vm7409_vm11, %v2880_v44, %v2877_v39  ;;  %v2886_v4 = vmul.f32 0.6931472, %v4037_v27  ;;  %v2362_v27 = vpop.xlane.xlu0 %2361 }
 0x41e   : > { %v3242_v33 = vmul.f32 %v3778_v14, %v3109_v6  ;;  %v2889_v17 = vmul.f32 %v7342_v31, %v2888_v19  ;;  %v3272_v45 = vadd.f32 %v3271_v10, %v7369_v43  ;;  %v3110_v61 = vmul.f32 %v7309_v2, %v7314_v62 }
 0x41f   : > { %v2632_v48 = vand.u32 2147483647, %v7420_v20  ;;  %v3198_v35 = vadd.f32 %v7238_v7, %v3071_v55  ;;  %v3041_v3 = vadd.f32 %v2865_v28, %v2593_v46  ;;  %v2896_v13 = vmul.f32 -0.5, %v7397_v51 }
 0x420   : > { %v2902_v32 = vadd.f32 1.0, %v7429_v47  ;;  %vm7448_vm13 = vcmp.lt.f32.partialorder %v2890_v40, 0.0004427343  ;;  %4044 = vpow2.f32 %v2720_v18  ;;  %v2714_v14 = vmul.f32 1.442695, %v2663_v22  ;;  %v2370_v22 = vpop.xlane.xlu1 %2369 }
 0x421   : > { %v2664_v31 = vsub.f32 0.0, %v2632_v48  ;;  %v3043_v43 = vadd.f32 %v2883_v5, %v2595_v23  ;;  %v2892_v44 = vsel %vm7448_vm13, %v2889_v17, %v2886_v4  ;;  %v7459_v7 = vsel %vm2503_vm15, 1.0, %v4255_v1 }
 0x422   : > { %vm2504_vm3 = vcmp.lt.s32.totalorder %v7403_v59, 600  ;;  %v4043_v60 = vpop.eup %4042  ;;  %v3273_v54 = vadd.f32 %v3272_v45, %v3242_v33  ;;  %v2598_v29 = vmax.f32 %v7314_v62, 0.0  ;;  %v3243_v39 = vmul.f32 %v3781_v9, %v3110_v61  ;;  %v7495_v59 = vld [vmem:[%s4432_s15 + $0x50] sm:$0xff]  }
 0x423   : > { %v7465_v19 = vmul.f32 0.5, %v2362_v27  ;;  %v3073_v24 = vmul.f32 %v7267_v8, %v3041_v3  ;;  %v3199_v23 = vadd.f32 %v3198_v35, %v7381_v53  ;;  %v2897_v46 = vadd.f32 1.0, %v2896_v13 }
 0x424   : > { %4046 = vlog2.f32 %v2902_v32  ;;  %v3044_v0 = vadd.f32 %v2892_v44, %v2596_v15  ;;  %v2899_v6 = vand.u32 2147483647, %v7397_v51  ;;  %v2716_v34 = vmul.f32 1.442695, %v2664_v31 }
 0x425   : > { %4048 = vpow2.f32 %v2714_v14  ;;  %v3075_v21 = vmul.f32 %v7230_v38, %v3043_v43  ;;  %v2895_v10 = vmul.f32 0.6931472, %v4043_v60  ;;  %v3114_v9 = vmul.f32 %v7378_v41, %v7383_v30 }
 0x426   : > { %v2437_v8 = vadd.s32 168, %v6957_v57  ;;  %v7476_v40 = vpop.eup %4044  ;;  %v3274_v53 = vadd.f32 %v3273_v54, %v3243_v39  ;;  %v2602_v55 = vmax.f32 %v7383_v30, 0.0  ;;  %v7482_v12 = vsel %vm2504_vm3, 1.0, %v4255_v1 }
 0x427   : > { %v2633_v15 = vand.u32 2147483647, %v7465_v19  ;;  %v3200_v38 = vadd.f32 %v3199_v23, %v3073_v24  ;;  %v2898_v56 = vmul.f32 %v7397_v51, %v2897_v46  ;;  %v2905_v28 = vmul.f32 -0.5, %v7429_v47 }
 0x428   : > { %v3111_v18 = vmul.f32 %v7459_v7, %v7395_v25  ;;  %v3076_v5 = vmul.f32 %v7251_v58, %v3044_v0  ;;  %vm7490_vm14 = vcmp.lt.f32.partialorder %v2899_v6, 0.0004427343  ;;  %4050 = vpow2.f32 %v2716_v34  ;;  %v2366_v0 = vpop.xlane.xlu2 %2365 }
 0x429   : > { %v2665_v33 = vsub.f32 0.0, %v2633_v15  ;;  %v2901_v51 = vsel %vm7490_vm14, %v2898_v56, %v2895_v10  ;;  %v2938_v45 = vadd.f32 1.0, %v7476_v40  ;;  %v7502_v61 = vmul.f32 %v3789_v49, %v3114_v9 }
 0x42a   : > { %v4047_v17 = vpop.eup %4046  ;;  %v2473_v58 = vadd.s32 %v6963_v63, %v2437_v8  ;;  %v2908_v35 = vand.u32 2147483647, %v7429_v47  ;;  %v2599_v3 = vmax.f32 %v7395_v25, 0.0  ;;  %v7509_v32 = vmul.f32 0.5, %v2370_v22 }
 0x42b   : > { %v7505_v48 = vpop.eup %4048  ;;  %v2718_v13 = vmul.f32 1.442695, %v2665_v33  ;;  %v3201_v27 = vadd.f32 %v3200_v38, %v7434_v52  ;;  %v2906_v50 = vadd.f32 1.0, %v2905_v28  ;;  %v3244_v14 = vmul.f32 %v3782_v16, %v3111_v18 }
 0x42c   : > { %v3785_v49 = vunpack.c.l.bf16 %v7495_v59  ;;  %v3045_v31 = vadd.f32 %v2901_v51, %v2597_v42  ;;  %v2941_v43 = vmul.f32 -0.5, %v7476_v40  ;;  %v3112_v44 = vmul.f32 %v7482_v12, %v7420_v20 }
 0x42d   : > { %4052 = vpow2.f32 %v2718_v13  ;;  %v2904_v60 = vmul.f32 0.6931472, %v4047_v17  ;;  %v2911_v54 = vadd.f32 1.0, %v7505_v48  ;;  %vm2505_vm2 = vcmp.lt.s32.totalorder %v2473_v58, 600 }
 0x42e   : > { %4054 = vlog2.f32 %v2938_v45  ;;  %v7521_v52 = vpop.eup %4050  ;;  %vm7523_vm10 = vcmp.lt.f32.partialorder %v2908_v35, 0.0004427343  ;;  %v2944_v37 = vand.u32 2147483647, %v7476_v40  ;;  %v3275_v16 = vadd.f32 %v3274_v53, %v3244_v14 }
 0x42f   : > { %v2637_v42 = vand.u32 2147483647, %v7509_v32  ;;  %v3202_v39 = vadd.f32 %v3201_v27, %v3075_v21  ;;  %v2907_v24 = vmul.f32 %v7429_v47, %v2906_v50  ;;  %v2600_v23 = vmax.f32 %v7420_v20, 0.0  ;;  %v2368_v47 = vpop.xlane.xlu0 %2367 }
 0x430   : > { %v3786_v46 = vunpack.c.h.bf16 %v7495_v59  ;;  %v3077_v6 = vmul.f32 %v7306_v11, %v3045_v31  ;;  %v3245_v34 = vmul.f32 %v3785_v49, %v3112_v44  ;;  %v7534_v10 = vsel %vm2505_vm2, 1.0, %v4255_v1  ;;  %v7564_v44 = vld [vmem:[%s4432_s15 + $0x60] sm:$0xff]  }
 0x431   : > { %v2669_v9 = vsub.f32 0.0, %v2637_v42  ;;  %v2910_v8 = vsel %vm7523_vm10, %v2907_v24, %v2904_v60  ;;  %v2942_v53 = vadd.f32 1.0, %v2941_v43  ;;  %4056 = vlog2.f32 %v2911_v54 }
 0x432   : > { %v2920_v21 = vadd.f32 1.0, %v7521_v52  ;;  %vm7541_vm4 = vcmp.lt.f32.partialorder %v2944_v37, 0.0004427343  ;;  %v3276_v11 = vadd.f32 %v3275_v16, %v3245_v34  ;;  %v2441_v56 = vadd.s32 200, %v6957_v57 }
 0x433   : > { %v7539_v15 = vpop.eup %4052  ;;  %v7546_v28 = vmul.f32 0.5, %v2366_v0  ;;  %v3203_v22 = vadd.f32 %v3202_v39, %v3076_v5  ;;  %v2914_v4 = vmul.f32 -0.5, %v7505_v48  ;;  %v3113_v59 = vmul.f32 %v7534_v10, %v7465_v19 }
 0x434   : > { %v4055_v18 = vpop.eup %4054  ;;  %v2726_v33 = vmul.f32 1.442695, %v2669_v9  ;;  %v3046_v17 = vadd.f32 %v2910_v8, %v2598_v29  ;;  %v2601_v51 = vmax.f32 %v7465_v19, 0.0  ;;  %v2929_v45 = vadd.f32 1.0, %v7539_v15  ;;  %v2376_v8 = vpop.xlane.xlu1 %2375 }
 0x435   : > { %v7555_v58 = vmul.f32 0.5, %v2368_v47  ;;  %v2943_v35 = vmul.f32 %v7476_v40, %v2942_v53  ;;  %v2917_v5 = vand.u32 2147483647, %v7505_v48  ;;  %4058 = vlog2.f32 %v2920_v21 }
 0x436   : > { %v2439_v13 = vadd.s32 184, %v6957_v57  ;;  %v2940_v27 = vmul.f32 0.6931472, %v4055_v18  ;;  %v2923_v50 = vmul.f32 -0.5, %v7521_v52  ;;  %v2477_v62 = vadd.s32 %v6963_v63, %v2441_v56 }
 0x437   : > { %v2635_v29 = vand.u32 2147483647, %v7546_v28  ;;  %v4057_v14 = vpop.eup %4056  ;;  %v3204_v49 = vadd.f32 %v3203_v22, %v3077_v6  ;;  %v2915_v31 = vadd.f32 1.0, %v2914_v4  ;;  %v3246_v43 = vmul.f32 %v3786_v46, %v3113_v59 }
 0x438   : > { %4060 = vpow2.f32 %v2726_v33  ;;  %v2440_v60 = vadd.s32 192, %v6957_v57  ;;  %v2636_v54 = vand.u32 2147483647, %v7555_v58  ;;  %v3078_v26 = vmul.f32 %v7309_v2, %v3046_v17 }
 0x439   : > { %4062 = vlog2.f32 %v2929_v45  ;;  %v2667_v40 = vsub.f32 0.0, %v2635_v29  ;;  %vm7569_vm8 = vcmp.lt.f32.partialorder %v2917_v5, 0.0004427343  ;;  %v2926_v16 = vand.u32 2147483647, %v7521_v52  ;;  %v2372_v29 = vpop.xlane.xlu2 %2371 }
 0x43a   : > { %v2475_v42 = vadd.s32 %v6963_v63, %v2439_v13  ;;  %v2946_v39 = vsel %vm7541_vm4, %v2943_v35, %v2940_v27  ;;  %v2913_v24 = vmul.f32 0.6931472, %v4057_v14  ;;  %v2924_v46 = vadd.f32 1.0, %v2923_v50 }
 0x43b   : > { %vm2509_vm5 = vcmp.lt.s32.totalorder %v2477_v62, 600  ;;  %v4059_v0 = vpop.eup %4058  ;;  %v2932_v6 = vmul.f32 -0.5, %v7539_v15  ;;  %v3794_v34 = vunpack.c.h.bf16 %v7564_v44  ;;  %v2722_v2 = vmul.f32 1.442695, %v2667_v40 }
 0x43c   : > { %v2668_v9 = vsub.f32 0.0, %v2636_v54  ;;  %v3205_v53 = vadd.f32 %v3204_v49, %v3078_v26  ;;  %v2916_v21 = vmul.f32 %v7505_v48, %v2915_v31  ;;  %v3277_v47 = vadd.f32 %v3276_v11, %v3246_v43 }
 0x43d   : > { %v2476_v56 = vadd.s32 %v6963_v63, %v2440_v60  ;;  %v3050_v38 = vadd.f32 %v2946_v39, %v2602_v55  ;;  %vm7585_vm6 = vcmp.lt.f32.partialorder %v2926_v16, 0.0004427343  ;;  %v7590_v4 = vsel %vm2509_vm5, 1.0, %v4255_v1 }
 0x43e   : > { %v7581_v18 = vpop.eup %4060  ;;  %vm2507_vm1 = vcmp.lt.s32.totalorder %v2475_v42, 600  ;;  %v2919_v48 = vsel %vm7569_vm8, %v2916_v21, %v2913_v24  ;;  %v2922_v11 = vmul.f32 0.6931472, %v4059_v0  ;;  %v2925_v33 = vmul.f32 %v7521_v52, %v2924_v46  ;;  %v7641_v46 = vld [vmem:[%s4432_s15 + $0x70] sm:$0xff]  }
 0x43f   : > { %v4063_v59 = vpop.eup %4062  ;;  %v7595_v17 = vmul.f32 0.5, %v2376_v8  ;;  %v2933_v45 = vadd.f32 1.0, %v2932_v6  ;;  %v2935_v30 = vand.u32 2147483647, %v7539_v15  ;;  %4064 = vpow2.f32 %v2722_v2  ;;  %v2374_v2 = vpop.xlane.xlu0 %2373 }
 0x440   : > { %v2724_v55 = vmul.f32 1.442695, %v2668_v9  ;;  %v2965_v35 = vadd.f32 1.0, %v7581_v18  ;;  %v7600_v5 = vsel %vm2507_vm1, 1.0, %v4255_v1  ;;  %vm2508_vm12 = vcmp.lt.s32.totalorder %v2476_v56, 600 }
 0x441   : > { %v2444_v13 = vadd.s32 224, %v6957_v57  ;;  %v7604_v27 = vmul.f32 %v7378_v41, %v3050_v38  ;;  %v3047_v52 = vadd.f32 %v2919_v48, %v2599_v3  ;;  %v2931_v50 = vmul.f32 0.6931472, %v4063_v59 }
 0x442   : > { %v2605_v62 = vmax.f32 %v7509_v32, 0.0  ;;  %v2928_v14 = vsel %vm7585_vm6, %v2925_v33, %v2922_v11  ;;  %v3117_v49 = vmul.f32 %v7590_v4, %v7509_v32  ;;  %v3790_v31 = vunpack.c.h.bf16 %v7340_v36 }
 0x443   : > { %v2640_v43 = vand.u32 2147483647, %v7595_v17  ;;  %v2934_v41 = vmul.f32 %v7539_v15, %v2933_v45  ;;  %v3115_v25 = vmul.f32 %v7600_v5, %v7546_v28  ;;  %v7619_v3 = vsel %vm2508_vm12, 1.0, %v4255_v1 }
 0x444   : > { %4066 = vpow2.f32 %v2724_v55  ;;  %vm7621_vm7 = vcmp.lt.f32.partialorder %v2935_v30, 0.0004427343  ;;  %v2480_v60 = vadd.s32 %v6963_v63, %v2444_v13  ;;  %v7626_v36 = vmul.f32 0.5, %v2372_v29  ;;  %v2378_v55 = vpop.xlane.xlu2 %2377 }
 0x445   : > { %4068 = vlog2.f32 %v2965_v35  ;;  %v7628_v54 = vpop.eup %4064  ;;  %v3079_v15 = vmul.f32 %v7459_v7, %v3047_v52  ;;  %v3048_v26 = vadd.f32 %v2928_v14, %v2600_v23  ;;  %v2937_v37 = vsel %vm7621_vm7, %v2934_v41, %v2931_v50 }
 0x446   : > { %v2968_v16 = vmul.f32 -0.5, %v7581_v18  ;;  %v3278_v42 = vadd.f32 %v3277_v47, %v7502_v61  ;;  %v3793_v39 = vunpack.c.l.bf16 %v7564_v44  ;;  %v3116_v24 = vmul.f32 %v7619_v3, %v7555_v58 }
 0x447   : > { %v2672_v0 = vsub.f32 0.0, %v2640_v43  ;;  %v3206_v6 = vadd.f32 %v3205_v53, %v3079_v15  ;;  %v3250_v7 = vmul.f32 %v3794_v34, %v3117_v49  ;;  %v2603_v20 = vmax.f32 %v7546_v28, 0.0 }
 0x448   : > { %v3248_v23 = vmul.f32 %v3790_v31, %v3115_v25  ;;  %v3049_v9 = vadd.f32 %v2937_v37, %v2601_v51  ;;  %v2947_v8 = vadd.f32 1.0, %v7628_v54  ;;  %vm2512_vm0 = vcmp.lt.s32.totalorder %v2480_v60, 600  ;;  %v7669_v31 = vld [vmem:[%s4432_s15 + $0x68] sm:$0xff]  }
 0x449   : > { %v2638_v61 = vand.u32 2147483647, %v7626_v36  ;;  %v3080_v21 = vmul.f32 %v7482_v12, %v3048_v26  ;;  %v2969_v47 = vadd.f32 1.0, %v2968_v16  ;;  %v3801_v53 = vunpack.c.l.bf16 %v7641_v46 }
 0x44a   : > { %v7648_v44 = vpop.eup %4066  ;;  %v2442_v34 = vadd.s32 208, %v6957_v57  ;;  %v3249_v38 = vmul.f32 %v3793_v39, %v3116_v24  ;;  %v2732_v22 = vmul.f32 1.442695, %v2672_v0  ;;  %v7653_v19 = vmul.f32 0.5, %v2374_v2 }
 0x44b   : > { %v4069_v56 = vpop.eup %4068  ;;  %v2670_v59 = vsub.f32 0.0, %v2638_v61  ;;  %v3207_v51 = vadd.f32 %v3206_v6, %v3080_v21  ;;  %v2971_v48 = vand.u32 2147483647, %v7581_v18  ;;  %v3279_v11 = vadd.f32 %v3278_v42, %v3248_v23  ;;  %v2380_v21 = vpop.xlane.xlu0 %2379 }
 0x44c   : > { %v7657_v33 = vsel %vm2512_vm0, 1.0, %v4255_v1  ;;  %v3081_v12 = vmul.f32 %v7534_v10, %v3049_v9  ;;  %4070 = vlog2.f32 %v2947_v8  ;;  %v2956_v45 = vadd.f32 1.0, %v7648_v44 }
 0x44d   : > { %v2728_v30 = vmul.f32 1.442695, %v2670_v59  ;;  %v2967_v35 = vmul.f32 0.6931472, %v4069_v56  ;;  %v2478_v13 = vadd.s32 %v6963_v63, %v2442_v34  ;;  %v2443_v52 = vadd.s32 216, %v6957_v57 }
 0x44e   : > { %v2639_v50 = vand.u32 2147483647, %v7653_v19  ;;  %v2970_v29 = vmul.f32 %v7581_v18, %v2969_v47  ;;  %v2950_v14 = vmul.f32 -0.5, %v7628_v54  ;;  %v3280_v49 = vadd.f32 %v3279_v11, %v3249_v38 }
 0x44f   : > { %4072 = vpow2.f32 %v2732_v22  ;;  %v3120_v10 = vmul.f32 %v7657_v33, %v7595_v17  ;;  %v7671_v41 = vmul.f32 0.5, %v2378_v55  ;;  %v3208_v25 = vadd.f32 %v3207_v51, %v3081_v12 }
 0x450   : > { %4074 = vpow2.f32 %v2728_v30  ;;  %v2671_v43 = vsub.f32 0.0, %v2639_v50  ;;  %vm7673_vm15 = vcmp.lt.f32.partialorder %v2971_v48, 0.0004427343  ;;  %v2604_v18 = vmax.f32 %v7555_v58, 0.0 }
 0x451   : > { %4076 = vlog2.f32 %v2956_v45  ;;  %v2973_v60 = vsel %vm7673_vm15, %v2970_v29, %v2967_v35  ;;  %vm2510_vm11 = vcmp.lt.s32.totalorder %v2478_v13, 600  ;;  %v2479_v15 = vadd.s32 %v6963_v63, %v2443_v52 }
 0x452   : > { %v2730_v26 = vmul.f32 1.442695, %v2671_v43  ;;  %v4071_v37 = vpop.eup %4070  ;;  %v2951_v16 = vadd.f32 1.0, %v2950_v14  ;;  %v2953_v42 = vand.u32 2147483647, %v7628_v54  ;;  %v3797_v39 = vunpack.c.l.bf16 %v7669_v31 }
 0x453   : > { %v7683_v24 = vadd.f32 %v3280_v49, %v3250_v7  ;;  %v2959_v0 = vmul.f32 -0.5, %v7648_v44  ;;  %v7686_v6 = vmul.f32 %v3801_v53, %v3120_v10  ;;  %v2641_v23 = vand.u32 2147483647, %v7671_v41 }
 0x454   : > { %4078 = vpow2.f32 %v2730_v26  ;;  %v3053_v9 = vadd.f32 %v2973_v60, %v2605_v62  ;;  %v2962_v8 = vand.u32 2147483647, %v7648_v44  ;;  %v7695_v61 = vsel %vm2510_vm11, 1.0, %v4255_v1  ;;  %v2382_v60 = vpop.xlane.xlu1 %2381 }
 0x455   : > { %v7689_v2 = vpop.eup %4072  ;;  %v2606_v7 = vmax.f32 %v7626_v36, 0.0  ;;  %v7701_v53 = vadd.f32 %v3208_v25, %v7604_v27  ;;  %v2949_v34 = vmul.f32 0.6931472, %v4071_v37  ;;  %vm2511_vm9 = vcmp.lt.s32.totalorder %v2479_v15, 600 }
 0x456   : > { %v7698_v47 = vpop.eup %4074  ;;  %v2673_v56 = vsub.f32 0.0, %v2641_v23  ;;  %v2952_v32 = vmul.f32 %v7628_v54, %v2951_v16  ;;  %vm7704_vm13 = vcmp.lt.f32.partialorder %v2953_v42, 0.0004427343  ;;  %v2445_v59 = vadd.s32 232, %v6957_v57 }
 0x457   : > { %v4077_v38 = vpop.eup %4076  ;;  %v2974_v22 = vadd.f32 1.0, %v7698_v47  ;;  %v2960_v51 = vadd.f32 1.0, %v2959_v0  ;;  %v3118_v48 = vmul.f32 %v7695_v61, %v7626_v36  ;;  %v7712_v11 = vmul.f32 0.5, %v2380_v21 }
 0x458   : > { %v2734_v27 = vmul.f32 1.442695, %v2673_v56  ;;  %v7715_v12 = vmul.f32 %v7590_v4, %v3053_v9  ;;  %vm7717_vm3 = vcmp.lt.f32.partialorder %v2962_v8, 0.0004427343  ;;  %v7722_v45 = vsel %vm2511_vm9, 1.0, %v4255_v1 }
 0x459   : > { %v3798_v30 = vunpack.c.h.bf16 %v7669_v31  ;;  %v2955_v35 = vsel %vm7704_vm13, %v2952_v32, %v2949_v34  ;;  %v2958_v13 = vmul.f32 0.6931472, %v4077_v38  ;;  %v2992_v52 = vadd.f32 1.0, %v7689_v2 }
 0x45a   : > { %v7725_v55 = vpop.eup %4078  ;;  %4080 = vpow2.f32 %v2734_v27  ;;  %v2995_v4 = vmul.f32 -0.5, %v7689_v2  ;;  %v2481_v29 = vadd.s32 %v6963_v63, %v2445_v59  ;;  %v2961_v14 = vmul.f32 %v7648_v44, %v2960_v51 }
 0x45b   : > { %4082 = vlog2.f32 %v2974_v22  ;;  %v2983_v50 = vadd.f32 1.0, %v7725_v55  ;;  %v3251_v49 = vmul.f32 %v3797_v39, %v3118_v48  ;;  %v2446_v10 = vadd.s32 240, %v6957_v57 }
 0x45c   : > { %v2642_v31 = vand.u32 2147483647, %v7712_v11  ;;  %v3051_v43 = vadd.f32 %v2955_v35, %v2603_v20  ;;  %v3119_v25 = vmul.f32 %v7722_v45, %v7653_v19  ;;  %v3802_v40 = vunpack.c.h.bf16 %v7641_v46 }
 0x45d   : > { %4084 = vlog2.f32 %v2983_v50  ;;  %v2964_v15 = vsel %vm7717_vm3, %v2961_v14, %v2958_v13  ;;  %v2977_v44 = vmul.f32 -0.5, %v7698_v47  ;;  %v2996_v37 = vadd.f32 1.0, %v2995_v4 }
 0x45e   : > { %4086 = vlog2.f32 %v2992_v52  ;;  %v2674_v26 = vsub.f32 0.0, %v2642_v31  ;;  %v2998_v16 = vand.u32 2147483647, %v7689_v2  ;;  %vm2513_vm14 = vcmp.lt.s32.totalorder %v2481_v29, 600  ;;  %v3821_v52 = vld [vmem:[%s4432_s15 + $0x78] sm:$0xff]  }
 0x45f   : > { %v2447_v28 = vadd.s32 248, %v6957_v57  ;;  %v2986_v42 = vmul.f32 -0.5, %v7725_v55  ;;  %v2482_v39 = vadd.s32 %v6963_v63, %v2446_v10  ;;  %v7750_v23 = vmul.f32 0.5, %v2382_v60 }
 0x460   : > { %v7746_v20 = vpop.eup %4080  ;;  %v2736_v0 = vmul.f32 1.442695, %v2674_v26  ;;  %v3052_v8 = vadd.f32 %v2964_v15, %v2604_v18  ;;  %v2607_v21 = vmax.f32 %v7653_v19, 0.0  ;;  %v3252_v34 = vmul.f32 %v3798_v30, %v3119_v25 }
 0x461   : > { %v4083_v9 = vpop.eup %4082  ;;  %v3001_v56 = vadd.f32 1.0, %v7746_v20  ;;  %v3083_v57 = vmul.f32 %v7600_v5, %v3051_v43  ;;  %v2978_v38 = vadd.f32 1.0, %v2977_v44  ;;  %v3282_v32 = vadd.f32 %v7683_v24, %v3251_v49 }
 0x462   : > { %4088 = vpow2.f32 %v2736_v0  ;;  %v2997_v22 = vmul.f32 %v7689_v2, %v2996_v37  ;;  %vm7759_vm2 = vcmp.lt.f32.partialorder %v2998_v16, 0.0004427343  ;;  %v2980_v58 = vand.u32 2147483647, %v7698_v47 }
 0x463   : > { %v4085_v62 = vpop.eup %4084  ;;  %v7766_v19 = vsel %vm2513_vm14, 1.0, %v4255_v1  ;;  %v2483_v5 = vadd.s32 %v6963_v63, %v2447_v28  ;;  %v2976_v51 = vmul.f32 0.6931472, %v4083_v9  ;;  %v2987_v24 = vadd.f32 1.0, %v2986_v42 }
 0x464   : > { %v4087_v18 = vpop.eup %4086  ;;  %vm2514_vm10 = vcmp.lt.s32.totalorder %v2482_v39, 600  ;;  %v2643_v48 = vand.u32 2147483647, %v7750_v23  ;;  %v3084_v2 = vmul.f32 %v7619_v3, %v3052_v8  ;;  %v2989_v27 = vand.u32 2147483647, %v7725_v55 }
 0x465   : > { %v3283_v54 = vadd.f32 %v3282_v32, %v3252_v34  ;;  %4090 = vlog2.f32 %v3001_v56  ;;  %v2979_v30 = vmul.f32 %v7698_v47, %v2978_v38  ;;  %v2985_v35 = vmul.f32 0.6931472, %v4085_v62 }
 0x466   : > { %v3121_v13 = vmul.f32 %v7766_v19, %v7671_v41  ;;  %v2675_v63 = vsub.f32 0.0, %v2643_v48  ;;  %v2994_v4 = vmul.f32 0.6931472, %v4087_v18  ;;  %vm7776_vm4 = vcmp.lt.f32.partialorder %v2980_v58, 0.0004427343 }
 0x467   : > { %v7781_v29 = vsel %vm2514_vm10, 1.0, %v4255_v1  ;;  %vm2515_vm8 = vcmp.lt.s32.totalorder %v2483_v5, 600  ;;  %v2982_v14 = vsel %vm7776_vm4, %v2979_v30, %v2976_v51  ;;  %v2988_v47 = vmul.f32 %v7725_v55, %v2987_v24 }
 0x468   : > { %v4089_v3 = vpop.eup %4088  ;;  %v3004_v49 = vmul.f32 -0.5, %v7746_v20  ;;  %v2738_v10 = vmul.f32 1.442695, %v2675_v63  ;;  %v3210_v31 = vadd.f32 %v7701_v53, %v3083_v57  ;;  %vm7788_vm5 = vcmp.lt.f32.partialorder %v2989_v27, 0.0004427343 }
 0x469   : > { %v3805_v25 = vunpack.c.l.bf16 %v3821_v52  ;;  %v3010_v60 = vadd.f32 1.0, %v4089_v3  ;;  %v2991_v15 = vsel %vm7788_vm5, %v2988_v47, %v2985_v35  ;;  %v3013_v44 = vmul.f32 -0.5, %v4089_v3 }
 0x46a   : > { %v7795_v26 = vsel %vm2515_vm8, 1.0, %v4255_v1  ;;  %4092 = vpow2.f32 %v2738_v10  ;;  %v3211_v37 = vadd.f32 %v3210_v31, %v3084_v2  ;;  %v3054_v16 = vadd.f32 %v2982_v14, %v2606_v7 }
 0x46b   : > { %v4091_v55 = vpop.eup %4090  ;;  %4094 = vlog2.f32 %v3010_v60  ;;  %v3122_v53 = vmul.f32 %v7781_v29, %v7712_v11  ;;  %v3000_v28 = vsel %vm7759_vm2, %v2997_v22, %v2994_v4  ;;  %v3284_v42 = vadd.f32 %v3283_v54, %v7686_v6 }
 0x46c   : > { %v3005_v39 = vadd.f32 1.0, %v3004_v49  ;;  %v3254_v1 = vmul.f32 %v3802_v40, %v3121_v13  ;;  %v3055_v0 = vadd.f32 %v2991_v15, %v2607_v21  ;;  %v3007_v9 = vand.u32 2147483647, %v7746_v20 }
 0x46d   : > { %v3806_v8 = vunpack.c.h.bf16 %v3821_v52  ;;  %v3123_v36 = vmul.f32 %v7795_v26, %v7750_v23  ;;  %v2608_v7 = vmax.f32 %v7595_v17, 0.0  ;;  %v3003_v34 = vmul.f32 0.6931472, %v4091_v55 }
 0x46e   : > { %v3014_v56 = vadd.f32 1.0, %v3013_v44  ;;  %v3212_v57 = vadd.f32 %v3211_v37, %v7715_v12  ;;  %v3086_v38 = vmul.f32 %v7695_v61, %v3054_v16  ;;  %v3016_v6 = vand.u32 2147483647, %v4089_v3 }
 0x46f   : > { %v3255_v32 = vmul.f32 %v3805_v25, %v3122_v53  ;;  %v3056_v46 = vadd.f32 %v3000_v28, %v2608_v7  ;;  %v2609_v40 = vmax.f32 %v7671_v41, 0.0  ;;  %v3006_v21 = vmul.f32 %v7746_v20, %v3005_v39 }
 0x470   : > { %v4093_v62 = vpop.eup %4092  ;;  %v3285_v22 = vadd.f32 %v3284_v42, %v3254_v1  ;;  %v3087_v58 = vmul.f32 %v7722_v45, %v3055_v0  ;;  %vm3008_vm6 = vcmp.lt.f32.partialorder %v3007_v9, 0.0004427343  ;;  %v3256_v5 = vmul.f32 %v3806_v8, %v3123_v36 }
 0x471   : > { %v4095_v59 = vpop.eup %4094  ;;  %v3019_v17 = vadd.f32 1.0, %v4093_v62  ;;  %v3009_v18 = vsel %vm3008_vm6, %v3006_v21, %v3003_v34  ;;  %v3015_v12 = vmul.f32 %v4089_v3, %v3014_v56  ;;  %v3022_v24 = vmul.f32 -0.5, %v4093_v62 }
 0x472   : > { %v3012_v51 = vmul.f32 0.6931472, %v4095_v59  ;;  %v3213_v61 = vadd.f32 %v3212_v57, %v3086_v38  ;;  %vm3017_vm1 = vcmp.lt.f32.partialorder %v3016_v6, 0.0004427343  ;;  %v3286_v48 = vadd.f32 %v3285_v22, %v3255_v32 }
 0x473   : > { %4096 = vlog2.f32 %v3019_v17  ;;  %v3057_v41 = vadd.f32 %v3009_v18, %v2609_v40  ;;  %v2610_v20 = vmax.f32 %v7712_v11, 0.0  ;;  %v3023_v30 = vadd.f32 1.0, %v3022_v24 }
 0x474   : > { %v3018_v2 = vsel %vm3017_vm1, %v3015_v12, %v3012_v51  ;;  %v3214_v27 = vadd.f32 %v3213_v61, %v3087_v58  ;;  %v3287_v54 = vadd.f32 %v3286_v48, %v3256_v5  ;;  %v3088_v45 = vmul.f32 %v7657_v33, %v3056_v46 }
 0x475   : > { %v3058_v35 = vadd.f32 %v3018_v2, %v2610_v20  ;;  %v3025_v13 = vand.u32 2147483647, %v4093_v62  ;;  %v3089_v4 = vmul.f32 %v7766_v19, %v3057_v41  ;;  %v3024_v14 = vmul.f32 %v4093_v62, %v3023_v30 }
 0x476   : > { %v3215_v63 = vadd.f32 %v3214_v27, %v3088_v45  ;;  %v3288_v50 = vrot.slane %v3287_v54, 4  ;;  %v2611_v49 = vmax.f32 %v7750_v23, 0.0 }
 0x477   : > { %v3090_v47 = vmul.f32 %v7781_v29, %v3058_v35  ;;  %vm3026_vm12 = vcmp.lt.f32.partialorder %v3025_v13, 0.0004427343 }
 0x478   : > { %v3216_v10 = vadd.f32 %v3215_v63, %v3089_v4  ;;  %v3289_v43 = vadd.f32 %v3288_v50, %v3287_v54 }
 0x479   : > { %v4097_v52 = vpop.eup %4096 }
 0x47a   : > { %v3021_v3 = vmul.f32 0.6931472, %v4097_v52  ;;  %v3217_v33 = vadd.f32 %v3216_v10, %v3090_v47  ;;  %v3290_v19 = vrot.slane %v3289_v43, 2 }
 0x47c   : > { %v3027_v11 = vsel %vm3026_vm12, %v3024_v14, %v3021_v3  ;;  %v3291_v55 = vadd.f32 %v3290_v19, %v3289_v43 }
 0x47d   : > { %v3059_v31 = vadd.f32 %v3027_v11, %v2611_v49 }
 0x47e   : > { %v3292_v29 = vrot.slane %v3291_v55, 1 }
 0x47f   : > { %v3091_v25 = vmul.f32 %v7795_v26, %v3059_v31  ;;  %v3295_v26 = vld [vmem:[%s4436_s14] sm:$0xff] }
 0x480   : > { %v3293_v28 = vadd.f32 %v3292_v29, %v3291_v55 }
 0x481   : > { %v3218_v60 = vadd.f32 %v3217_v33, %v3091_v25 }
 0x483   : > { %v3219_v15 = vrot.slane %v3218_v60, 4 }
 0x485   : > { %v3220_v44 = vadd.f32 %v3219_v15, %v3218_v60 }
 0x487   : > { %v3221_v37 = vrot.slane %v3220_v44, 2 }
 0x489   : > { %v3222_v23 = vadd.f32 %v3221_v37, %v3220_v44 }
 0x48b   : > { %v3223_v16 = vrot.slane %v3222_v23, 1 }
 0x48d   : > { %v3224_v53 = vadd.f32 %v3223_v16, %v3222_v23 }
 0x48f   : > { %v3294_v42 = vsub.f32 %v3224_v53, %v3293_v28 }
 0x491   : > { %v3296_v39 = vadd.f32 %v3295_v26, %v3294_v42 }
 0x493   : > { %3297 = vst [vmem:[%s4436_s14] sm:$0xff] %v3296_v39 }
 0x494   : > { %4153 = shalt.err (!%p4150_p9)
}
 0x495   : > { %3839 = dma.vmem_to_hbm [thread:$0]  (%p4396_p12), %s3336_s13, 128, %s3338_s16, %s3304_s25  }
 0x496 PF: > { %s8548_s14 = sld [smem:[#allocation9_spill]]  ;;  %p3849_p10 = scmp.ge.s32.totalorder %s4248_s28, 2 }
 0x498   : > { %p3843_p11 = pnand %p3849_p10, %p4375_p7 }
 0x49a   : > { %p3844_p0 = pneg %p3843_p11 }
 0x49c   : > { %s3349_s7 = sand.u32 1, %s8548_s14  }
 0x49d   : > { %s3350_s9 = scalar_lea.sflag [#allocation3], %s3349_s7 }
 0x49e   : > { %4199 = dma.done.wait (%p3844_p0), %s3350_s9, 4096  }
 0x49f   : > { %4201 = vsyncadd (%p3844_p0), %s3350_s9, 4294963200  ;;  %s3359_s12 = sand.u32 1, %s4208_s18   ;;  %p3846_p1 = pnand %p3849_p10, %p4402_p13 }
 0x4a0   : > { %s3360_s21 = scalar_lea.sflag [#allocation5], %s3359_s12 }
 0x4a1   : > { %p3847_p5 = pneg %p3846_p1 }
 0x4a3   : > { %4203 = dma.done.wait (%p3847_p5), %s3360_s21, 128  }
 0x4a4   : > { %4205 = vsyncadd (%p3847_p5), %s3360_s21, 4294967168  ;;  %s22_s28 = sadd.s32 1, %s4248_s28   ;;  %s8551_s15 = sld [smem:[#allocation8_spill]] }
 0x4a5   : > { %p19_p12 = scmp.ge.s32.totalorder %s22_s28, 6   ;;  %s8552_s20 = sld [smem:[#allocation16_spill]] }
 0x4a6   : > { %s8553_s10 = sld [smem:[#allocation10_spill]]  ;;  %s8559_s18 = smov %s4212_s19 }
 0x4a7   : > { %s8554_s23 = sld [smem:[#allocation17_spill]]  ;;  %s8561_s21 = smov %s4224_s22 }
 0x4a8   : > { %s8555_s24 = sld [smem:[#allocation11_spill]]  ;;  %21 = sbr.rel (!%p19_p12) target bundleno = 9 (0x9), region = 98 }
 0x4a9   : > { %s8556_s25 = sld [smem:[#allocation12_spill]] }
 0x4aa   : > { %s8557_s26 = sld [smem:[#allocation13_spill]]  ;;  %s8560_s19 = smov %s8551_s15 }
 0x4ab   : > { %s8558_s27 = sld [smem:[#allocation14_spill]] }
 0x4ac   : > { %s8562_s22 = smov %s8553_s10 }
 0x4ad   :  { %3366 = vsyncpa [#allocation3], 1 }
 0x4ae   :  { %3368 = vsyncpa [#allocation3 + $0x1], 1 }
 0x4af   :  { %3369 = vsyncpa [#allocation5], 1 }
 0x4b0   :  { %3371 = vsyncpa [#allocation5 + $0x1], 1 }

</bundles_post_ra>
